<compile_context>
chip_gen: v7x
topology: tpu7x:2x2x1
jax: 0.10.0
libtpu: 0.0.40
codegen_flags: <defaults>
</compile_context>

<pallas_src>
import numpy as np

import jax
import jax.numpy as jnp
from jax.experimental import pallas as pl
from jax.experimental.pallas import tpu as pltpu


# ------------------------------ fused kernel ------------------------------- #

def _lenet_fused_kernel(x_ref, t1e_ref, t1o_ref, b1_ref,
                        t2e_ref, t2o_ref, b2_ref,
                        gfc_ref, bf_ref, wh_ref, bh_ref, out_ref):
    f32 = jnp.float32
    TB = x_ref.shape[0]
    x = x_ref[...]                                        # (TB, 48, 36)

    # conv1 (1->10, 9x9, valid) + bias + ReLU.
    # Row b*40 + oy holds output row oy (valid oy = 0..27); columns are
    # j*10 + co with j the *pooled* width index, split into even/odd ox.
    acc_e = None
    acc_o = None
    for dy in range(9):
        rows = x[:, dy:dy + 40, :].reshape(TB * 40, 36)
        te = jnp.dot(rows, t1e_ref[dy], preferred_element_type=f32)
        to = jnp.dot(rows, t1o_ref[dy], preferred_element_type=f32)
        acc_e = te if acc_e is None else acc_e + te
        acc_o = to if acc_o is None else acc_o + to
    h1e = jnp.maximum(acc_e + b1_ref[...], 0.0)
    h1o = jnp.maximum(acc_o + b1_ref[...], 0.0)

    # 2x2 max-pool: width via the even/odd column split, height via a +1-row
    # shifted max.  Pooled row i lives at per-sample row 2*i.
    hw = jnp.maximum(h1e, h1o)                            # (TB*40, 140)
    p1 = jnp.maximum(hw, jnp.concatenate([hw[1:], hw[:1]], axis=0))
    p1 = p1.reshape(TB, 40, 140)

    # conv2 (10->20, 5x5, valid) + bias + ReLU on the even-row pooled grid.
    # Output row py lives at per-sample row 2*py (valid py = 0..9).
    acc_e = None
    acc_o = None
    for dy in range(5):
        rows = p1[:, 2 * dy:2 * dy + 32, :].reshape(TB * 32, 140)
        te = jnp.dot(rows, t2e_ref[dy], preferred_element_type=f32)
        to = jnp.dot(rows, t2o_ref[dy], preferred_element_type=f32)
        acc_e = te if acc_e is None else acc_e + te
        acc_o = to if acc_o is None else acc_o + to
    h2e = jnp.maximum(acc_e + b2_ref[...], 0.0)
    h2o = jnp.maximum(acc_o + b2_ref[...], 0.0)

    # 2x2 max-pool: width via even/odd split, height partner is +2 rows.
    # Pooled row y2 lives at per-sample row 4*y2 (y2 = 0..4).
    hw2 = jnp.maximum(h2e, h2o)                           # (TB*32, 100)
    p2 = jnp.maximum(hw2, jnp.concatenate([hw2[2:], hw2[:2]], axis=0))
    p2 = p2.reshape(TB, 32, 100)

    # fc1 (500->50) + ReLU.  The NCHW flatten is folded into gfc; only row
    # b*16 + 0 of the accumulator is the real per-sample result (other rows
    # are harmless padding that keeps every reshape tile-aligned).
    fc = None
    for y2 in range(5):
        rows = p2[:, 4 * y2:4 * y2 + 16, :].reshape(TB * 16, 100)
        term = jnp.dot(rows, gfc_ref[y2], preferred_element_type=f32)
        fc = term if fc is None else fc + term
    fc = jnp.maximum(fc + bf_ref[...], 0.0)               # (TB*16, 50)

    # All task heads fused into one matmul: (TB*16, 50) @ (50, T*10).
    out_ref[...] = (jnp.dot(fc, wh_ref[...], preferred_element_type=f32)
                    + bh_ref[...])


# ------------------------- trace-time weight packing ------------------------ #

def _shift_matrix(in_w, starts, k):
    """E[ix, j, d] = 1  iff  ix == starts[j] + d  (static 0/1 constant)."""
    e = np.zeros((in_w, len(starts), k), np.float32)
    for j, s in enumerate(starts):
        for d in range(k):
            e[s + d, j, d] = 1.0
    return jnp.asarray(e)


def _pack_weights(params):
    hp = jax.lax.Precision.HIGHEST

    # conv1: (10, 1, 9, 9) -> banded matrices (9, 36, 14*10) for even/odd ox.
    w1 = params["conv1_w"][:, 0]                          # (co, dy, dx)
    e1e = _shift_matrix(36, range(0, 28, 2), 9)
    e1o = _shift_matrix(36, range(1, 28, 2), 9)
    t1e = jnp.einsum("xjd,cyd->yxjc", e1e, w1, precision=hp).reshape(9, 36, 140)
    t1o = jnp.einsum("xjd,cyd->yxjc", e1o, w1, precision=hp).reshape(9, 36, 140)
    b1t = jnp.tile(params["conv1_b"], 14).reshape(1, 140)

    # conv2: (20, 10, 5, 5) -> banded matrices (5, 14*10, 5*20) for even/odd ox.
    w2 = params["conv2_w"]                                # (c2, ci, dy, dx)
    e2e = _shift_matrix(14, range(0, 10, 2), 5)
    e2o = _shift_matrix(14, range(1, 10, 2), 5)
    t2e = jnp.einsum("xjd,ciyd->yxijc", e2e, w2, precision=hp).reshape(5, 140, 100)
    t2o = jnp.einsum("xjd,ciyd->yxijc", e2o, w2, precision=hp).reshape(5, 140, 100)
    b2t = jnp.tile(params["conv2_b"], 5).reshape(1, 100)

    # fc1: fold the PyTorch NCHW flatten (c, y, x) into the weight so the
    # kernel consumes its native (y, x*20+c) layout.
    gfc = jnp.transpose(params["fc1_w"].reshape(50, 20, 5, 5),
                        (2, 3, 1, 0)).reshape(5, 100, 50)
    bft = params["fc1_b"].reshape(1, 50)

    # All task heads as one (50, T*10) matrix.
    wh = jnp.transpose(params["task_w"], (2, 0, 1)).reshape(50, -1)
    bh = params["task_b"].reshape(1, -1)
    return t1e, t1o, b1t, t2e, t2o, b2t, gfc, bft, wh, bh


# --------------------------------- forward ---------------------------------- #

def lenet_forward(params, x, i=None):
    """x: (B, 1, 36, 36) NCHW float32, matching the PyTorch module."""
    B = x.shape[0]
    T = params["task_w"].shape[0]
    TO = T * 10

    t1e, t1o, b1t, t2e, t2o, b2t, gfc, bft, wh, bh = _pack_weights(params)

    # Batch tiling (grid axis is "parallel" -> usable by both v7x TCs), and
    # image rows padded 36 -> 48 so 40-row slices at offsets 0..8 stay in
    # bounds.  Padding is zeros, so padded rows/samples stay finite & unused.
    tb = B if B <= 8 else 8
    nb = -(-B // tb)
    b_pad = nb * tb
    xp = jnp.pad(x.reshape(B, 36, 36).astype(jnp.float32),
                 ((0, b_pad - B), (0, 12), (0, 0)))

    out = pl.pallas_call(
        _lenet_fused_kernel,
        out_shape=jax.ShapeDtypeStruct((b_pad * 16, TO), jnp.float32),
        grid=(nb,),
        in_specs=[
            pl.BlockSpec((tb, 48, 36), lambda i: (i, 0, 0)),     # input tile
            pl.BlockSpec((9, 36, 140), lambda i: (0, 0, 0)),     # conv1 even
            pl.BlockSpec((9, 36, 140), lambda i: (0, 0, 0)),     # conv1 odd
            pl.BlockSpec((1, 140), lambda i: (0, 0)),            # conv1 bias
            pl.BlockSpec((5, 140, 100), lambda i: (0, 0, 0)),    # conv2 even
            pl.BlockSpec((5, 140, 100), lambda i: (0, 0, 0)),    # conv2 odd
            pl.BlockSpec((1, 100), lambda i: (0, 0)),            # conv2 bias
            pl.BlockSpec((5, 100, 50), lambda i: (0, 0, 0)),     # fc1 weight
            pl.BlockSpec((1, 50), lambda i: (0, 0)),             # fc1 bias
            pl.BlockSpec((50, TO), lambda i: (0, 0)),            # heads weight
            pl.BlockSpec((1, TO), lambda i: (0, 0)),             # heads bias
        ],
        out_specs=pl.BlockSpec((tb * 16, TO), lambda i: (i, 0)),
        compiler_params=pltpu.CompilerParams(
            dimension_semantics=("parallel",)),
    )(xp, t1e, t1o, b1t, t2e, t2o, b2t, gfc, bft, wh, bh)

    # Row b*16 of each batch tile holds sample b's logits for all tasks.
    outs = out.reshape(b_pad, 16, TO)[:B, 0, :].reshape(B, T, 10)
    outs = jnp.transpose(outs, (1, 0, 2))                 # (T, B, 10)
    if i is not None:
        return outs[i]
    return outs


# ------------------------------ params / reference -------------------------- #

def init_params(key, n_tasks):
    ks = jax.random.split(key, 8)

    def u(k, shape, fan_in):
        bound = 1.0 / jnp.sqrt(jnp.float32(fan_in))
        return jax.random.uniform(k, shape, jnp.float32, -bound, bound)

    return {
        "conv1_w": u(ks[0], (10, 1, 9, 9), 1 * 9 * 9),
        "conv1_b": u(ks[1], (10,), 1 * 9 * 9),
        "conv2_w": u(ks[2], (20, 10, 5, 5), 10 * 5 * 5),
        "conv2_b": u(ks[3], (20,), 10 * 5 * 5),
        "fc1_w":   u(ks[4], (50, 500), 500),              # PyTorch Linear: (out, in)
        "fc1_b":   u(ks[5], (50,), 500),
        "task_w":  u(ks[6], (n_tasks, 10, 50), 50),
        "task_b":  u(ks[7], (n_tasks, 10), 50),
    }


def lenet_reference(params, x):
    """Pure-JAX reference of the PyTorch forward (for self-check)."""
    dn = ("NCHW", "OIHW", "NCHW")
    hp = jax.lax.Precision.HIGHEST
    h = jax.lax.conv_general_dilated(x, params["conv1_w"], (1, 1), "VALID",
                                     dimension_numbers=dn, precision=hp)
    h = jax.nn.relu(h + params["conv1_b"][None, :, None, None])
    h = jax.lax.reduce_window(h, -jnp.inf, jax.lax.max,
                              (1, 1, 2, 2), (1, 1, 2, 2), "VALID")
    h = jax.lax.conv_general_dilated(h, params["conv2_w"], (1, 1), "VALID",
                                     dimension_numbers=dn, precision=hp)
    h = jax.nn.relu(h + params["conv2_b"][None, :, None, None])
    h = jax.lax.reduce_window(h, -jnp.inf, jax.lax.max,
                              (1, 1, 2, 2), (1, 1, 2, 2), "VALID")
    h = h.reshape(h.shape[0], -1)                          # NCHW flatten
    h = jax.nn.relu(jnp.dot(h, params["fc1_w"].T, precision=hp)
                    + params["fc1_b"])
    outs = [jnp.dot(h, params["task_w"][t].T, precision=hp) + params["task_b"][t]
            for t in range(params["task_w"].shape[0])]
    return jnp.stack(outs, axis=0)


# ----------------------------------- main ----------------------------------- #

if __name__ == "__main__":
    n_tasks = 2
    batch = 2
    key = jax.random.PRNGKey(0)
    pkey, xkey = jax.random.split(key)
    params = init_params(pkey, n_tasks)

    # fc1 expects 5*5*20 features, which pins the input spatial size to 36x36.
    x = jax.random.normal(xkey, (batch, 1, 36, 36), jnp.float32)

    out = jax.jit(lenet_forward)(params, x)
    jax.block_until_ready(out)
    assert out.shape == (n_tasks, batch, 10), out.shape
    assert out.dtype == jnp.float32

    ref = lenet_reference(params, x)
    err = float(jnp.max(jnp.abs(out - ref)))
    assert jnp.allclose(out, ref, rtol=2e-2, atol=2e-2), err

    print("KERNEL_OK")
</pallas_src>

<mosaic_0001>
module attributes {stable_mosaic.version = 11 : i64} {
  func.func @_lenet_fused_kernel(%arg0: i32, %arg1: memref<2x48x36xf32, #tpu.memory_space<vmem>>, %arg2: memref<9x36x140xf32, #tpu.memory_space<vmem>>, %arg3: memref<9x36x140xf32, #tpu.memory_space<vmem>>, %arg4: memref<1x140xf32, #tpu.memory_space<vmem>>, %arg5: memref<5x140x100xf32, #tpu.memory_space<vmem>>, %arg6: memref<5x140x100xf32, #tpu.memory_space<vmem>>, %arg7: memref<1x100xf32, #tpu.memory_space<vmem>>, %arg8: memref<5x100x50xf32, #tpu.memory_space<vmem>>, %arg9: memref<1x50xf32, #tpu.memory_space<vmem>>, %arg10: memref<50x20xf32, #tpu.memory_space<vmem>>, %arg11: memref<1x20xf32, #tpu.memory_space<vmem>>, %arg12: memref<32x20xf32, #tpu.memory_space<vmem>>) attributes {dimension_semantics = [#tpu.dimension_semantics<parallel>], iteration_bounds = array<i64: 1>, scalar_prefetch = 0 : i64, scratch_operands = 0 : i64, tpu.core_type = #tpu.core_type<tc>, window_params = [{transform_indices = @transform_0, window_bounds = array<i64: 2, 48, 36>}, {pipeline_mode = #tpu.pipeline_mode<synchronous>, transform_indices = @transform_1, window_bounds = array<i64: 9, 36, 140>}, {pipeline_mode = #tpu.pipeline_mode<synchronous>, transform_indices = @transform_2, window_bounds = array<i64: 9, 36, 140>}, {pipeline_mode = #tpu.pipeline_mode<synchronous>, transform_indices = @transform_3, window_bounds = array<i64: 1, 140>}, {pipeline_mode = #tpu.pipeline_mode<synchronous>, transform_indices = @transform_4, window_bounds = array<i64: 5, 140, 100>}, {pipeline_mode = #tpu.pipeline_mode<synchronous>, transform_indices = @transform_5, window_bounds = array<i64: 5, 140, 100>}, {pipeline_mode = #tpu.pipeline_mode<synchronous>, transform_indices = @transform_6, window_bounds = array<i64: 1, 100>}, {pipeline_mode = #tpu.pipeline_mode<synchronous>, transform_indices = @transform_7, window_bounds = array<i64: 5, 100, 50>}, {pipeline_mode = #tpu.pipeline_mode<synchronous>, transform_indices = @transform_8, window_bounds = array<i64: 1, 50>}, {pipeline_mode = #tpu.pipeline_mode<synchronous>, transform_indices = @transform_9, window_bounds = array<i64: 50, 20>}, {pipeline_mode = #tpu.pipeline_mode<synchronous>, transform_indices = @transform_10, window_bounds = array<i64: 1, 20>}, {transform_indices = @transform_11, window_bounds = array<i64: 32, 20>}]} {
    %c0 = arith.constant 0 : index
    %c0_0 = arith.constant 0 : index
    %c0_1 = arith.constant 0 : index
    %0 = vector.load %arg1[%c0, %c0_0, %c0_1] : memref<2x48x36xf32, #tpu.memory_space<vmem>>, vector<2x48x36xf32>
    %1 = vector.extract_strided_slice %0 {offsets = [0, 0, 0], sizes = [2, 40, 36], strides = [1, 1, 1]} : vector<2x48x36xf32> to vector<2x40x36xf32>
    %2 = vector.shape_cast %1 : vector<2x40x36xf32> to vector<80x36xf32>
    %c0_2 = arith.constant 0 : index
    %c0_3 = arith.constant 0 : index
    %c0_4 = arith.constant 0 : index
    %3 = vector.load %arg2[%c0_2, %c0_3, %c0_4] : memref<9x36x140xf32, #tpu.memory_space<vmem>>, vector<1x36x140xf32>
    %4 = vector.shape_cast %3 : vector<1x36x140xf32> to vector<36x140xf32>
    %cst = arith.constant dense<0.000000e+00> : vector<80x140xf32>
    %5 = tpu.matmul %2, %4, %cst {dimension_numbers = #tpu.dot_dimension_numbers<[1], [0], [0], [1], [0, 0, 1, 1], [], []>} : vector<80x36xf32>, vector<36x140xf32>, vector<80x140xf32> -> vector<80x140xf32>
    %c0_5 = arith.constant 0 : index
    %c0_6 = arith.constant 0 : index
    %c0_7 = arith.constant 0 : index
    %6 = vector.load %arg3[%c0_5, %c0_6, %c0_7] : memref<9x36x140xf32, #tpu.memory_space<vmem>>, vector<1x36x140xf32>
    %7 = vector.shape_cast %6 : vector<1x36x140xf32> to vector<36x140xf32>
    %cst_8 = arith.constant dense<0.000000e+00> : vector<80x140xf32>
    %8 = tpu.matmul %2, %7, %cst_8 {dimension_numbers = #tpu.dot_dimension_numbers<[1], [0], [0], [1], [0, 0, 1, 1], [], []>} : vector<80x36xf32>, vector<36x140xf32>, vector<80x140xf32> -> vector<80x140xf32>
    %9 = vector.extract_strided_slice %0 {offsets = [0, 1, 0], sizes = [2, 40, 36], strides = [1, 1, 1]} : vector<2x48x36xf32> to vector<2x40x36xf32>
    %10 = vector.shape_cast %9 : vector<2x40x36xf32> to vector<80x36xf32>
    %c1 = arith.constant 1 : index
    %c0_9 = arith.constant 0 : index
    %c0_10 = arith.constant 0 : index
    %11 = vector.load %arg2[%c1, %c0_9, %c0_10] : memref<9x36x140xf32, #tpu.memory_space<vmem>>, vector<1x36x140xf32>
    %12 = vector.shape_cast %11 : vector<1x36x140xf32> to vector<36x140xf32>
    %cst_11 = arith.constant dense<0.000000e+00> : vector<80x140xf32>
    %13 = tpu.matmul %10, %12, %cst_11 {dimension_numbers = #tpu.dot_dimension_numbers<[1], [0], [0], [1], [0, 0, 1, 1], [], []>} : vector<80x36xf32>, vector<36x140xf32>, vector<80x140xf32> -> vector<80x140xf32>
    %c1_12 = arith.constant 1 : index
    %c0_13 = arith.constant 0 : index
    %c0_14 = arith.constant 0 : index
    %14 = vector.load %arg3[%c1_12, %c0_13, %c0_14] : memref<9x36x140xf32, #tpu.memory_space<vmem>>, vector<1x36x140xf32>
    %15 = vector.shape_cast %14 : vector<1x36x140xf32> to vector<36x140xf32>
    %cst_15 = arith.constant dense<0.000000e+00> : vector<80x140xf32>
    %16 = tpu.matmul %10, %15, %cst_15 {dimension_numbers = #tpu.dot_dimension_numbers<[1], [0], [0], [1], [0, 0, 1, 1], [], []>} : vector<80x36xf32>, vector<36x140xf32>, vector<80x140xf32> -> vector<80x140xf32>
    %17 = arith.addf %5, %13 : vector<80x140xf32>
    %18 = arith.addf %8, %16 : vector<80x140xf32>
    %19 = vector.extract_strided_slice %0 {offsets = [0, 2, 0], sizes = [2, 40, 36], strides = [1, 1, 1]} : vector<2x48x36xf32> to vector<2x40x36xf32>
    %20 = vector.shape_cast %19 : vector<2x40x36xf32> to vector<80x36xf32>
    %c2 = arith.constant 2 : index
    %c0_16 = arith.constant 0 : index
    %c0_17 = arith.constant 0 : index
    %21 = vector.load %arg2[%c2, %c0_16, %c0_17] : memref<9x36x140xf32, #tpu.memory_space<vmem>>, vector<1x36x140xf32>
    %22 = vector.shape_cast %21 : vector<1x36x140xf32> to vector<36x140xf32>
    %cst_18 = arith.constant dense<0.000000e+00> : vector<80x140xf32>
    %23 = tpu.matmul %20, %22, %cst_18 {dimension_numbers = #tpu.dot_dimension_numbers<[1], [0], [0], [1], [0, 0, 1, 1], [], []>} : vector<80x36xf32>, vector<36x140xf32>, vector<80x140xf32> -> vector<80x140xf32>
    %c2_19 = arith.constant 2 : index
    %c0_20 = arith.constant 0 : index
    %c0_21 = arith.constant 0 : index
    %24 = vector.load %arg3[%c2_19, %c0_20, %c0_21] : memref<9x36x140xf32, #tpu.memory_space<vmem>>, vector<1x36x140xf32>
    %25 = vector.shape_cast %24 : vector<1x36x140xf32> to vector<36x140xf32>
    %cst_22 = arith.constant dense<0.000000e+00> : vector<80x140xf32>
    %26 = tpu.matmul %20, %25, %cst_22 {dimension_numbers = #tpu.dot_dimension_numbers<[1], [0], [0], [1], [0, 0, 1, 1], [], []>} : vector<80x36xf32>, vector<36x140xf32>, vector<80x140xf32> -> vector<80x140xf32>
    %27 = arith.addf %17, %23 : vector<80x140xf32>
    %28 = arith.addf %18, %26 : vector<80x140xf32>
    %29 = vector.extract_strided_slice %0 {offsets = [0, 3, 0], sizes = [2, 40, 36], strides = [1, 1, 1]} : vector<2x48x36xf32> to vector<2x40x36xf32>
    %30 = vector.shape_cast %29 : vector<2x40x36xf32> to vector<80x36xf32>
    %c3 = arith.constant 3 : index
    %c0_23 = arith.constant 0 : index
    %c0_24 = arith.constant 0 : index
    %31 = vector.load %arg2[%c3, %c0_23, %c0_24] : memref<9x36x140xf32, #tpu.memory_space<vmem>>, vector<1x36x140xf32>
    %32 = vector.shape_cast %31 : vector<1x36x140xf32> to vector<36x140xf32>
    %cst_25 = arith.constant dense<0.000000e+00> : vector<80x140xf32>
    %33 = tpu.matmul %30, %32, %cst_25 {dimension_numbers = #tpu.dot_dimension_numbers<[1], [0], [0], [1], [0, 0, 1, 1], [], []>} : vector<80x36xf32>, vector<36x140xf32>, vector<80x140xf32> -> vector<80x140xf32>
    %c3_26 = arith.constant 3 : index
    %c0_27 = arith.constant 0 : index
    %c0_28 = arith.constant 0 : index
    %34 = vector.load %arg3[%c3_26, %c0_27, %c0_28] : memref<9x36x140xf32, #tpu.memory_space<vmem>>, vector<1x36x140xf32>
    %35 = vector.shape_cast %34 : vector<1x36x140xf32> to vector<36x140xf32>
    %cst_29 = arith.constant dense<0.000000e+00> : vector<80x140xf32>
    %36 = tpu.matmul %30, %35, %cst_29 {dimension_numbers = #tpu.dot_dimension_numbers<[1], [0], [0], [1], [0, 0, 1, 1], [], []>} : vector<80x36xf32>, vector<36x140xf32>, vector<80x140xf32> -> vector<80x140xf32>
    %37 = arith.addf %27, %33 : vector<80x140xf32>
    %38 = arith.addf %28, %36 : vector<80x140xf32>
    %39 = vector.extract_strided_slice %0 {offsets = [0, 4, 0], sizes = [2, 40, 36], strides = [1, 1, 1]} : vector<2x48x36xf32> to vector<2x40x36xf32>
    %40 = vector.shape_cast %39 : vector<2x40x36xf32> to vector<80x36xf32>
    %c4 = arith.constant 4 : index
    %c0_30 = arith.constant 0 : index
    %c0_31 = arith.constant 0 : index
    %41 = vector.load %arg2[%c4, %c0_30, %c0_31] : memref<9x36x140xf32, #tpu.memory_space<vmem>>, vector<1x36x140xf32>
    %42 = vector.shape_cast %41 : vector<1x36x140xf32> to vector<36x140xf32>
    %cst_32 = arith.constant dense<0.000000e+00> : vector<80x140xf32>
    %43 = tpu.matmul %40, %42, %cst_32 {dimension_numbers = #tpu.dot_dimension_numbers<[1], [0], [0], [1], [0, 0, 1, 1], [], []>} : vector<80x36xf32>, vector<36x140xf32>, vector<80x140xf32> -> vector<80x140xf32>
    %c4_33 = arith.constant 4 : index
    %c0_34 = arith.constant 0 : index
    %c0_35 = arith.constant 0 : index
    %44 = vector.load %arg3[%c4_33, %c0_34, %c0_35] : memref<9x36x140xf32, #tpu.memory_space<vmem>>, vector<1x36x140xf32>
    %45 = vector.shape_cast %44 : vector<1x36x140xf32> to vector<36x140xf32>
    %cst_36 = arith.constant dense<0.000000e+00> : vector<80x140xf32>
    %46 = tpu.matmul %40, %45, %cst_36 {dimension_numbers = #tpu.dot_dimension_numbers<[1], [0], [0], [1], [0, 0, 1, 1], [], []>} : vector<80x36xf32>, vector<36x140xf32>, vector<80x140xf32> -> vector<80x140xf32>
    %47 = arith.addf %37, %43 : vector<80x140xf32>
    %48 = arith.addf %38, %46 : vector<80x140xf32>
    %49 = vector.extract_strided_slice %0 {offsets = [0, 5, 0], sizes = [2, 40, 36], strides = [1, 1, 1]} : vector<2x48x36xf32> to vector<2x40x36xf32>
    %50 = vector.shape_cast %49 : vector<2x40x36xf32> to vector<80x36xf32>
    %c5 = arith.constant 5 : index
    %c0_37 = arith.constant 0 : index
    %c0_38 = arith.constant 0 : index
    %51 = vector.load %arg2[%c5, %c0_37, %c0_38] : memref<9x36x140xf32, #tpu.memory_space<vmem>>, vector<1x36x140xf32>
    %52 = vector.shape_cast %51 : vector<1x36x140xf32> to vector<36x140xf32>
    %cst_39 = arith.constant dense<0.000000e+00> : vector<80x140xf32>
    %53 = tpu.matmul %50, %52, %cst_39 {dimension_numbers = #tpu.dot_dimension_numbers<[1], [0], [0], [1], [0, 0, 1, 1], [], []>} : vector<80x36xf32>, vector<36x140xf32>, vector<80x140xf32> -> vector<80x140xf32>
    %c5_40 = arith.constant 5 : index
    %c0_41 = arith.constant 0 : index
    %c0_42 = arith.constant 0 : index
    %54 = vector.load %arg3[%c5_40, %c0_41, %c0_42] : memref<9x36x140xf32, #tpu.memory_space<vmem>>, vector<1x36x140xf32>
    %55 = vector.shape_cast %54 : vector<1x36x140xf32> to vector<36x140xf32>
    %cst_43 = arith.constant dense<0.000000e+00> : vector<80x140xf32>
    %56 = tpu.matmul %50, %55, %cst_43 {dimension_numbers = #tpu.dot_dimension_numbers<[1], [0], [0], [1], [0, 0, 1, 1], [], []>} : vector<80x36xf32>, vector<36x140xf32>, vector<80x140xf32> -> vector<80x140xf32>
    %57 = arith.addf %47, %53 : vector<80x140xf32>
    %58 = arith.addf %48, %56 : vector<80x140xf32>
    %59 = vector.extract_strided_slice %0 {offsets = [0, 6, 0], sizes = [2, 40, 36], strides = [1, 1, 1]} : vector<2x48x36xf32> to vector<2x40x36xf32>
    %60 = vector.shape_cast %59 : vector<2x40x36xf32> to vector<80x36xf32>
    %c6 = arith.constant 6 : index
    %c0_44 = arith.constant 0 : index
    %c0_45 = arith.constant 0 : index
    %61 = vector.load %arg2[%c6, %c0_44, %c0_45] : memref<9x36x140xf32, #tpu.memory_space<vmem>>, vector<1x36x140xf32>
    %62 = vector.shape_cast %61 : vector<1x36x140xf32> to vector<36x140xf32>
    %cst_46 = arith.constant dense<0.000000e+00> : vector<80x140xf32>
    %63 = tpu.matmul %60, %62, %cst_46 {dimension_numbers = #tpu.dot_dimension_numbers<[1], [0], [0], [1], [0, 0, 1, 1], [], []>} : vector<80x36xf32>, vector<36x140xf32>, vector<80x140xf32> -> vector<80x140xf32>
    %c6_47 = arith.constant 6 : index
    %c0_48 = arith.constant 0 : index
    %c0_49 = arith.constant 0 : index
    %64 = vector.load %arg3[%c6_47, %c0_48, %c0_49] : memref<9x36x140xf32, #tpu.memory_space<vmem>>, vector<1x36x140xf32>
    %65 = vector.shape_cast %64 : vector<1x36x140xf32> to vector<36x140xf32>
    %cst_50 = arith.constant dense<0.000000e+00> : vector<80x140xf32>
    %66 = tpu.matmul %60, %65, %cst_50 {dimension_numbers = #tpu.dot_dimension_numbers<[1], [0], [0], [1], [0, 0, 1, 1], [], []>} : vector<80x36xf32>, vector<36x140xf32>, vector<80x140xf32> -> vector<80x140xf32>
    %67 = arith.addf %57, %63 : vector<80x140xf32>
    %68 = arith.addf %58, %66 : vector<80x140xf32>
    %69 = vector.extract_strided_slice %0 {offsets = [0, 7, 0], sizes = [2, 40, 36], strides = [1, 1, 1]} : vector<2x48x36xf32> to vector<2x40x36xf32>
    %70 = vector.shape_cast %69 : vector<2x40x36xf32> to vector<80x36xf32>
    %c7 = arith.constant 7 : index
    %c0_51 = arith.constant 0 : index
    %c0_52 = arith.constant 0 : index
    %71 = vector.load %arg2[%c7, %c0_51, %c0_52] : memref<9x36x140xf32, #tpu.memory_space<vmem>>, vector<1x36x140xf32>
    %72 = vector.shape_cast %71 : vector<1x36x140xf32> to vector<36x140xf32>
    %cst_53 = arith.constant dense<0.000000e+00> : vector<80x140xf32>
    %73 = tpu.matmul %70, %72, %cst_53 {dimension_numbers = #tpu.dot_dimension_numbers<[1], [0], [0], [1], [0, 0, 1, 1], [], []>} : vector<80x36xf32>, vector<36x140xf32>, vector<80x140xf32> -> vector<80x140xf32>
    %c7_54 = arith.constant 7 : index
    %c0_55 = arith.constant 0 : index
    %c0_56 = arith.constant 0 : index
    %74 = vector.load %arg3[%c7_54, %c0_55, %c0_56] : memref<9x36x140xf32, #tpu.memory_space<vmem>>, vector<1x36x140xf32>
    %75 = vector.shape_cast %74 : vector<1x36x140xf32> to vector<36x140xf32>
    %cst_57 = arith.constant dense<0.000000e+00> : vector<80x140xf32>
    %76 = tpu.matmul %70, %75, %cst_57 {dimension_numbers = #tpu.dot_dimension_numbers<[1], [0], [0], [1], [0, 0, 1, 1], [], []>} : vector<80x36xf32>, vector<36x140xf32>, vector<80x140xf32> -> vector<80x140xf32>
    %77 = arith.addf %67, %73 : vector<80x140xf32>
    %78 = arith.addf %68, %76 : vector<80x140xf32>
    %79 = vector.extract_strided_slice %0 {offsets = [0, 8, 0], sizes = [2, 40, 36], strides = [1, 1, 1]} : vector<2x48x36xf32> to vector<2x40x36xf32>
    %80 = vector.shape_cast %79 : vector<2x40x36xf32> to vector<80x36xf32>
    %c8 = arith.constant 8 : index
    %c0_58 = arith.constant 0 : index
    %c0_59 = arith.constant 0 : index
    %81 = vector.load %arg2[%c8, %c0_58, %c0_59] : memref<9x36x140xf32, #tpu.memory_space<vmem>>, vector<1x36x140xf32>
    %82 = vector.shape_cast %81 : vector<1x36x140xf32> to vector<36x140xf32>
    %cst_60 = arith.constant dense<0.000000e+00> : vector<80x140xf32>
    %83 = tpu.matmul %80, %82, %cst_60 {dimension_numbers = #tpu.dot_dimension_numbers<[1], [0], [0], [1], [0, 0, 1, 1], [], []>} : vector<80x36xf32>, vector<36x140xf32>, vector<80x140xf32> -> vector<80x140xf32>
    %c8_61 = arith.constant 8 : index
    %c0_62 = arith.constant 0 : index
    %c0_63 = arith.constant 0 : index
    %84 = vector.load %arg3[%c8_61, %c0_62, %c0_63] : memref<9x36x140xf32, #tpu.memory_space<vmem>>, vector<1x36x140xf32>
    %85 = vector.shape_cast %84 : vector<1x36x140xf32> to vector<36x140xf32>
    %cst_64 = arith.constant dense<0.000000e+00> : vector<80x140xf32>
    %86 = tpu.matmul %80, %85, %cst_64 {dimension_numbers = #tpu.dot_dimension_numbers<[1], [0], [0], [1], [0, 0, 1, 1], [], []>} : vector<80x36xf32>, vector<36x140xf32>, vector<80x140xf32> -> vector<80x140xf32>
    %87 = arith.addf %77, %83 : vector<80x140xf32>
    %88 = arith.addf %78, %86 : vector<80x140xf32>
    %c0_65 = arith.constant 0 : index
    %c0_66 = arith.constant 0 : index
    %89 = vector.load %arg4[%c0_65, %c0_66] : memref<1x140xf32, #tpu.memory_space<vmem>>, vector<1x140xf32>
    %90 = vector.broadcast %89 : vector<1x140xf32> to vector<80x140xf32>
    %91 = arith.addf %87, %90 : vector<80x140xf32>
    %cst_67 = arith.constant 0.000000e+00 : f32
    %92 = vector.broadcast %cst_67 : f32 to vector<80x140xf32>
    %93 = arith.maximumf %91, %92 : vector<80x140xf32>
    %c0_68 = arith.constant 0 : index
    %c0_69 = arith.constant 0 : index
    %94 = vector.load %arg4[%c0_68, %c0_69] : memref<1x140xf32, #tpu.memory_space<vmem>>, vector<1x140xf32>
    %95 = vector.broadcast %94 : vector<1x140xf32> to vector<80x140xf32>
    %96 = arith.addf %88, %95 : vector<80x140xf32>
    %cst_70 = arith.constant 0.000000e+00 : f32
    %97 = vector.broadcast %cst_70 : f32 to vector<80x140xf32>
    %98 = arith.maximumf %96, %97 : vector<80x140xf32>
    %99 = arith.maximumf %93, %98 : vector<80x140xf32>
    %100 = vector.extract_strided_slice %99 {offsets = [1, 0], sizes = [79, 140], strides = [1, 1]} : vector<80x140xf32> to vector<79x140xf32>
    %101 = vector.extract_strided_slice %99 {offsets = [0, 0], sizes = [1, 140], strides = [1, 1]} : vector<80x140xf32> to vector<1x140xf32>
    %102 = tpu.concatenate %100, %101 in 0 : vector<79x140xf32>, vector<1x140xf32> -> vector<80x140xf32>
    %103 = arith.maximumf %99, %102 : vector<80x140xf32>
    %104 = vector.shape_cast %103 : vector<80x140xf32> to vector<2x40x140xf32>
    %105 = vector.extract_strided_slice %104 {offsets = [0, 0, 0], sizes = [2, 32, 140], strides = [1, 1, 1]} : vector<2x40x140xf32> to vector<2x32x140xf32>
    %106 = vector.shape_cast %105 : vector<2x32x140xf32> to vector<64x140xf32>
    %c0_71 = arith.constant 0 : index
    %c0_72 = arith.constant 0 : index
    %c0_73 = arith.constant 0 : index
    %107 = vector.load %arg5[%c0_71, %c0_72, %c0_73] : memref<5x140x100xf32, #tpu.memory_space<vmem>>, vector<1x140x100xf32>
    %108 = vector.shape_cast %107 : vector<1x140x100xf32> to vector<140x100xf32>
    %cst_74 = arith.constant dense<0.000000e+00> : vector<64x100xf32>
    %109 = tpu.matmul %106, %108, %cst_74 {dimension_numbers = #tpu.dot_dimension_numbers<[1], [0], [0], [1], [0, 0, 1, 1], [], []>} : vector<64x140xf32>, vector<140x100xf32>, vector<64x100xf32> -> vector<64x100xf32>
    %c0_75 = arith.constant 0 : index
    %c0_76 = arith.constant 0 : index
    %c0_77 = arith.constant 0 : index
    %110 = vector.load %arg6[%c0_75, %c0_76, %c0_77] : memref<5x140x100xf32, #tpu.memory_space<vmem>>, vector<1x140x100xf32>
    %111 = vector.shape_cast %110 : vector<1x140x100xf32> to vector<140x100xf32>
    %cst_78 = arith.constant dense<0.000000e+00> : vector<64x100xf32>
    %112 = tpu.matmul %106, %111, %cst_78 {dimension_numbers = #tpu.dot_dimension_numbers<[1], [0], [0], [1], [0, 0, 1, 1], [], []>} : vector<64x140xf32>, vector<140x100xf32>, vector<64x100xf32> -> vector<64x100xf32>
    %113 = vector.extract_strided_slice %104 {offsets = [0, 2, 0], sizes = [2, 32, 140], strides = [1, 1, 1]} : vector<2x40x140xf32> to vector<2x32x140xf32>
    %114 = vector.shape_cast %113 : vector<2x32x140xf32> to vector<64x140xf32>
    %c1_79 = arith.constant 1 : index
    %c0_80 = arith.constant 0 : index
    %c0_81 = arith.constant 0 : index
    %115 = vector.load %arg5[%c1_79, %c0_80, %c0_81] : memref<5x140x100xf32, #tpu.memory_space<vmem>>, vector<1x140x100xf32>
    %116 = vector.shape_cast %115 : vector<1x140x100xf32> to vector<140x100xf32>
    %cst_82 = arith.constant dense<0.000000e+00> : vector<64x100xf32>
    %117 = tpu.matmul %114, %116, %cst_82 {dimension_numbers = #tpu.dot_dimension_numbers<[1], [0], [0], [1], [0, 0, 1, 1], [], []>} : vector<64x140xf32>, vector<140x100xf32>, vector<64x100xf32> -> vector<64x100xf32>
    %c1_83 = arith.constant 1 : index
    %c0_84 = arith.constant 0 : index
    %c0_85 = arith.constant 0 : index
    %118 = vector.load %arg6[%c1_83, %c0_84, %c0_85] : memref<5x140x100xf32, #tpu.memory_space<vmem>>, vector<1x140x100xf32>
    %119 = vector.shape_cast %118 : vector<1x140x100xf32> to vector<140x100xf32>
    %cst_86 = arith.constant dense<0.000000e+00> : vector<64x100xf32>
    %120 = tpu.matmul %114, %119, %cst_86 {dimension_numbers = #tpu.dot_dimension_numbers<[1], [0], [0], [1], [0, 0, 1, 1], [], []>} : vector<64x140xf32>, vector<140x100xf32>, vector<64x100xf32> -> vector<64x100xf32>
    %121 = arith.addf %109, %117 : vector<64x100xf32>
    %122 = arith.addf %112, %120 : vector<64x100xf32>
    %123 = vector.extract_strided_slice %104 {offsets = [0, 4, 0], sizes = [2, 32, 140], strides = [1, 1, 1]} : vector<2x40x140xf32> to vector<2x32x140xf32>
    %124 = vector.shape_cast %123 : vector<2x32x140xf32> to vector<64x140xf32>
    %c2_87 = arith.constant 2 : index
    %c0_88 = arith.constant 0 : index
    %c0_89 = arith.constant 0 : index
    %125 = vector.load %arg5[%c2_87, %c0_88, %c0_89] : memref<5x140x100xf32, #tpu.memory_space<vmem>>, vector<1x140x100xf32>
    %126 = vector.shape_cast %125 : vector<1x140x100xf32> to vector<140x100xf32>
    %cst_90 = arith.constant dense<0.000000e+00> : vector<64x100xf32>
    %127 = tpu.matmul %124, %126, %cst_90 {dimension_numbers = #tpu.dot_dimension_numbers<[1], [0], [0], [1], [0, 0, 1, 1], [], []>} : vector<64x140xf32>, vector<140x100xf32>, vector<64x100xf32> -> vector<64x100xf32>
    %c2_91 = arith.constant 2 : index
    %c0_92 = arith.constant 0 : index
    %c0_93 = arith.constant 0 : index
    %128 = vector.load %arg6[%c2_91, %c0_92, %c0_93] : memref<5x140x100xf32, #tpu.memory_space<vmem>>, vector<1x140x100xf32>
    %129 = vector.shape_cast %128 : vector<1x140x100xf32> to vector<140x100xf32>
    %cst_94 = arith.constant dense<0.000000e+00> : vector<64x100xf32>
    %130 = tpu.matmul %124, %129, %cst_94 {dimension_numbers = #tpu.dot_dimension_numbers<[1], [0], [0], [1], [0, 0, 1, 1], [], []>} : vector<64x140xf32>, vector<140x100xf32>, vector<64x100xf32> -> vector<64x100xf32>
    %131 = arith.addf %121, %127 : vector<64x100xf32>
    %132 = arith.addf %122, %130 : vector<64x100xf32>
    %133 = vector.extract_strided_slice %104 {offsets = [0, 6, 0], sizes = [2, 32, 140], strides = [1, 1, 1]} : vector<2x40x140xf32> to vector<2x32x140xf32>
    %134 = vector.shape_cast %133 : vector<2x32x140xf32> to vector<64x140xf32>
    %c3_95 = arith.constant 3 : index
    %c0_96 = arith.constant 0 : index
    %c0_97 = arith.constant 0 : index
    %135 = vector.load %arg5[%c3_95, %c0_96, %c0_97] : memref<5x140x100xf32, #tpu.memory_space<vmem>>, vector<1x140x100xf32>
    %136 = vector.shape_cast %135 : vector<1x140x100xf32> to vector<140x100xf32>
    %cst_98 = arith.constant dense<0.000000e+00> : vector<64x100xf32>
    %137 = tpu.matmul %134, %136, %cst_98 {dimension_numbers = #tpu.dot_dimension_numbers<[1], [0], [0], [1], [0, 0, 1, 1], [], []>} : vector<64x140xf32>, vector<140x100xf32>, vector<64x100xf32> -> vector<64x100xf32>
    %c3_99 = arith.constant 3 : index
    %c0_100 = arith.constant 0 : index
    %c0_101 = arith.constant 0 : index
    %138 = vector.load %arg6[%c3_99, %c0_100, %c0_101] : memref<5x140x100xf32, #tpu.memory_space<vmem>>, vector<1x140x100xf32>
    %139 = vector.shape_cast %138 : vector<1x140x100xf32> to vector<140x100xf32>
    %cst_102 = arith.constant dense<0.000000e+00> : vector<64x100xf32>
    %140 = tpu.matmul %134, %139, %cst_102 {dimension_numbers = #tpu.dot_dimension_numbers<[1], [0], [0], [1], [0, 0, 1, 1], [], []>} : vector<64x140xf32>, vector<140x100xf32>, vector<64x100xf32> -> vector<64x100xf32>
    %141 = arith.addf %131, %137 : vector<64x100xf32>
    %142 = arith.addf %132, %140 : vector<64x100xf32>
    %143 = vector.extract_strided_slice %104 {offsets = [0, 8, 0], sizes = [2, 32, 140], strides = [1, 1, 1]} : vector<2x40x140xf32> to vector<2x32x140xf32>
    %144 = vector.shape_cast %143 : vector<2x32x140xf32> to vector<64x140xf32>
    %c4_103 = arith.constant 4 : index
    %c0_104 = arith.constant 0 : index
    %c0_105 = arith.constant 0 : index
    %145 = vector.load %arg5[%c4_103, %c0_104, %c0_105] : memref<5x140x100xf32, #tpu.memory_space<vmem>>, vector<1x140x100xf32>
    %146 = vector.shape_cast %145 : vector<1x140x100xf32> to vector<140x100xf32>
    %cst_106 = arith.constant dense<0.000000e+00> : vector<64x100xf32>
    %147 = tpu.matmul %144, %146, %cst_106 {dimension_numbers = #tpu.dot_dimension_numbers<[1], [0], [0], [1], [0, 0, 1, 1], [], []>} : vector<64x140xf32>, vector<140x100xf32>, vector<64x100xf32> -> vector<64x100xf32>
    %c4_107 = arith.constant 4 : index
    %c0_108 = arith.constant 0 : index
    %c0_109 = arith.constant 0 : index
    %148 = vector.load %arg6[%c4_107, %c0_108, %c0_109] : memref<5x140x100xf32, #tpu.memory_space<vmem>>, vector<1x140x100xf32>
    %149 = vector.shape_cast %148 : vector<1x140x100xf32> to vector<140x100xf32>
    %cst_110 = arith.constant dense<0.000000e+00> : vector<64x100xf32>
    %150 = tpu.matmul %144, %149, %cst_110 {dimension_numbers = #tpu.dot_dimension_numbers<[1], [0], [0], [1], [0, 0, 1, 1], [], []>} : vector<64x140xf32>, vector<140x100xf32>, vector<64x100xf32> -> vector<64x100xf32>
    %151 = arith.addf %141, %147 : vector<64x100xf32>
    %152 = arith.addf %142, %150 : vector<64x100xf32>
    %c0_111 = arith.constant 0 : index
    %c0_112 = arith.constant 0 : index
    %153 = vector.load %arg7[%c0_111, %c0_112] : memref<1x100xf32, #tpu.memory_space<vmem>>, vector<1x100xf32>
    %154 = vector.broadcast %153 : vector<1x100xf32> to vector<64x100xf32>
    %155 = arith.addf %151, %154 : vector<64x100xf32>
    %cst_113 = arith.constant 0.000000e+00 : f32
    %156 = vector.broadcast %cst_113 : f32 to vector<64x100xf32>
    %157 = arith.maximumf %155, %156 : vector<64x100xf32>
    %c0_114 = arith.constant 0 : index
    %c0_115 = arith.constant 0 : index
    %158 = vector.load %arg7[%c0_114, %c0_115] : memref<1x100xf32, #tpu.memory_space<vmem>>, vector<1x100xf32>
    %159 = vector.broadcast %158 : vector<1x100xf32> to vector<64x100xf32>
    %160 = arith.addf %152, %159 : vector<64x100xf32>
    %cst_116 = arith.constant 0.000000e+00 : f32
    %161 = vector.broadcast %cst_116 : f32 to vector<64x100xf32>
    %162 = arith.maximumf %160, %161 : vector<64x100xf32>
    %163 = arith.maximumf %157, %162 : vector<64x100xf32>
    %164 = vector.extract_strided_slice %163 {offsets = [2, 0], sizes = [62, 100], strides = [1, 1]} : vector<64x100xf32> to vector<62x100xf32>
    %165 = vector.extract_strided_slice %163 {offsets = [0, 0], sizes = [2, 100], strides = [1, 1]} : vector<64x100xf32> to vector<2x100xf32>
    %166 = tpu.concatenate %164, %165 in 0 : vector<62x100xf32>, vector<2x100xf32> -> vector<64x100xf32>
    %167 = arith.maximumf %163, %166 : vector<64x100xf32>
    %168 = vector.shape_cast %167 : vector<64x100xf32> to vector<2x32x100xf32>
    %169 = vector.extract_strided_slice %168 {offsets = [0, 0, 0], sizes = [2, 16, 100], strides = [1, 1, 1]} : vector<2x32x100xf32> to vector<2x16x100xf32>
    %170 = vector.shape_cast %169 : vector<2x16x100xf32> to vector<32x100xf32>
    %c0_117 = arith.constant 0 : index
    %c0_118 = arith.constant 0 : index
    %c0_119 = arith.constant 0 : index
    %171 = vector.load %arg8[%c0_117, %c0_118, %c0_119] : memref<5x100x50xf32, #tpu.memory_space<vmem>>, vector<1x100x50xf32>
    %172 = vector.shape_cast %171 : vector<1x100x50xf32> to vector<100x50xf32>
    %cst_120 = arith.constant dense<0.000000e+00> : vector<32x50xf32>
    %173 = tpu.matmul %170, %172, %cst_120 {dimension_numbers = #tpu.dot_dimension_numbers<[1], [0], [0], [1], [0, 0, 1, 1], [], []>} : vector<32x100xf32>, vector<100x50xf32>, vector<32x50xf32> -> vector<32x50xf32>
    %174 = vector.extract_strided_slice %168 {offsets = [0, 4, 0], sizes = [2, 16, 100], strides = [1, 1, 1]} : vector<2x32x100xf32> to vector<2x16x100xf32>
    %175 = vector.shape_cast %174 : vector<2x16x100xf32> to vector<32x100xf32>
    %c1_121 = arith.constant 1 : index
    %c0_122 = arith.constant 0 : index
    %c0_123 = arith.constant 0 : index
    %176 = vector.load %arg8[%c1_121, %c0_122, %c0_123] : memref<5x100x50xf32, #tpu.memory_space<vmem>>, vector<1x100x50xf32>
    %177 = vector.shape_cast %176 : vector<1x100x50xf32> to vector<100x50xf32>
    %cst_124 = arith.constant dense<0.000000e+00> : vector<32x50xf32>
    %178 = tpu.matmul %175, %177, %cst_124 {dimension_numbers = #tpu.dot_dimension_numbers<[1], [0], [0], [1], [0, 0, 1, 1], [], []>} : vector<32x100xf32>, vector<100x50xf32>, vector<32x50xf32> -> vector<32x50xf32>
    %179 = arith.addf %173, %178 : vector<32x50xf32>
    %180 = vector.extract_strided_slice %168 {offsets = [0, 8, 0], sizes = [2, 16, 100], strides = [1, 1, 1]} : vector<2x32x100xf32> to vector<2x16x100xf32>
    %181 = vector.shape_cast %180 : vector<2x16x100xf32> to vector<32x100xf32>
    %c2_125 = arith.constant 2 : index
    %c0_126 = arith.constant 0 : index
    %c0_127 = arith.constant 0 : index
    %182 = vector.load %arg8[%c2_125, %c0_126, %c0_127] : memref<5x100x50xf32, #tpu.memory_space<vmem>>, vector<1x100x50xf32>
    %183 = vector.shape_cast %182 : vector<1x100x50xf32> to vector<100x50xf32>
    %cst_128 = arith.constant dense<0.000000e+00> : vector<32x50xf32>
    %184 = tpu.matmul %181, %183, %cst_128 {dimension_numbers = #tpu.dot_dimension_numbers<[1], [0], [0], [1], [0, 0, 1, 1], [], []>} : vector<32x100xf32>, vector<100x50xf32>, vector<32x50xf32> -> vector<32x50xf32>
    %185 = arith.addf %179, %184 : vector<32x50xf32>
    %186 = vector.extract_strided_slice %168 {offsets = [0, 12, 0], sizes = [2, 16, 100], strides = [1, 1, 1]} : vector<2x32x100xf32> to vector<2x16x100xf32>
    %187 = vector.shape_cast %186 : vector<2x16x100xf32> to vector<32x100xf32>
    %c3_129 = arith.constant 3 : index
    %c0_130 = arith.constant 0 : index
    %c0_131 = arith.constant 0 : index
    %188 = vector.load %arg8[%c3_129, %c0_130, %c0_131] : memref<5x100x50xf32, #tpu.memory_space<vmem>>, vector<1x100x50xf32>
    %189 = vector.shape_cast %188 : vector<1x100x50xf32> to vector<100x50xf32>
    %cst_132 = arith.constant dense<0.000000e+00> : vector<32x50xf32>
    %190 = tpu.matmul %187, %189, %cst_132 {dimension_numbers = #tpu.dot_dimension_numbers<[1], [0], [0], [1], [0, 0, 1, 1], [], []>} : vector<32x100xf32>, vector<100x50xf32>, vector<32x50xf32> -> vector<32x50xf32>
    %191 = arith.addf %185, %190 : vector<32x50xf32>
    %192 = vector.extract_strided_slice %168 {offsets = [0, 16, 0], sizes = [2, 16, 100], strides = [1, 1, 1]} : vector<2x32x100xf32> to vector<2x16x100xf32>
    %193 = vector.shape_cast %192 : vector<2x16x100xf32> to vector<32x100xf32>
    %c4_133 = arith.constant 4 : index
    %c0_134 = arith.constant 0 : index
    %c0_135 = arith.constant 0 : index
    %194 = vector.load %arg8[%c4_133, %c0_134, %c0_135] : memref<5x100x50xf32, #tpu.memory_space<vmem>>, vector<1x100x50xf32>
    %195 = vector.shape_cast %194 : vector<1x100x50xf32> to vector<100x50xf32>
    %cst_136 = arith.constant dense<0.000000e+00> : vector<32x50xf32>
    %196 = tpu.matmul %193, %195, %cst_136 {dimension_numbers = #tpu.dot_dimension_numbers<[1], [0], [0], [1], [0, 0, 1, 1], [], []>} : vector<32x100xf32>, vector<100x50xf32>, vector<32x50xf32> -> vector<32x50xf32>
    %197 = arith.addf %191, %196 : vector<32x50xf32>
    %c0_137 = arith.constant 0 : index
    %c0_138 = arith.constant 0 : index
    %198 = vector.load %arg9[%c0_137, %c0_138] : memref<1x50xf32, #tpu.memory_space<vmem>>, vector<1x50xf32>
    %199 = vector.broadcast %198 : vector<1x50xf32> to vector<32x50xf32>
    %200 = arith.addf %197, %199 : vector<32x50xf32>
    %cst_139 = arith.constant 0.000000e+00 : f32
    %201 = vector.broadcast %cst_139 : f32 to vector<32x50xf32>
    %202 = arith.maximumf %200, %201 : vector<32x50xf32>
    %c0_140 = arith.constant 0 : index
    %c0_141 = arith.constant 0 : index
    %203 = vector.load %arg10[%c0_140, %c0_141] : memref<50x20xf32, #tpu.memory_space<vmem>>, vector<50x20xf32>
    %cst_142 = arith.constant dense<0.000000e+00> : vector<32x20xf32>
    %204 = tpu.matmul %202, %203, %cst_142 {dimension_numbers = #tpu.dot_dimension_numbers<[1], [0], [0], [1], [0, 0, 1, 1], [], []>} : vector<32x50xf32>, vector<50x20xf32>, vector<32x20xf32> -> vector<32x20xf32>
    %c0_143 = arith.constant 0 : index
    %c0_144 = arith.constant 0 : index
    %205 = vector.load %arg11[%c0_143, %c0_144] : memref<1x20xf32, #tpu.memory_space<vmem>>, vector<1x20xf32>
    %206 = vector.broadcast %205 : vector<1x20xf32> to vector<32x20xf32>
    %207 = arith.addf %204, %206 : vector<32x20xf32>
    %c0_145 = arith.constant 0 : index
    %c0_146 = arith.constant 0 : index
    %208 = vector.load %arg12[%c0_145, %c0_146] : memref<32x20xf32, #tpu.memory_space<vmem>>, vector<32x20xf32>
    tpu.vector_store %arg12[%c0_145, %c0_146], %207 {strides = array<i32>} : memref<32x20xf32, #tpu.memory_space<vmem>>, vector<32x20xf32>,
    return
  }
  func.func @transform_0(%arg0: i32) -> (i32, i32, i32) {
    %c0_i32 = arith.constant 0 : i32
    %c0_i32_0 = arith.constant 0 : i32
    %c0_i32_1 = arith.constant 0 : i32
    return %arg0, %c0_i32, %c0_i32_0 : i32, i32, i32
  }
  func.func @transform_1(%arg0: i32) -> (i32, i32, i32) {
    %c0_i32 = arith.constant 0 : i32
    %c0_i32_0 = arith.constant 0 : i32
    %c0_i32_1 = arith.constant 0 : i32
    %c0_i32_2 = arith.constant 0 : i32
    return %c0_i32, %c0_i32_0, %c0_i32_1 : i32, i32, i32
  }
  func.func @transform_2(%arg0: i32) -> (i32, i32, i32) {
    %c0_i32 = arith.constant 0 : i32
    %c0_i32_0 = arith.constant 0 : i32
    %c0_i32_1 = arith.constant 0 : i32
    %c0_i32_2 = arith.constant 0 : i32
    return %c0_i32, %c0_i32_0, %c0_i32_1 : i32, i32, i32
  }
  func.func @transform_3(%arg0: i32) -> (i32, i32) {
    %c0_i32 = arith.constant 0 : i32
    %c0_i32_0 = arith.constant 0 : i32
    %c0_i32_1 = arith.constant 0 : i32
    return %c0_i32, %c0_i32_0 : i32, i32
  }
  func.func @transform_4(%arg0: i32) -> (i32, i32, i32) {
    %c0_i32 = arith.constant 0 : i32
    %c0_i32_0 = arith.constant 0 : i32
    %c0_i32_1 = arith.constant 0 : i32
    %c0_i32_2 = arith.constant 0 : i32
    return %c0_i32, %c0_i32_0, %c0_i32_1 : i32, i32, i32
  }
  func.func @transform_5(%arg0: i32) -> (i32, i32, i32) {
    %c0_i32 = arith.constant 0 : i32
    %c0_i32_0 = arith.constant 0 : i32
    %c0_i32_1 = arith.constant 0 : i32
    %c0_i32_2 = arith.constant 0 : i32
    return %c0_i32, %c0_i32_0, %c0_i32_1 : i32, i32, i32
  }
  func.func @transform_6(%arg0: i32) -> (i32, i32) {
    %c0_i32 = arith.constant 0 : i32
    %c0_i32_0 = arith.constant 0 : i32
    %c0_i32_1 = arith.constant 0 : i32
    return %c0_i32, %c0_i32_0 : i32, i32
  }
  func.func @transform_7(%arg0: i32) -> (i32, i32, i32) {
    %c0_i32 = arith.constant 0 : i32
    %c0_i32_0 = arith.constant 0 : i32
    %c0_i32_1 = arith.constant 0 : i32
    %c0_i32_2 = arith.constant 0 : i32
    return %c0_i32, %c0_i32_0, %c0_i32_1 : i32, i32, i32
  }
  func.func @transform_8(%arg0: i32) -> (i32, i32) {
    %c0_i32 = arith.constant 0 : i32
    %c0_i32_0 = arith.constant 0 : i32
    %c0_i32_1 = arith.constant 0 : i32
    return %c0_i32, %c0_i32_0 : i32, i32
  }
  func.func @transform_9(%arg0: i32) -> (i32, i32) {
    %c0_i32 = arith.constant 0 : i32
    %c0_i32_0 = arith.constant 0 : i32
    %c0_i32_1 = arith.constant 0 : i32
    return %c0_i32, %c0_i32_0 : i32, i32
  }
  func.func @transform_10(%arg0: i32) -> (i32, i32) {
    %c0_i32 = arith.constant 0 : i32
    %c0_i32_0 = arith.constant 0 : i32
    %c0_i32_1 = arith.constant 0 : i32
    return %c0_i32, %c0_i32_0 : i32, i32
  }
  func.func @transform_11(%arg0: i32) -> (i32, i32) {
    %c0_i32 = arith.constant 0 : i32
    %c0_i32_0 = arith.constant 0 : i32
    return %arg0, %c0_i32 : i32, i32
  }
}

</mosaic_0001>

<bundles_post_ra>
// kernel: tile.13
= control target key start
LH: loop header
LB: loop body
LE: loop exit
PB: predicated region body
PF: predicated region fallthrough
CT: control target
= control target key end

     0   :  { %s28_s0 = inlined_call_operand.vmem [shape: f32[10], index: 0, kind: input, shape index: {}]   ;;  %s29_s1 = inlined_call_operand.vmem [shape: f32[14,10], index: 1, kind: output, shape index: {}]  }
   0x1   :  { %v4_v0 = vld [vmem:[%s28_s0] ss:$0 sm:$0xff] }
   0x2   :  { %5 = vst [vmem:[%s29_s1] sm:$0xff] %v4_v0  ;;  %8 = vst [vmem:[%s29_s1 + $0x8] sm:$0xff] %v4_v0 }

// kernel: tile.14
= control target key start
LH: loop header
LB: loop body
LE: loop exit
PB: predicated region body
PF: predicated region fallthrough
CT: control target
= control target key end

     0   :  { %vm9_vm0 = vcmask 64512   ;;  %s130_s12 = smov 120   ;;  %s131_s13 = smov 100   ;;  %vm3_vm1 = vcmask 80896   ;;  %vm13_vm2 = vcmask 15360   ;;  %vm16_vm3 = vcmask 1048512   ;;  %s204_s0 = inlined_call_operand.vmem [shape: f32[14,10], index: 0, kind: input, shape index: {}]   ;;  %s205_s1 = inlined_call_operand.vmem [shape: f32[1,140], index: 1, kind: output, shape index: {}]  }
   0x1   :  { %v102_v0 = vld [vmem:[%s204_s0 + $0xc] sm:$0x1]   ;;  %v105_v3 = vld [vmem:[%s204_s0 + $0xa] sm:$0x1]   ;;  %v104_v4 = vld [vmem:[%s204_s0 + $0xb] sm:$0x1]  }
   0x2   :  { %v103_v1 = vld [vmem:[%s204_s0 + $0xc] sm:$0x1]   ;;  %26 = vrot.lane.b32.xlu1 %v105_v3, %s131_s13  ;;  %v106_v5 = vld [vmem:[%s204_s0 + $0x9] sm:$0x1]   ;;  %s132_s18 = smov 110   ;;  %s133_s19 = smov 90  }
   0x3   :  { %v10_v2 = vsel %vm9_vm0, %v103_v1, %v102_v0  ;;  %v107_v6 = vld [vmem:[%s204_s0 + $0x8] sm:$0x1]   ;;  %v108_v7 = vld [vmem:[%s204_s0 + $0x7] sm:$0x1]   ;;  %v2_v8 = vld [vmem:[%s204_s0] sm:$0x1]  }
   0x4   :  { %11 = vrot.lane.b32.xlu0 %v10_v2, %s130_s12  ;;  %4 = vst.msk [vmem:[#allocation0] sm:$0x1] %vm3_vm1, %v2_v8   ;;  %s134_s26 = smov 80   ;;  %s135_s27 = smov 70   ;;  %v109_v9 = vld [vmem:[%s204_s0 + $0x6] sm:$0x1]  }
   0x5   :  { %v110_v10 = vld [vmem:[%s204_s0 + $0x5] sm:$0x1]   ;;  %s136_s3 = smov 60   ;;  %s137_s4 = smov 50   ;;  %v111_v11 = vld [vmem:[%s204_s0 + $0x4] sm:$0x1]  }
   0x6   :  { %32 = vrot.lane.b32.xlu1 %v106_v5, %s133_s19  ;;  %v112_v12 = vld [vmem:[%s204_s0 + $0x3] sm:$0x1]   ;;  %s138_s9 = smov 40   ;;  %s139_s10 = smov 30   ;;  %v113_v13 = vld [vmem:[%s204_s0 + $0x2] sm:$0x1]  }
   0x7   :  { %v114_v14 = vld [vmem:[%s204_s0 + $0x1] sm:$0x1]   ;;  %s140_s15 = smov 20   ;;  %s141_s16 = smov 10   ;;  %v115_v15 = vld [vmem:[%s204_s0 + $0xd] sm:$0x1]  }
   0x8   :  { %20 = vrot.lane.b32.xlu0 %v104_v4, %s132_s18  ;;  %s142_s0 = smov 2   ;;  %vm22_vm4 = vcmask 982896   ;;  %vm28_vm5 = vcmask 900896   ;;  %vm34_vm6 = vcmask 818896   ;;  %vm40_vm7 = vcmask 736896  }
   0x9   :  { %vm46_vm8 = vcmask 654896   ;;  %vm52_vm9 = vcmask 572896   ;;  %vm58_vm10 = vcmask 490896   ;;  %vm64_vm11 = vcmask 408896  }
   0xa   :  { %44 = vrot.lane.b32.xlu1 %v108_v7, %s135_s27  ;;  %vm70_vm12 = vcmask 326896   ;;  %vm76_vm13 = vcmask 244896   ;;  %vm82_vm14 = vcmask 162896   ;;  %vm88_vm15 = vcmask 97296  }
   0xc   :  { %38 = vrot.lane.b32.xlu0 %v107_v6, %s134_s26 }
   0xe   :  { %56 = vrot.lane.b32.xlu1 %v110_v10, %s137_s4 }
  0x10   :  { %50 = vrot.lane.b32.xlu0 %v109_v9, %s136_s3 }
  0x12   :  { %68 = vrot.lane.b32.xlu1 %v112_v12, %s139_s10 }
  0x14   :  { %62 = vrot.lane.b32.xlu0 %v111_v11, %s138_s9 }
  0x16   :  { %80 = vrot.lane.b32.xlu1 %v114_v14, %s141_s16 }
  0x18   :  { %74 = vrot.lane.b32.xlu0 %v113_v13, %s140_s15 }
  0x1c   :  { %86 = vrot.lane.b32.xlu0 %v115_v15, %s142_s0 }
  0x74   :  { %v27_v17 = vpop.permute.xlu1 %26  }
  0x76   :  { %v12_v16 = vpop.permute.xlu0 %11  }
  0x77   :  { %15 = vst.msk [vmem:[#allocation0 + $0x8] sm:$0x1] %vm13_vm2, %v12_v16  }
  0x78   :  { %17 = vst.msk [vmem:[#allocation0] sm:$0x1] %vm16_vm3, %v12_v16   ;;  %v33_v19 = vpop.permute.xlu1 %32  }
  0x7a   :  { %v21_v18 = vpop.permute.xlu0 %20  }
  0x7b   :  { %23 = vst.msk [vmem:[#allocation0] sm:$0x1] %vm22_vm4, %v21_v18  }
  0x7c   :  { %29 = vst.msk [vmem:[#allocation0] sm:$0x1] %vm28_vm5, %v27_v17   ;;  %v45_v21 = vpop.permute.xlu1 %44  }
  0x7d   :  { %35 = vst.msk [vmem:[#allocation0] sm:$0x1] %vm34_vm6, %v33_v19  }
  0x7e   :  { %v39_v20 = vpop.permute.xlu0 %38  }
  0x7f   :  { %41 = vst.msk [vmem:[#allocation0] sm:$0x1] %vm40_vm7, %v39_v20  }
  0x80   :  { %47 = vst.msk [vmem:[#allocation0] sm:$0x1] %vm46_vm8, %v45_v21   ;;  %v57_v23 = vpop.permute.xlu1 %56  }
  0x82   :  { %v51_v22 = vpop.permute.xlu0 %50  }
  0x83   :  { %53 = vst.msk [vmem:[#allocation0] sm:$0x1] %vm52_vm9, %v51_v22  }
  0x84   :  { %59 = vst.msk [vmem:[#allocation0] sm:$0x1] %vm58_vm10, %v57_v23   ;;  %v69_v25 = vpop.permute.xlu1 %68  }
  0x86   :  { %v63_v24 = vpop.permute.xlu0 %62  }
  0x87   :  { %65 = vst.msk [vmem:[#allocation0] sm:$0x1] %vm64_vm11, %v63_v24  }
  0x88   :  { %71 = vst.msk [vmem:[#allocation0] sm:$0x1] %vm70_vm12, %v69_v25   ;;  %v81_v27 = vpop.permute.xlu1 %80  }
  0x8a   :  { %v75_v26 = vpop.permute.xlu0 %74  }
  0x8b   :  { %77 = vst.msk [vmem:[#allocation0] sm:$0x1] %vm76_vm13, %v75_v26  }
  0x8c   :  { %83 = vst.msk [vmem:[#allocation0] sm:$0x1] %vm82_vm14, %v81_v27  }
  0x8e   :  { %v87_v28 = vpop.permute.xlu0 %86  }
  0x8f   :  { %90 = vst.msk [vmem:[#allocation0 + $0x8] sm:$0x1] %vm88_vm15, %v87_v28  }
  0x93   :  { %v94_v29 = vld [vmem:[#allocation0] sm:$0x1] }
  0x94   :  { %96 = vst [vmem:[%s205_s1] sm:$0x1] %v94_v29 }
  0x96   :  { %v98_v30 = vld [vmem:[#allocation0 + $0x8] sm:$0x1] }
  0x97   :  { %116 = vst [vmem:[%s205_s1 + $0x1] sm:$0x1] %v98_v30 }

// kernel: tile.18
= control target key start
LH: loop header
LB: loop body
LE: loop exit
PB: predicated region body
PF: predicated region fallthrough
CT: control target
= control target key end

     0   :  { %s22_s0 = inlined_call_operand.vmem [shape: f32[20], index: 0, kind: input, shape index: {}]   ;;  %s23_s1 = inlined_call_operand.vmem [shape: f32[5,20], index: 1, kind: output, shape index: {}]  }
   0x1   :  { %v4_v0 = vld [vmem:[%s22_s0] ss:$0 sm:$0xff] }
   0x2   :  { %5 = vst [vmem:[%s23_s1] sm:$0xff] %v4_v0 }

// kernel: tile.19
= control target key start
LH: loop header
LB: loop body
LE: loop exit
PB: predicated region body
PF: predicated region fallthrough
CT: control target
= control target key end

     0   :  { %s43_s10 = smov 80   ;;  %s44_s11 = smov 40   ;;  %vm3_vm0 = vcmask 162816   ;;  %vm9_vm1 = vcmask 818816   ;;  %vm15_vm2 = vcmask 654816   ;;  %vm21_vm3 = vcmask 490816   ;;  %s75_s0 = inlined_call_operand.vmem [shape: f32[5,20], index: 0, kind: input, shape index: {}]   ;;  %s76_s1 = inlined_call_operand.vmem [shape: f32[1,100], index: 1, kind: output, shape index: {}]  }
   0x1   :  { %v35_v0 = vld [vmem:[%s75_s0 + $0x4] sm:$0x1]   ;;  %v37_v1 = vld [vmem:[%s75_s0 + $0x2] sm:$0x1]   ;;  %v36_v2 = vld [vmem:[%s75_s0 + $0x3] sm:$0x1]  }
   0x2   :  { %7 = vrot.lane.b32.xlu0 %v35_v0, %s43_s10  ;;  %19 = vrot.lane.b32.xlu1 %v37_v1, %s44_s11  ;;  %v38_v3 = vld [vmem:[%s75_s0 + $0x1] sm:$0x1]   ;;  %v2_v4 = vld [vmem:[%s75_s0] sm:$0x1]   ;;  %s45_s0 = smov 60   ;;  %s46_s18 = smov 20  }
   0x3   :  { %4 = vst.msk [vmem:[#allocation0] sm:$0x1] %vm3_vm0, %v2_v4   ;;  %vm27_vm4 = vcmask 326816  }
   0x6   :  { %13 = vrot.lane.b32.xlu0 %v36_v2, %s45_s0  ;;  %25 = vrot.lane.b32.xlu1 %v38_v3, %s46_s18 }
  0x74   :  { %v8_v5 = vpop.permute.xlu0 %7   ;;  %v20_v6 = vpop.permute.xlu1 %19  }
  0x75   :  { %10 = vst.msk [vmem:[#allocation0] sm:$0x1] %vm9_vm1, %v8_v5  }
  0x78   :  { %v14_v7 = vpop.permute.xlu0 %13   ;;  %v26_v8 = vpop.permute.xlu1 %25  }
  0x79   :  { %16 = vst.msk [vmem:[#allocation0] sm:$0x1] %vm15_vm2, %v14_v7  }
  0x7a   :  { %22 = vst.msk [vmem:[#allocation0] sm:$0x1] %vm21_vm3, %v20_v6  }
  0x7b   :  { %28 = vst.msk [vmem:[#allocation0] sm:$0x1] %vm27_vm4, %v26_v8  }
  0x82   :  { %v32_v9 = vld [vmem:[#allocation0] sm:$0x1] }
  0x83   :  { %34 = vst [vmem:[%s76_s1] sm:$0x1] %v32_v9 }

// kernel: squeeze.3
= control target key start
LH: loop header
LB: loop body
LE: loop exit
PB: predicated region body
PF: predicated region fallthrough
CT: control target
= control target key end

     0   :  { %vm7_vm0 = vcmask 80896   ;;  %s48_s0 = inlined_call_operand.vmem [shape: f32[2,1,20], index: 0, kind: input, shape index: {}]   ;;  %s49_s1 = inlined_call_operand.vmem [shape: f32[2,2,10], index: 1, kind: output, shape index: {}]  }
   0x1   :  { %v4_v0 = vld [vmem:[%s48_s0] sm:$0x3]  ;;  %s28_s0 = smov 118  }
   0x2   :  { %5 = vst [vmem:[#allocation1] sm:$0x3] %v4_v0 }
   0x9   :  { %v9_v1 = vld [vmem:[#allocation1] sm:$0x3]  }
   0xa   :  { %v6_v2 = vld [vmem:[#allocation1] sm:$0x3]   ;;  %10 = vrot.lane.b32.xlu0 %v9_v1, %s28_s0 }
   0xb   :  { %8 = vst.msk [vmem:[#allocation0] ss:$8 sm:$0x3] %vm7_vm0, %v6_v2  }
  0x7c   :  { %v11_v3 = vpop.permute.xlu0 %10  }
  0x7d   :  { %14 = vst.msk [vmem:[#allocation0 + $0x1] ss:$8 sm:$0x3] %vm7_vm0, %v11_v3  }
  0x84   :  { %v18_v4 = vld [vmem:[#allocation0] sm:$0x3]  ;;  %v22_v5 = vld [vmem:[#allocation0 + $0x8] sm:$0x3] }
  0x85   :  { %20 = vst [vmem:[%s49_s1] sm:$0x3] %v18_v4  ;;  %26 = vst [vmem:[%s49_s1 + $0x2] sm:$0x3] %v22_v5 }

// kernel: lenet_forward.1
= control target key start
LH: loop header
LB: loop body
LE: loop exit
PB: predicated region body
PF: predicated region fallthrough
CT: control target
= control target key end

     0   :  { %v7656_v3 = vmov 0.0   ;;  %vm137_vm0 = vcmask 1043456   ;;  %vm82_vm1 = vcmask 1046528   ;;  %vm116_vm2 = vcmask 293888   ;;  %s11002_s1 = inlined_call_operand.vmem [shape: f32[9,36,140], index: 1, kind: input, shape index: {}]   ;;  %s11003_s0 = inlined_call_operand.vmem [shape: f32[2,48,36], index: 0, kind: input, shape index: {}]   ;;  %s11004_s2 = inlined_call_operand.vmem [shape: f32[9,36,140], index: 2, kind: input, shape index: {}]   ;;  %s11005_s4 = inlined_call_operand.vmem [shape: f32[5,140,100], index: 4, kind: input, shape index: {}]   ;;  %s11006_s5 = inlined_call_operand.vmem [shape: f32[5,140,100], index: 5, kind: input, shape index: {}]   ;;  %s11007_s3 = inlined_call_operand.vmem [shape: f32[1,140], index: 3, kind: input, shape index: {}]   ;;  %s11008_s7 = inlined_call_operand.vmem [shape: f32[5,100,50], index: 7, kind: input, shape index: {}]   ;;  %s11009_s6 = inlined_call_operand.vmem [shape: f32[1,100], index: 6, kind: input, shape index: {}]   ;;  %s11010_s9 = inlined_call_operand.vmem [shape: f32[50,20], index: 9, kind: input, shape index: {}]   ;;  %s11011_s8 = inlined_call_operand.vmem [shape: f32[1,50], index: 8, kind: input, shape index: {}]   ;;  %s11012_s10 = inlined_call_operand.vmem [shape: f32[1,20], index: 10, kind: input, shape index: {}]   ;;  %s11013_s11 = inlined_call_operand.vmem [shape: f32[32,20], index: 11, kind: output, shape index: {}]  }
   0x1   :  { %v5773_v0 = vld [vmem:[%s11002_s1 + $0x58] sm:$0xff]  ;;  %v5775_v1 = vld [vmem:[%s11002_s1 + $0x68] sm:$0xff]  ;;  %208 = vmatprep.mubr.f32.mxu1 %v7656_v3  ;;  %501 = vmatprep.mubr.f32.mxu0 %v7656_v3  ;;  %v5772_v6 = vld [vmem:[%s11002_s1 + $0x50] sm:$0xff]  ;;  %vm693_vm3 = vcmask 1045504   ;;  %vm1060_vm4 = vcmask 1044480   ;;  %vm1793_vm5 = vcmask 1042432  }
   0x2   :  { %v51_v2 = vld [vmem:[%s11002_s1 + $0x8] sm:$0xff]  ;;  %v6743_v4 = vpack.c.bf16 %v5775_v1, %v5773_v0  ;;  %v53_v5 = vld [vmem:[%s11002_s1 + $0x18] sm:$0xff]  ;;  %v5774_v7 = vld [vmem:[%s11002_s1 + $0x60] sm:$0xff]  ;;  %vm2160_vm6 = vcmask 1041408   ;;  %vm2527_vm7 = vcmask 1040384   ;;  %vm7658_vm8 = vmmov 1  }
   0x3   :  { %v7739_v8 = vpack.c.bf16 %v53_v5, %v51_v2  ;;  %v6745_v9 = vpack.c.bf16 %v5774_v7, %v5772_v6  ;;  %v50_v10 = vld [vmem:[%s11002_s1] sm:$0xff]  ;;  %v52_v11 = vld [vmem:[%s11002_s1 + $0x10] sm:$0xff]  ;;  %v5777_v12 = vld [vmem:[%s11002_s1 + $0x78] sm:$0xff]  ;;  %vm3555_vm10 = vcmask 97280   ;;  %vm5104_vm11 = vcmask 818176  }
   0x4   :  { %6744 = vmatprep.subr.bf16.mxu1 %v6743_v4  ;;  %v7750_v13 = vpack.c.bf16 %v52_v11, %v50_v10  ;;  %v5779_v14 = vld [vmem:[%s11002_s1 + $0x88] sm:$0xff]  ;;  %v57_v16 = vld [vmem:[%s11002_s1 + $0x38] sm:$0xff]  ;;  %v5776_v19 = vld [vmem:[%s11002_s1 + $0x70] sm:$0xff]  ;;  %vm5662_vm12 = vcmask 408576   ;;  %vm5763_vm13 = vcmask 162816  }
   0x5   :  { %v55_v15 = vld [vmem:[%s11002_s1 + $0x28] sm:$0xff]  ;;  %6760 = vmatprep.subr.bf16.mxu0 %v7739_v8  ;;  %6746 = vmatpush1.bf16.msra.mxu1 %v6745_v9  ;;  %v6747_v17 = vpack.c.bf16 %v5779_v14, %v5777_v12  ;;  %v5778_v20 = vld [vmem:[%s11002_s1 + $0x80] sm:$0xff]  ;;  %v56_v23 = vld [vmem:[%s11002_s1 + $0x30] sm:$0xff] }
   0x6   :  { %v7762_v18 = vpack.c.bf16 %v57_v16, %v55_v15  ;;  %v54_v21 = vld [vmem:[%s11002_s1 + $0x20] sm:$0xff]  ;;  %6762 = vmatpush1.bf16.msra.mxu0 %v7750_v13  ;;  %v6749_v22 = vpack.c.bf16 %v5778_v20, %v5776_v19  ;;  %v5781_v25 = vld [vmem:[%s11002_s1 + $0x98] sm:$0xf]  ;;  %v7786_v26 = vld [vmem:[%s11002_s1 + $0x48] sm:$0xf] }
   0x7   :  { %6748 = vmatprep.subr.bf16.mxu1 %v6747_v17  ;;  %v7778_v24 = vpack.c.bf16 %v56_v23, %v54_v21  ;;  %v7791_v27 = vld [vmem:[%s11003_s0] sm:$0xff]  ;;  %v7796_v28 = vld [vmem:[%s11003_s0 + $0x8] sm:$0xff]  ;;  %v5795_v30 = vld [vmem:[%s11004_s2 + $0x58] sm:$0xff] }
   0x8   :  { %6764 = vmatprep.subr.bf16.mxu0 %v7762_v18  ;;  %v83_v29 = vrot.slane %v7791_v27, 1  ;;  %v5797_v31 = vld [vmem:[%s11004_s2 + $0x68] sm:$0xff]  ;;  %v84_v32 = vrot.slane %v7796_v28, 1  ;;  %v5794_v33 = vld [vmem:[%s11004_s2 + $0x50] sm:$0xff]  ;;  %v5796_v34 = vld [vmem:[%s11004_s2 + $0x60] sm:$0xff] }
   0x9   :  { %6750 = vmatpush1.bf16.msra.mxu1 %v6749_v22  ;;  %v7815_v35 = vld [vmem:[%s11003_s0 + $0x10] sm:$0xff]  ;;  %v5799_v37 = vld [vmem:[%s11004_s2 + $0x78] sm:$0xff]  ;;  %v7830_v38 = vld [vmem:[%s11002_s1 + $0x40] sm:$0xf]  ;;  %v6751_v40 = vpack.c.bf16 %v5797_v31, %v5795_v30  ;;  %v6753_v43 = vpack.c.bf16 %v5796_v34, %v5794_v33  ;;  %v694_v30 = vrot.slane %v7791_v27, 2  ;;  %v695_v31 = vrot.slane %v7796_v28, 2 }
   0xa   :  { %6766 = vmatpush1.bf16.msra.mxu0 %v7778_v24  ;;  %5782 = vmatprep.subr.msk.mxu1 %vm137_vm0, %v5781_v25  ;;  %v5780_v36 = vld [vmem:[%s11002_s1 + $0x90] sm:$0xf]  ;;  %v7833_v39 = vsel %vm82_vm1, %v83_v29, %v84_v32  ;;  %v86_v41 = vrot.slane %v7815_v35, 1  ;;  %v5801_v42 = vld [vmem:[%s11004_s2 + $0x88] sm:$0xff]  ;;  %v7842_v44 = vld [vmem:[%s11003_s0 + $0x18] sm:$0xff] }
   0xb   :  { %5816 = vmatprep.subr.msk.mxu0 %vm137_vm0, %v7786_v26  ;;  %v5841_v45 = vld [vmem:[%s11002_s1 + $0xa8] sm:$0xff]  ;;  %v5843_v46 = vld [vmem:[%s11002_s1 + $0xb8] sm:$0xff]  ;;  %v6755_v47 = vpack.c.bf16 %v5801_v42, %v5799_v37  ;;  %v5798_v48 = vld [vmem:[%s11004_s2 + $0x70] sm:$0xff]  ;;  %v88_v54 = vrot.slane %v7842_v44, 1  ;;  %v8021_v42 = vsel %vm693_vm3, %v694_v30, %v695_v31 }
   0xc   :  { %v5800_v49 = vld [vmem:[%s11004_s2 + $0x80] sm:$0xff]  ;;  %v6775_v50 = vpack.c.bf16 %v5843_v46, %v5841_v45  ;;  %v5842_v52 = vld [vmem:[%s11002_s1 + $0xb0] sm:$0xff]  ;;  %v7870_v53 = vsel %vm82_vm1, %v84_v32, %v86_v41  ;;  %v5845_v55 = vld [vmem:[%s11002_s1 + $0xc8] sm:$0xff] }
   0xd   :  { %5783 = vmatpush1.msk.msra.mxu1 %vm137_vm0, %v5780_v36  ;;  %v5840_v51 = vld [vmem:[%s11002_s1 + $0xa0] sm:$0xff]  ;;  %v5847_v56 = vld [vmem:[%s11002_s1 + $0xd8] sm:$0xff]  ;;  %v6757_v58 = vpack.c.bf16 %v5800_v49, %v5798_v48  ;;  %v5846_v62 = vld [vmem:[%s11002_s1 + $0xd0] sm:$0xff]  ;;  %v7901_v0 = vsel %vm82_vm1, %v86_v41, %v88_v54 }
   0xe   :  { %5817 = vmatpush1.msk.msra.mxu0 %vm137_vm0, %v7830_v38  ;;  %5784 = vmatmul.mubr.msk.f32.vlgmr.msra.gmra.mrb[0].mxu1 %vm116_vm2, %v7833_v39  ;;  %v7883_v57 = vld [vmem:[%s11003_s0 + $0x20] sm:$0xff]  ;;  %v6777_v59 = vpack.c.bf16 %v5842_v52, %v5840_v51  ;;  %v6779_v60 = vpack.c.bf16 %v5847_v56, %v5845_v55  ;;  %v5803_v63 = vld [vmem:[%s11004_s2 + $0x98] sm:$0xf]  ;;  %v7908_v2 = vld [vmem:[%s11003_s0 + $0x28] sm:$0xff] }
   0xf   :  { %6752 = vmatprep.subr.bf16.mxu1 %v6751_v40  ;;  %5818 = vmatmul.mubr.msk.f32.vlgmr.msra.gmra.mrb[0].mxu0 %vm116_vm2, %v7791_v27  ;;  %v5844_v61 = vld [vmem:[%s11002_s1 + $0xc0] sm:$0xff]  ;;  %v90_v1 = vrot.slane %v7883_v57, 1  ;;  %v5802_v5 = vld [vmem:[%s11004_s2 + $0x90] sm:$0xf]  ;;  %v92_v7 = vrot.slane %v7908_v2, 1  ;;  %v5885_v10 = vld [vmem:[%s11002_s1 + $0xf8] sm:$0xff] }
  0x10   :  { %6754 = vmatpush1.bf16.msra.mxu1 %v6753_v43  ;;  %214 = vmatprep.mubr.f32.mxu1 %v7656_v3  ;;  %v6781_v4 = vpack.c.bf16 %v5846_v62, %v5844_v61  ;;  %v5849_v9 = vld [vmem:[%s11002_s1 + $0xe8] sm:$0xf]  ;;  %v7936_v12 = vld [vmem:[%s11003_s0 + $0x30] sm:$0xff]  ;;  %v7941_v14 = vld [vmem:[%s11003_s0 + $0x38] sm:$0xff]  ;;  %v697_v43 = vrot.slane %v7815_v35, 2  ;;  %v701_v62 = vrot.slane %v7883_v57, 2 }
  0x11   :  { %507 = vmatprep.mubr.f32.mxu0 %v7656_v3  ;;  %6756 = vmatprep.subr.bf16.mxu1 %v6755_v47  ;;  %v7920_v6 = vsel %vm82_vm1, %v88_v54, %v90_v1  ;;  %v5887_v11 = vld [vmem:[%s11002_s1 + $0x108] sm:$0xff]  ;;  %v5848_v15 = vld [vmem:[%s11002_s1 + $0xe0] sm:$0xf]  ;;  %v7955_v17 = vsel %vm82_vm1, %v90_v1, %v92_v7  ;;  %v95_v19 = vrot.slane %v7941_v14, 1  ;;  %v7996_v32 = vld [vmem:[%s11003_s0 + $0x50] sm:$0xff]  ;;  %v699_v54 = vrot.slane %v7842_v44, 2 }
  0x12   :  { %5785 = vmatmul.mubr.msk.f32.gmra.mrb[2].mxu1 %vm116_vm2, %v7870_v53  ;;  %6776 = vmatprep.subr.bf16.mxu0 %v6775_v50  ;;  %v6791_v16 = vpack.c.bf16 %v5887_v11, %v5885_v10  ;;  %v7963_v20 = vld [vmem:[%s11003_s0 + $0x40] sm:$0xff]  ;;  %v7979_v23 = vld [vmem:[%s11003_s0 + $0x48] sm:$0xff]  ;;  %v5884_v33 = vld [vmem:[%s11002_s1 + $0xf0] sm:$0xff]  ;;  %v101_v41 = vrot.slane %v7996_v32, 1  ;;  %v8046_v52 = vsel %vm693_vm3, %v695_v31, %v697_v43  ;;  %v706_v10 = vrot.slane %v7941_v14, 2 }
  0x13   :  { %5819 = vmatmul.mubr.msk.f32.gmra.mrb[2].mxu0 %vm116_vm2, %v7796_v28  ;;  %220 = vmatprep.mubr.f32.mxu1 %v7656_v3  ;;  %v97_v22 = vrot.slane %v7963_v20, 1  ;;  %v99_v29 = vrot.slane %v7979_v23, 1  ;;  %v5886_v34 = vld [vmem:[%s11002_s1 + $0x100] sm:$0xff]  ;;  %v5889_v36 = vld [vmem:[%s11002_s1 + $0x118] sm:$0xff]  ;;  %v5891_v37 = vld [vmem:[%s11002_s1 + $0x128] sm:$0xff]  ;;  %v8068_v61 = vsel %vm693_vm3, %v697_v43, %v699_v54 }
  0x14   :  { %513 = vmatprep.mubr.f32.mxu0 %v7656_v3  ;;  %6758 = vmatpush1.bf16.msra.mxu1 %v6757_v58  ;;  %v8027_v45 = vld [vmem:[%s11003_s0 + $0x58] sm:$0xff]  ;;  %v6793_v46 = vpack.c.bf16 %v5886_v34, %v5884_v33  ;;  %v6795_v47 = vpack.c.bf16 %v5891_v37, %v5889_v36  ;;  %v5888_v48 = vld [vmem:[%s11002_s1 + $0x110] sm:$0xff]  ;;  %v5890_v49 = vld [vmem:[%s11002_s1 + $0x120] sm:$0xff] }
  0x15   :  { %6778 = vmatpush1.bf16.msra.mxu0 %v6777_v59  ;;  %5804 = vmatprep.subr.msk.mxu1 %vm137_vm0, %v5803_v63  ;;  %v7987_v25 = vsel %vm82_vm1, %v95_v19, %v97_v22  ;;  %v8016_v40 = vsel %vm82_vm1, %v97_v22, %v99_v29  ;;  %v8041_v50 = vsel %vm82_vm1, %v99_v29, %v101_v41  ;;  %v103_v51 = vrot.slane %v8027_v45, 1  ;;  %v5893_v56 = vld [vmem:[%s11002_s1 + $0x138] sm:$0xf]  ;;  %v5929_v58 = vld [vmem:[%s11002_s1 + $0x148] sm:$0xff]  ;;  %v5892_v63 = vld [vmem:[%s11002_s1 + $0x130] sm:$0xf] }
  0x16   :  { %5786 = vmatmul.mubr.msk.f32.gmra.mrb[4].mxu1 %vm116_vm2, %v7901_v0  ;;  %6780 = vmatprep.subr.bf16.mxu0 %v6779_v60  ;;  %v6797_v55 = vpack.c.bf16 %v5890_v49, %v5888_v48  ;;  %v5931_v59 = vld [vmem:[%s11002_s1 + $0x158] sm:$0xff]  ;;  %v5933_v22 = vld [vmem:[%s11002_s1 + $0x168] sm:$0xff]  ;;  %v5932_v34 = vld [vmem:[%s11002_s1 + $0x160] sm:$0xff]  ;;  %v1068_v49 = vrot.slane %v7883_v57, 3 }
  0x17   :  { %5820 = vmatmul.mubr.msk.f32.gmra.mrb[4].mxu0 %vm116_vm2, %v7815_v35  ;;  %226 = vmatprep.mubr.f32.mxu1 %v7656_v3  ;;  %v8064_v60 = vsel %vm82_vm1, %v101_v41, %v103_v51  ;;  %v6807_v1 = vpack.c.bf16 %v5931_v59, %v5929_v58  ;;  %v5935_v29 = vld [vmem:[%s11002_s1 + $0x178] sm:$0xff]  ;;  %v5934_v36 = vld [vmem:[%s11002_s1 + $0x170] sm:$0xff]  ;;  %v1066_v41 = vrot.slane %v7842_v44, 3  ;;  %vm9439_vm9 = vmpackc.low %vm137_vm0, %vm7658_vm8 }
  0x18   :  { %519 = vmatprep.mubr.f32.mxu0 %v7656_v3  ;;  %5805 = vmatpush1.msk.msra.mxu1 %vm137_vm0, %v5802_v5  ;;  %v703_v5 = vrot.slane %v7908_v2, 2  ;;  %v6811_v33 = vpack.c.bf16 %v5935_v29, %v5933_v22  ;;  %v6813_v43 = vpack.c.bf16 %v5934_v36, %v5932_v34  ;;  %v62_v51 = vld [vmem:[%s11004_s2 + $0x10] sm:$0xff]  ;;  %v67_v58 = vld [vmem:[%s11004_s2 + $0x38] sm:$0xff]  ;;  %v5867_v22 = vld [vmem:[%s11004_s2 + $0xc8] sm:$0xff] }
  0x19   :  { %6782 = vmatpush1.bf16.msra.mxu0 %v6781_v4  ;;  %7299 = vmatprep.subr.bf16.mxu1 %v7739_v8  ;;  %v94_v8 = vrot.slane %v7936_v12, 1  ;;  %v8082_v4 = vsel %vm693_vm3, %v699_v54, %v701_v62  ;;  %v5936_v54 = vld [vmem:[%s11002_s1 + $0x180] sm:$0xf]  ;;  %v5869_v29 = vld [vmem:[%s11004_s2 + $0xd8] sm:$0xff] }
  0x1a   :  { %5787 = vmatmul.mubr.msk.f32.gmra.mrb[6].mxu1 %vm116_vm2, %v7920_v6  ;;  %5850 = vmatprep.subr.msk.mxu0 %vm137_vm0, %v5849_v9  ;;  %v8094_v7 = vsel %vm693_vm3, %v701_v62, %v703_v5  ;;  %v705_v9 = vrot.slane %v7936_v12, 2  ;;  %v8241_v62 = vsel %vm1060_vm4, %v1066_v41, %v1068_v49  ;;  %v6787_v34 = vpack.c.bf16 %v5869_v29, %v5867_v22  ;;  %v5866_v36 = vld [vmem:[%s11004_s2 + $0xc0] sm:$0xff]  ;;  %v6017_v22 = vld [vmem:[%s11002_s1 + $0x1e8] sm:$0xff]  ;;  %v6019_v29 = vld [vmem:[%s11002_s1 + $0x1f8] sm:$0xff] }
  0x1b   :  { %5821 = vmatmul.mubr.msk.f32.gmra.mrb[6].mxu0 %vm116_vm2, %v7842_v44  ;;  %232 = vmatprep.mubr.f32.mxu1 %v7656_v3  ;;  %v7972_v21 = vsel %vm82_vm1, %v94_v8, %v95_v19  ;;  %v1062_v8 = vrot.slane %v7796_v28, 3  ;;  %v5928_v19 = vld [vmem:[%s11002_s1 + $0x140] sm:$0xff] }
  0x1c   :  { %525 = vmatprep.mubr.f32.mxu0 %v7656_v3 }
  0x1d   :  { %5851 = vmatpush1.msk.msra.mxu0 %vm137_vm0, %v5848_v15 }
  0x1e   :  { %5788 = vmatmul.mubr.msk.f32.gmra.mrb[8].mxu1 %vm116_vm2, %v7955_v17  ;;  %6792 = vmatprep.subr.bf16.mxu0 %v6791_v16  ;;  %v710_v16 = vrot.slane %v7979_v23, 2 }
  0x1f   :  { %5822 = vmatmul.mubr.msk.f32.gmra.mrb[8].mxu0 %vm116_vm2, %v7883_v57  ;;  %238 = vmatprep.mubr.f32.mxu1 %v7656_v3 }
  0x20   :  { %531 = vmatprep.mubr.f32.mxu0 %v7656_v3 }
  0x22   :  { %5789 = vmatmul.mubr.msk.f32.gmra.mrb[10].mxu1 %vm116_vm2, %v7972_v21 }
  0x23   :  { %5823 = vmatmul.mubr.msk.f32.gmra.mrb[10].mxu0 %vm116_vm2, %v7936_v12  ;;  %244 = vmatprep.mubr.f32.mxu1 %v7656_v3 }
  0x24   :  { %537 = vmatprep.mubr.f32.mxu0 %v7656_v3 }
  0x26   :  { %5790 = vmatmul.mubr.msk.f32.gmra.mrb[12].mxu1 %vm116_vm2, %v7987_v25 }
  0x27   :  { %5824 = vmatmul.mubr.msk.f32.gmra.mrb[12].mxu0 %vm116_vm2, %v7941_v14  ;;  %250 = vmatprep.mubr.f32.mxu1 %v7656_v3 }
  0x28   :  { %817 = vmatprep.mubr.f32.mxu0 %v7656_v3 }
  0x2a   :  { %5791 = vmatmul.mubr.msk.f32.gmra.mrb[14].mxu1 %vm116_vm2, %v8016_v40 }
  0x2b   :  { %5852 = vmatmul.mubr.msk.f32.vlgmr.msra.gmra.mrb[0].mxu0 %vm116_vm2, %v8021_v42  ;;  %256 = vmatprep.mubr.f32.mxu1 %v7656_v3 }
  0x2c   :  { %823 = vmatprep.mubr.f32.mxu0 %v7656_v3  ;;  %6794 = vmatpush1.bf16.msra.mxu0 %v6793_v46  ;;  %v5973_v46 = vld [vmem:[%s11002_s1 + $0x198] sm:$0xff] }
  0x2d   :  { %6796 = vmatprep.subr.bf16.mxu0 %v6795_v47  ;;  %v5975_v47 = vld [vmem:[%s11002_s1 + $0x1a8] sm:$0xff] }
  0x2e   :  { %5792 = vmatmul.mubr.msk.f32.gmra.mrb[16].mxu1 %vm116_vm2, %v8041_v50 }
  0x2f   :  { %5853 = vmatmul.mubr.msk.f32.gmra.mrb[2].mxu0 %vm116_vm2, %v8046_v52  ;;  %262 = vmatprep.mubr.f32.mxu1 %v7656_v3 }
  0x30   :  { %829 = vmatprep.mubr.f32.mxu0 %v7656_v3  ;;  %6798 = vmatpush1.bf16.msra.mxu0 %v6797_v55  ;;  %v6823_v55 = vpack.c.bf16 %v5975_v47, %v5973_v46  ;;  %v5871_v47 = vld [vmem:[%s11004_s2 + $0xe8] sm:$0xf] }
  0x31   :  { %5894 = vmatprep.subr.msk.mxu0 %vm137_vm0, %v5893_v56  ;;  %v65_v56 = vld [vmem:[%s11004_s2 + $0x28] sm:$0xff] }
  0x32   :  { %5793 = vmatmul.mubr.msk.f32.gmra.mrb[18].mxu1 %vm116_vm2, %v8064_v60  ;;  %v6771_v5 = vpack.c.bf16 %v67_v58, %v65_v56 }
  0x33   :  { %5854 = vmatmul.mubr.msk.f32.gmra.mrb[4].mxu0 %vm116_vm2, %v8068_v61  ;;  %350 = vmatprep.mubr.f32.mxu1 %v7656_v3 }
  0x34   :  { %835 = vmatprep.mubr.f32.mxu0 %v7656_v3  ;;  %5895 = vmatpush1.msk.msra.mxu0 %vm137_vm0, %v5892_v63  ;;  %v64_v63 = vld [vmem:[%s11004_s2 + $0x20] sm:$0xff] }
  0x35   :  { %6808 = vmatprep.subr.bf16.mxu0 %v6807_v1  ;;  %v66_v1 = vld [vmem:[%s11004_s2 + $0x30] sm:$0xff] }
  0x36   :  { %5806 = vmatmul.mubr.msk.f32.vlgmr.msra.gmra.mrb[20].mxu1 %vm116_vm2, %v7833_v39  ;;  %v63_v39 = vld [vmem:[%s11004_s2 + $0x18] sm:$0xff] }
  0x37   :  { %5855 = vmatmul.mubr.msk.f32.gmra.mrb[6].mxu0 %vm116_vm2, %v8082_v4  ;;  %7302 = vmatpush1.bf16.msra.mxu1 %v7750_v13  ;;  %v61_v13 = vld [vmem:[%s11004_s2 + $0x8] sm:$0xff] }
  0x38   :  { %356 = vmatprep.mubr.f32.mxu1 %v7656_v3  ;;  %841 = vmatprep.mubr.f32.mxu0 %v7656_v3  ;;  %v6767_v11 = vpack.c.bf16 %v63_v39, %v61_v13  ;;  %v1072_v13 = vrot.slane %v7936_v12, 3  ;;  %v1073_v39 = vrot.slane %v7941_v14, 3 }
  0x39   :  { %7300 = vmatprep.subr.bf16.mxu1 %v7762_v18  ;;  %v8112_v18 = vsel %vm693_vm3, %v705_v9, %v706_v10  ;;  %v6773_v9 = vpack.c.bf16 %v66_v1, %v64_v63  ;;  %v5972_v63 = vld [vmem:[%s11002_s1 + $0x190] sm:$0xff]  ;;  %v5974_v1 = vld [vmem:[%s11002_s1 + $0x1a0] sm:$0xff] }
  0x3a   :  { %5807 = vmatmul.mubr.msk.f32.gmra.mrb[22].mxu1 %vm116_vm2, %v7870_v53  ;;  %v708_v53 = vrot.slane %v7963_v20, 2 }
  0x3b   :  { %5856 = vmatmul.mubr.msk.f32.gmra.mrb[8].mxu0 %vm116_vm2, %v8094_v7  ;;  %362 = vmatprep.mubr.f32.mxu1 %v7656_v3 }
  0x3c   :  { %847 = vmatprep.mubr.f32.mxu0 %v7656_v3  ;;  %7303 = vmatpush1.bf16.msra.mxu1 %v7778_v24  ;;  %v8125_v15 = vsel %vm693_vm3, %v706_v10, %v708_v53  ;;  %v8137_v24 = vsel %vm693_vm3, %v708_v53, %v710_v16  ;;  %v69_v53 = vld [vmem:[%s11004_s2 + $0x48] sm:$0xf] }
  0x3d   :  { %7301 = vmatprep.subr.msk.mxu1 %vm137_vm0, %v7786_v26  ;;  %v712_v26 = vrot.slane %v7996_v32, 2 }
  0x3e   :  { %5808 = vmatmul.mubr.msk.f32.gmra.mrb[24].mxu1 %vm116_vm2, %v7901_v0  ;;  %v714_v0 = vrot.slane %v8027_v45, 2 }
  0x3f   :  { %5857 = vmatmul.mubr.msk.f32.gmra.mrb[10].mxu0 %vm116_vm2, %v8112_v18  ;;  %368 = vmatprep.mubr.f32.mxu1 %v7656_v3 }
  0x40   :  { %853 = vmatprep.mubr.f32.mxu0 %v7656_v3  ;;  %7304 = vmatpush1.msk.msra.mxu1 %vm137_vm0, %v7830_v38  ;;  %v8147_v38 = vsel %vm693_vm3, %v710_v16, %v712_v26  ;;  %v5865_v16 = vld [vmem:[%s11004_s2 + $0xb8] sm:$0xff] }
  0x41   :  { %6768 = vmatprep.subr.bf16.mxu1 %v6767_v11  ;;  %v5863_v11 = vld [vmem:[%s11004_s2 + $0xa8] sm:$0xff] }
  0x42   :  { %5809 = vmatmul.mubr.msk.f32.gmra.mrb[26].mxu1 %vm116_vm2, %v7920_v6  ;;  %v8157_v6 = vsel %vm693_vm3, %v712_v26, %v714_v0  ;;  %v8278_v26 = vsel %vm1060_vm4, %v1072_v13, %v1073_v39  ;;  %v68_v0 = vld [vmem:[%s11004_s2 + $0x40] sm:$0xf] }
  0x43   :  { %5858 = vmatmul.mubr.msk.f32.gmra.mrb[12].mxu0 %vm116_vm2, %v8125_v15  ;;  %374 = vmatprep.mubr.f32.mxu1 %v7656_v3 }
  0x44   :  { %859 = vmatprep.mubr.f32.mxu0 %v7656_v3 }
  0x46   :  { %5810 = vmatmul.mubr.msk.f32.gmra.mrb[28].mxu1 %vm116_vm2, %v7955_v17  ;;  %v1061_v17 = vrot.slane %v7791_v27, 3 }
  0x47   :  { %5859 = vmatmul.mubr.msk.f32.gmra.mrb[14].mxu0 %vm116_vm2, %v8137_v24  ;;  %380 = vmatprep.mubr.f32.mxu1 %v7656_v3 }
  0x48   :  { %865 = vmatprep.mubr.f32.mxu0 %v7656_v3  ;;  %v8180_v30 = vsel %vm1060_vm4, %v1061_v17, %v1062_v8  ;;  %v1075_v17 = vrot.slane %v7963_v20, 3 }
  0x4a   :  { %5811 = vmatmul.mubr.msk.f32.gmra.mrb[30].mxu1 %vm116_vm2, %v7972_v21  ;;  %v5930_v21 = vld [vmem:[%s11002_s1 + $0x150] sm:$0xff] }
  0x4b   :  { %5860 = vmatmul.mubr.msk.f32.gmra.mrb[16].mxu0 %vm116_vm2, %v8147_v38  ;;  %386 = vmatprep.mubr.f32.mxu1 %v7656_v3  ;;  %v6809_v31 = vpack.c.bf16 %v5930_v21, %v5928_v19  ;;  %v5864_v19 = vld [vmem:[%s11004_s2 + $0xb0] sm:$0xff]  ;;  %v6783_v21 = vpack.c.bf16 %v5865_v16, %v5863_v11 }
  0x4c   :  { %871 = vmatprep.mubr.f32.mxu0 %v7656_v3  ;;  %v5976_v16 = vld [vmem:[%s11002_s1 + $0x1b0] sm:$0xff] }
  0x4e   :  { %5812 = vmatmul.mubr.msk.f32.gmra.mrb[32].mxu1 %vm116_vm2, %v7987_v25  ;;  %v1064_v25 = vrot.slane %v7815_v35, 3 }
  0x4f   :  { %5861 = vmatmul.mubr.msk.f32.gmra.mrb[18].mxu0 %vm116_vm2, %v8157_v6  ;;  %392 = vmatprep.mubr.f32.mxu1 %v7656_v3 }
  0x50   :  { %1184 = vmatprep.mubr.f32.mxu0 %v7656_v3  ;;  %v8196_v37 = vsel %vm1060_vm4, %v1062_v8, %v1064_v25  ;;  %v8215_v48 = vsel %vm1060_vm4, %v1064_v25, %v1066_v41  ;;  %v5862_v8 = vld [vmem:[%s11004_s2 + $0xa0] sm:$0xff]  ;;  %v5868_v41 = vld [vmem:[%s11004_s2 + $0xd0] sm:$0xff] }
  0x51   :  { %v6785_v25 = vpack.c.bf16 %v5864_v19, %v5862_v8  ;;  %v6789_v46 = vpack.c.bf16 %v5868_v41, %v5866_v36  ;;  %v1432_v8 = vrot.slane %v7842_v44, 4  ;;  %v6839_v36 = vpack.c.bf16 %v6019_v29, %v6017_v22  ;;  %v5914_v22 = vld [vmem:[%s11004_s2 + $0x130] sm:$0xf] }
  0x52   :  { %5813 = vmatmul.mubr.msk.f32.gmra.mrb[34].mxu1 %vm116_vm2, %v8016_v40  ;;  %v5937_v40 = vld [vmem:[%s11002_s1 + $0x188] sm:$0xf] }
  0x53   :  { %5896 = vmatmul.mubr.msk.f32.vlgmr.msra.gmra.mrb[0].mxu0 %vm116_vm2, %v8180_v30  ;;  %398 = vmatprep.mubr.f32.mxu1 %v7656_v3 }
  0x54   :  { %1190 = vmatprep.mubr.f32.mxu0 %v7656_v3  ;;  %6810 = vmatpush1.bf16.msra.mxu0 %v6809_v31  ;;  %v8305_v31 = vsel %vm1060_vm4, %v1073_v39, %v1075_v17  ;;  %v1430_v39 = vrot.slane %v7815_v35, 4 }
  0x55   :  { %6812 = vmatprep.subr.bf16.mxu0 %v6811_v33  ;;  %v1077_v33 = vrot.slane %v7979_v23, 3 }
  0x56   :  { %5814 = vmatmul.mubr.msk.f32.gmra.mrb[36].mxu1 %vm116_vm2, %v8041_v50  ;;  %v60_v50 = vld [vmem:[%s11004_s2] sm:$0xff] }
  0x57   :  { %5897 = vmatmul.mubr.msk.f32.gmra.mrb[2].mxu0 %vm116_vm2, %v8196_v37  ;;  %404 = vmatprep.mubr.f32.mxu1 %v7656_v3  ;;  %v6769_v59 = vpack.c.bf16 %v62_v51, %v60_v50  ;;  %v5909_v50 = vld [vmem:[%s11004_s2 + $0x108] sm:$0xff] }
  0x58   :  { %1196 = vmatprep.mubr.f32.mxu0 %v7656_v3  ;;  %6814 = vmatpush1.bf16.msra.mxu0 %v6813_v43  ;;  %v8321_v43 = vsel %vm1060_vm4, %v1075_v17, %v1077_v33 }
  0x59   :  { %5938 = vmatprep.subr.msk.mxu0 %vm137_vm0, %v5937_v40  ;;  %v1079_v40 = vrot.slane %v7996_v32, 3 }
  0x5a   :  { %5815 = vmatmul.mubr.msk.f32.gmra.mrb[38].mxu1 %vm116_vm2, %v8064_v60  ;;  %v1070_v60 = vrot.slane %v7908_v2, 3 }
  0x5b   :  { %5898 = vmatmul.mubr.msk.f32.gmra.mrb[4].mxu0 %vm116_vm2, %v8215_v48  ;;  %543 = vmatprep.mubr.f32.mxu1 %v7656_v3  ;;  %v8340_v51 = vsel %vm1060_vm4, %v1077_v33, %v1079_v40  ;;  %v1434_v33 = vrot.slane %v7883_v57, 4 }
  0x5c   :  { %1202 = vmatprep.mubr.f32.mxu0 %v7656_v3  ;;  %5939 = vmatpush1.msk.msra.mxu0 %vm137_vm0, %v5936_v54  ;;  %v8258_v10 = vsel %vm1060_vm4, %v1068_v49, %v1070_v60  ;;  %v5907_v49 = vld [vmem:[%s11004_s2 + $0xf8] sm:$0xff]  ;;  %v1081_v54 = vrot.slane %v8027_v45, 3  ;;  %v1428_v60 = vrot.slane %v7796_v28, 4 }
  0x5d   :  { %6824 = vmatprep.subr.bf16.mxu0 %v6823_v55  ;;  %v5870_v55 = vld [vmem:[%s11004_s2 + $0xe0] sm:$0xf]  ;;  %v6799_v56 = vpack.c.bf16 %v5909_v50, %v5907_v49  ;;  %v8427_v41 = vsel %vm137_vm0, %v1432_v8, %v1434_v33  ;;  %v1439_v49 = vrot.slane %v7941_v14, 4 }
  0x5e   :  { %5825 = vmatmul.mubr.msk.f32.vlgmr.msra.gmra.mrb[14].mxu1 %vm116_vm2, %v7963_v20  ;;  %v8354_v58 = vsel %vm1060_vm4, %v1079_v40, %v1081_v54  ;;  %v8394_v17 = vsel %vm137_vm0, %v1428_v60, %v1430_v39  ;;  %v1436_v40 = vrot.slane %v7908_v2, 4  ;;  %v1441_v54 = vrot.slane %v7963_v20, 4 }
  0x5f   :  { %5899 = vmatmul.mubr.msk.f32.gmra.mrb[6].mxu0 %vm116_vm2, %v8241_v62  ;;  %6770 = vmatpush1.bf16.msra.mxu1 %v6769_v59  ;;  %v1427_v59 = vrot.slane %v7791_v27, 4 }
  0x60   :  { %549 = vmatprep.mubr.f32.mxu1 %v7656_v3  ;;  %1208 = vmatprep.mubr.f32.mxu0 %v7656_v3 }
  0x61   :  { %6772 = vmatprep.subr.bf16.mxu1 %v6771_v5  ;;  %v5977_v5 = vld [vmem:[%s11002_s1 + $0x1b8] sm:$0xff]  ;;  %v8378_v13 = vsel %vm137_vm0, %v1427_v59, %v1428_v60  ;;  %v5913_v60 = vld [vmem:[%s11004_s2 + $0x128] sm:$0xff] }
  0x62   :  { %5826 = vmatmul.mubr.msk.f32.gmra.mrb[16].mxu1 %vm116_vm2, %v7979_v23  ;;  %v5911_v59 = vld [vmem:[%s11004_s2 + $0x118] sm:$0xff] }
  0x63   :  { %5900 = vmatmul.mubr.msk.f32.gmra.mrb[8].mxu0 %vm116_vm2, %v8258_v10  ;;  %6774 = vmatpush1.bf16.msra.mxu1 %v6773_v9  ;;  %v5979_v9 = vld [vmem:[%s11002_s1 + $0x1c8] sm:$0xff] }
  0x64   :  { %555 = vmatprep.mubr.f32.mxu1 %v7656_v3  ;;  %1214 = vmatprep.mubr.f32.mxu0 %v7656_v3  ;;  %v6827_v11 = vpack.c.bf16 %v5979_v9, %v5977_v5  ;;  %v1443_v5 = vrot.slane %v7979_v23, 4  ;;  %v6803_v9 = vpack.c.bf16 %v5913_v60, %v5911_v59  ;;  %v1799_v59 = vrot.slane %v7842_v44, 5 }
  0x65   :  { %5828 = vmatprep.subr.msk.mxu1 %vm137_vm0, %v69_v53  ;;  %v6825_v53 = vpack.c.bf16 %v5974_v1, %v5972_v63  ;;  %v8471_v1 = vsel %vm137_vm0, %v1439_v49, %v1441_v54 }
  0x66   :  { %5827 = vmatmul.mubr.msk.f32.gmra.mrb[18].mxu1 %vm116_vm2, %v7996_v32 }
  0x67   :  { %5901 = vmatmul.mubr.msk.f32.gmra.mrb[10].mxu0 %vm116_vm2, %v8278_v26  ;;  %5829 = vmatpush1.msk.msra.mxu1 %vm137_vm0, %v68_v0  ;;  %v5978_v0 = vld [vmem:[%s11002_s1 + $0x1c0] sm:$0xff] }
  0x68   :  { %632 = vmatprep.mubr.f32.mxu1 %v7656_v3  ;;  %1220 = vmatprep.mubr.f32.mxu0 %v7656_v3  ;;  %v6829_v19 = vpack.c.bf16 %v5978_v0, %v5976_v16  ;;  %v1445_v16 = vrot.slane %v7996_v32, 4 }
  0x69   :  { %6784 = vmatprep.subr.bf16.mxu1 %v6783_v21  ;;  %v5981_v21 = vld [vmem:[%s11002_s1 + $0x1d8] sm:$0xf] }
  0x6a   :  { %5830 = vmatmul.mubr.msk.f32.vlgmr.msra.gmra.mrb[20].mxu1 %vm116_vm2, %v7791_v27 }
  0x6b   :  { %5902 = vmatmul.mubr.msk.f32.gmra.mrb[12].mxu0 %vm116_vm2, %v8305_v31  ;;  %6786 = vmatpush1.bf16.msra.mxu1 %v6785_v25  ;;  %v8413_v25 = vsel %vm137_vm0, %v1430_v39, %v1432_v8  ;;  %v5910_v39 = vld [vmem:[%s11004_s2 + $0x110] sm:$0xff]  ;;  %v5951_v8 = vld [vmem:[%s11004_s2 + $0x148] sm:$0xff] }
  0x6c   :  { %638 = vmatprep.mubr.f32.mxu1 %v7656_v3  ;;  %1226 = vmatprep.mubr.f32.mxu0 %v7656_v3 }
  0x6d   :  { %6788 = vmatprep.subr.bf16.mxu1 %v6787_v34  ;;  %v5980_v34 = vld [vmem:[%s11002_s1 + $0x1d0] sm:$0xf] }
  0x6e   :  { %5831 = vmatmul.mubr.msk.f32.gmra.mrb[22].mxu1 %vm116_vm2, %v7796_v28 }
  0x6f   :  { %5903 = vmatmul.mubr.msk.f32.gmra.mrb[14].mxu0 %vm116_vm2, %v8321_v43  ;;  %644 = vmatprep.mubr.f32.mxu1 %v7656_v3 }
  0x70   :  { %1232 = vmatprep.mubr.f32.mxu0 %v7656_v3  ;;  %6790 = vmatpush1.bf16.msra.mxu1 %v6789_v46  ;;  %v8438_v46 = vsel %vm137_vm0, %v1434_v33, %v1436_v40  ;;  %v6018_v40 = vld [vmem:[%s11002_s1 + $0x1f0] sm:$0xff] }
  0x71   :  { %5872 = vmatprep.subr.msk.mxu1 %vm137_vm0, %v5871_v47  ;;  %v1438_v47 = vrot.slane %v7936_v12, 4 }
  0x72   :  { %5832 = vmatmul.mubr.msk.f32.gmra.mrb[24].mxu1 %vm116_vm2, %v7815_v35 }
  0x73   :  { %5904 = vmatmul.mubr.msk.f32.gmra.mrb[16].mxu0 %vm116_vm2, %v8340_v51  ;;  %650 = vmatprep.mubr.f32.mxu1 %v7656_v3  ;;  %v8449_v50 = vsel %vm137_vm0, %v1438_v47, %v1439_v49 }
  0x74   :  { %1238 = vmatprep.mubr.f32.mxu0 %v7656_v3  ;;  %5873 = vmatpush1.msk.msra.mxu1 %vm137_vm0, %v5870_v55  ;;  %v5906_v55 = vld [vmem:[%s11004_s2 + $0xf0] sm:$0xff] }
  0x75   :  { %6800 = vmatprep.subr.bf16.mxu1 %v6799_v56  ;;  %v5908_v56 = vld [vmem:[%s11004_s2 + $0x100] sm:$0xff] }
  0x76   :  { %5833 = vmatmul.mubr.msk.f32.gmra.mrb[26].mxu1 %vm116_vm2, %v7842_v44  ;;  %v6801_v63 = vpack.c.bf16 %v5908_v56, %v5906_v55  ;;  %v6020_v55 = vld [vmem:[%s11002_s1 + $0x200] sm:$0xff]  ;;  %v6022_v56 = vld [vmem:[%s11002_s1 + $0x210] sm:$0xff] }
  0x77   :  { %5905 = vmatmul.mubr.msk.f32.gmra.mrb[18].mxu0 %vm116_vm2, %v8354_v58  ;;  %656 = vmatprep.mubr.f32.mxu1 %v7656_v3  ;;  %v6845_v60 = vpack.c.bf16 %v6022_v56, %v6020_v55 }
  0x78   :  { %1550 = vmatprep.mubr.f32.mxu0 %v7656_v3 }
  0x7a   :  { %5834 = vmatmul.mubr.msk.f32.gmra.mrb[28].mxu1 %vm116_vm2, %v7883_v57 }
  0x7b   :  { %5940 = vmatmul.mubr.msk.f32.vlgmr.msra.gmra.mrb[0].mxu0 %vm116_vm2, %v8378_v13  ;;  %662 = vmatprep.mubr.f32.mxu1 %v7656_v3 }
  0x7c   :  { %1556 = vmatprep.mubr.f32.mxu0 %v7656_v3  ;;  %6826 = vmatpush1.bf16.msra.mxu0 %v6825_v53  ;;  %v5912_v53 = vld [vmem:[%s11004_s2 + $0x120] sm:$0xff] }
  0x7d   :  { %6828 = vmatprep.subr.bf16.mxu0 %v6827_v11  ;;  %v8487_v11 = vsel %vm137_vm0, %v1441_v54, %v1443_v5  ;;  %v6805_v0 = vpack.c.bf16 %v5912_v53, %v5910_v39  ;;  %v1803_v53 = vrot.slane %v7908_v2, 5  ;;  %v1806_v2 = vrot.slane %v7941_v14, 5 }
  0x7e   :  { %5835 = vmatmul.mubr.msk.f32.gmra.mrb[30].mxu1 %vm116_vm2, %v7936_v12 }
  0x7f   :  { %5941 = vmatmul.mubr.msk.f32.gmra.mrb[2].mxu0 %vm116_vm2, %v8394_v17  ;;  %668 = vmatprep.mubr.f32.mxu1 %v7656_v3 }
  0x80   :  { %1562 = vmatprep.mubr.f32.mxu0 %v7656_v3  ;;  %6830 = vmatpush1.bf16.msra.mxu0 %v6829_v19  ;;  %v5953_v19 = vld [vmem:[%s11004_s2 + $0x158] sm:$0xff] }
  0x81   :  { %5982 = vmatprep.subr.msk.mxu0 %vm137_vm0, %v5981_v21  ;;  %v1447_v21 = vrot.slane %v8027_v45, 4  ;;  %v6815_v29 = vpack.c.bf16 %v5953_v19, %v5951_v8  ;;  %v5955_v8 = vld [vmem:[%s11004_s2 + $0x168] sm:$0xff]  ;;  %v5957_v19 = vld [vmem:[%s11004_s2 + $0x178] sm:$0xff] }
  0x82   :  { %5836 = vmatmul.mubr.msk.f32.gmra.mrb[32].mxu1 %vm116_vm2, %v7941_v14 }
  0x83   :  { %5942 = vmatmul.mubr.msk.f32.gmra.mrb[4].mxu0 %vm116_vm2, %v8413_v25  ;;  %674 = vmatprep.mubr.f32.mxu1 %v7656_v3  ;;  %v8520_v33 = vsel %vm137_vm0, %v1445_v16, %v1447_v21 }
  0x84   :  { %1568 = vmatprep.mubr.f32.mxu0 %v7656_v3  ;;  %5983 = vmatpush1.msk.msra.mxu0 %vm137_vm0, %v5980_v34  ;;  %v1794_v34 = vrot.slane %v7791_v27, 5  ;;  %v6021_v27 = vld [vmem:[%s11002_s1 + $0x208] sm:$0xff] }
  0x85   :  { %6840 = vmatprep.subr.bf16.mxu0 %v6839_v36  ;;  %v1795_v36 = vrot.slane %v7796_v28, 5  ;;  %v6023_v28 = vld [vmem:[%s11002_s1 + $0x218] sm:$0xff] }
  0x86   :  { %5837 = vmatmul.mubr.msk.f32.gmra.mrb[34].mxu1 %vm116_vm2, %v7963_v20  ;;  %v6843_v54 = vpack.c.bf16 %v6023_v28, %v6021_v27  ;;  %v5995_v28 = vld [vmem:[%s11004_s2 + $0x198] sm:$0xff] }
  0x87   :  { %5943 = vmatmul.mubr.msk.f32.gmra.mrb[6].mxu0 %vm116_vm2, %v8427_v41  ;;  %680 = vmatprep.mubr.f32.mxu1 %v7656_v3  ;;  %v8544_v47 = vsel %vm1793_vm5, %v1794_v34, %v1795_v36  ;;  %v5954_v34 = vld [vmem:[%s11004_s2 + $0x160] sm:$0xff] }
  0x88   :  { %1574 = vmatprep.mubr.f32.mxu0 %v7656_v3 }
  0x8a   :  { %5838 = vmatmul.mubr.msk.f32.gmra.mrb[36].mxu1 %vm116_vm2, %v7979_v23 }
  0x8b   :  { %5944 = vmatmul.mubr.msk.f32.gmra.mrb[8].mxu0 %vm116_vm2, %v8438_v46  ;;  %686 = vmatprep.mubr.f32.mxu1 %v7656_v3 }
  0x8c   :  { %1580 = vmatprep.mubr.f32.mxu0 %v7656_v3 }
  0x8e   :  { %5839 = vmatmul.mubr.msk.f32.gmra.mrb[38].mxu1 %vm116_vm2, %v7996_v32 }
  0x8f   :  { %5945 = vmatmul.mubr.msk.f32.gmra.mrb[10].mxu0 %vm116_vm2, %v8449_v50  ;;  %959 = vmatprep.mubr.f32.mxu1 %v7656_v3 }
  0x90   :  { %1586 = vmatprep.mubr.f32.mxu0 %v7656_v3 }
  0x92   :  { %5874 = vmatmul.mubr.msk.f32.vlgmr.msra.gmra.mrb[20].mxu1 %vm116_vm2, %v8021_v42  ;;  %v5915_v42 = vld [vmem:[%s11004_s2 + $0x138] sm:$0xf] }
  0x93   :  { %5946 = vmatmul.mubr.msk.f32.gmra.mrb[12].mxu0 %vm116_vm2, %v8471_v1  ;;  %6802 = vmatpush1.bf16.msra.mxu1 %v6801_v63  ;;  %v6061_v63 = vld [vmem:[%s11002_s1 + $0x238] sm:$0xff] }
  0x94   :  { %965 = vmatprep.mubr.f32.mxu1 %v7656_v3  ;;  %1592 = vmatprep.mubr.f32.mxu0 %v7656_v3 }
  0x95   :  { %6804 = vmatprep.subr.bf16.mxu1 %v6803_v9  ;;  %v6024_v9 = vld [vmem:[%s11002_s1 + $0x220] sm:$0xf] }
  0x96   :  { %5875 = vmatmul.mubr.msk.f32.gmra.mrb[22].mxu1 %vm116_vm2, %v8046_v52  ;;  %v8506_v52 = vsel %vm137_vm0, %v1443_v5, %v1445_v16  ;;  %v6063_v5 = vld [vmem:[%s11002_s1 + $0x248] sm:$0xff]  ;;  %v1805_v16 = vrot.slane %v7936_v12, 5 }
  0x97   :  { %5947 = vmatmul.mubr.msk.f32.gmra.mrb[14].mxu0 %vm116_vm2, %v8487_v11  ;;  %971 = vmatprep.mubr.f32.mxu1 %v7656_v3  ;;  %v6855_v39 = vpack.c.bf16 %v6063_v5, %v6061_v63  ;;  %v6060_v63 = vld [vmem:[%s11002_s1 + $0x230] sm:$0xff]  ;;  %v6062_v5 = vld [vmem:[%s11002_s1 + $0x240] sm:$0xff] }
  0x98   :  { %1598 = vmatprep.mubr.f32.mxu0 %v7656_v3  ;;  %6806 = vmatpush1.bf16.msra.mxu1 %v6805_v0  ;;  %v1808_v0 = vrot.slane %v7963_v20, 5 }
  0x99   :  { %5916 = vmatprep.subr.msk.mxu1 %vm137_vm0, %v5915_v42  ;;  %v5950_v42 = vld [vmem:[%s11004_s2 + $0x140] sm:$0xff] }
  0x9a   :  { %5876 = vmatmul.mubr.msk.f32.gmra.mrb[24].mxu1 %vm116_vm2, %v8068_v61  ;;  %v6016_v61 = vld [vmem:[%s11002_s1 + $0x1e0] sm:$0xff] }
  0x9b   :  { %5948 = vmatmul.mubr.msk.f32.gmra.mrb[16].mxu0 %vm116_vm2, %v8506_v52  ;;  %977 = vmatprep.mubr.f32.mxu1 %v7656_v3  ;;  %v6841_v49 = vpack.c.bf16 %v6018_v40, %v6016_v61  ;;  %v1812_v40 = vrot.slane %v7996_v32, 5 }
  0x9c   :  { %1604 = vmatprep.mubr.f32.mxu0 %v7656_v3  ;;  %5917 = vmatpush1.msk.msra.mxu1 %vm137_vm0, %v5914_v22  ;;  %v8637_v22 = vsel %vm1793_vm5, %v1806_v2, %v1808_v0 }
  0x9d   :  { %6816 = vmatprep.subr.bf16.mxu1 %v6815_v29  ;;  %v6819_v29 = vpack.c.bf16 %v5957_v19, %v5955_v8  ;;  %v8746_v8 = vld [vmem:[%s11003_s0 + $0x18] sm:$0xff] }
  0x9e   :  { %5877 = vmatmul.mubr.msk.f32.gmra.mrb[26].mxu1 %vm116_vm2, %v8082_v4  ;;  %v1797_v4 = vrot.slane %v7815_v35, 5  ;;  %v2166_v19 = vrot.slane %v8746_v8, 6 }
  0x9f   :  { %5949 = vmatmul.mubr.msk.f32.gmra.mrb[18].mxu0 %vm116_vm2, %v8520_v33  ;;  %983 = vmatprep.mubr.f32.mxu1 %v7656_v3 }
  0xa0   :  { %1917 = vmatprep.mubr.f32.mxu0 %v7656_v3  ;;  %v8560_v35 = vsel %vm1793_vm5, %v1795_v36, %v1797_v4  ;;  %v8579_v44 = vsel %vm1793_vm5, %v1797_v4, %v1799_v59  ;;  %v5956_v36 = vld [vmem:[%s11004_s2 + $0x170] sm:$0xff]  ;;  %v5997_v4 = vld [vmem:[%s11004_s2 + $0x1a8] sm:$0xff] }
  0xa1   :  { %v6821_v27 = vpack.c.bf16 %v5956_v36, %v5954_v34  ;;  %v6831_v55 = vpack.c.bf16 %v5997_v4, %v5995_v28  ;;  %v8770_v34 = vld [vmem:[%s11003_s0 + $0x20] sm:$0xff]  ;;  %v8789_v28 = vld [vmem:[%s11003_s0 + $0x28] sm:$0xff] }
  0xa2   :  { %5878 = vmatmul.mubr.msk.f32.gmra.mrb[28].mxu1 %vm116_vm2, %v8094_v7  ;;  %v6025_v7 = vld [vmem:[%s11002_s1 + $0x228] sm:$0xf]  ;;  %v2168_v36 = vrot.slane %v8770_v34, 6  ;;  %v2170_v4 = vrot.slane %v8789_v28, 6 }
  0xa3   :  { %5984 = vmatmul.mubr.msk.f32.vlgmr.msra.gmra.mrb[0].mxu0 %vm116_vm2, %v8544_v47  ;;  %989 = vmatprep.mubr.f32.mxu1 %v7656_v3 }
  0xa4   :  { %1923 = vmatprep.mubr.f32.mxu0 %v7656_v3  ;;  %6842 = vmatpush1.bf16.msra.mxu0 %v6841_v49  ;;  %v1814_v49 = vrot.slane %v8027_v45, 5 }
  0xa5   :  { %6844 = vmatprep.subr.bf16.mxu0 %v6843_v54  ;;  %v5958_v54 = vld [vmem:[%s11004_s2 + $0x180] sm:$0xf] }
  0xa6   :  { %5879 = vmatmul.mubr.msk.f32.gmra.mrb[30].mxu1 %vm116_vm2, %v8112_v18  ;;  %v1801_v18 = vrot.slane %v7883_v57, 5  ;;  %v8686_v56 = vsel %vm1793_vm5, %v1812_v40, %v1814_v49  ;;  %v2172_v49 = vrot.slane %v7936_v12, 6  ;;  %v5994_v12 = vld [vmem:[%s11004_s2 + $0x190] sm:$0xff] }
  0xa7   :  { %5985 = vmatmul.mubr.msk.f32.gmra.mrb[2].mxu0 %vm116_vm2, %v8560_v35  ;;  %995 = vmatprep.mubr.f32.mxu1 %v7656_v3 }
  0xa8   :  { %1929 = vmatprep.mubr.f32.mxu0 %v7656_v3  ;;  %6846 = vmatpush1.bf16.msra.mxu0 %v6845_v60  ;;  %v8593_v57 = vsel %vm1793_vm5, %v1799_v59, %v1801_v18  ;;  %v8691_v59 = vld [vmem:[%s11003_s0] sm:$0xff] }
  0xa9   :  { %6026 = vmatprep.subr.msk.mxu0 %vm137_vm0, %v6025_v7  ;;  %v2161_v60 = vrot.slane %v8691_v59, 6 }
  0xaa   :  { %5880 = vmatmul.mubr.msk.f32.gmra.mrb[32].mxu1 %vm116_vm2, %v8125_v15  ;;  %v8604_v15 = vsel %vm1793_vm5, %v1801_v18, %v1803_v53  ;;  %v6065_v18 = vld [vmem:[%s11002_s1 + $0x258] sm:$0xff] }
  0xab   :  { %5986 = vmatmul.mubr.msk.f32.gmra.mrb[4].mxu0 %vm116_vm2, %v8579_v44  ;;  %1001 = vmatprep.mubr.f32.mxu1 %v7656_v3 }
  0xac   :  { %1935 = vmatprep.mubr.f32.mxu0 %v7656_v3  ;;  %6027 = vmatpush1.msk.msra.mxu0 %vm137_vm0, %v6024_v9  ;;  %v6067_v9 = vld [vmem:[%s11002_s1 + $0x268] sm:$0xff] }
  0xad   :  { %6856 = vmatprep.subr.bf16.mxu0 %v6855_v39 }
  0xae   :  { %5881 = vmatmul.mubr.msk.f32.gmra.mrb[34].mxu1 %vm116_vm2, %v8137_v24  ;;  %v8615_v24 = vsel %vm1793_vm5, %v1805_v16, %v1806_v2  ;;  %v6857_v16 = vpack.c.bf16 %v6062_v5, %v6060_v63  ;;  %v6859_v2 = vpack.c.bf16 %v6067_v9, %v6065_v18  ;;  %v5998_v18 = vld [vmem:[%s11004_s2 + $0x1b0] sm:$0xff]  ;;  %v6000_v9 = vld [vmem:[%s11004_s2 + $0x1c0] sm:$0xff] }
  0xaf   :  { %5987 = vmatmul.mubr.msk.f32.gmra.mrb[6].mxu0 %vm116_vm2, %v8593_v57  ;;  %1007 = vmatprep.mubr.f32.mxu1 %v7656_v3 }
  0xb0   :  { %1941 = vmatprep.mubr.f32.mxu0 %v7656_v3 }
  0xb2   :  { %5882 = vmatmul.mubr.msk.f32.gmra.mrb[36].mxu1 %vm116_vm2, %v8147_v38  ;;  %v5952_v38 = vld [vmem:[%s11004_s2 + $0x150] sm:$0xff] }
  0xb3   :  { %5988 = vmatmul.mubr.msk.f32.gmra.mrb[8].mxu0 %vm116_vm2, %v8604_v15  ;;  %1013 = vmatprep.mubr.f32.mxu1 %v7656_v3  ;;  %v6817_v21 = vpack.c.bf16 %v5952_v38, %v5950_v42  ;;  %v6066_v42 = vld [vmem:[%s11002_s1 + $0x260] sm:$0xff] }
  0xb4   :  { %1947 = vmatprep.mubr.f32.mxu0 %v7656_v3 }
  0xb6   :  { %5883 = vmatmul.mubr.msk.f32.gmra.mrb[38].mxu1 %vm116_vm2, %v8157_v6  ;;  %v1810_v6 = vrot.slane %v7979_v23, 5 }
  0xb7   :  { %5989 = vmatmul.mubr.msk.f32.gmra.mrb[10].mxu0 %vm116_vm2, %v8615_v24  ;;  %1326 = vmatprep.mubr.f32.mxu1 %v7656_v3 }
  0xb8   :  { %1953 = vmatprep.mubr.f32.mxu0 %v7656_v3  ;;  %v8653_v61 = vsel %vm1793_vm5, %v1808_v0, %v1810_v6  ;;  %v6064_v0 = vld [vmem:[%s11002_s1 + $0x250] sm:$0xff] }
  0xba   :  { %5918 = vmatmul.mubr.msk.f32.vlgmr.msra.gmra.mrb[20].mxu1 %vm116_vm2, %v8180_v30  ;;  %v5959_v30 = vld [vmem:[%s11004_s2 + $0x188] sm:$0xf] }
  0xbb   :  { %5990 = vmatmul.mubr.msk.f32.gmra.mrb[12].mxu0 %vm116_vm2, %v8637_v22  ;;  %6818 = vmatpush1.bf16.msra.mxu1 %v6817_v21  ;;  %v6861_v21 = vpack.c.bf16 %v6066_v42, %v6064_v0 }
  0xbc   :  { %1332 = vmatprep.mubr.f32.mxu1 %v7656_v3  ;;  %1959 = vmatprep.mubr.f32.mxu0 %v7656_v3 }
  0xbd   :  { %6820 = vmatprep.subr.bf16.mxu1 %v6819_v29  ;;  %v6107_v29 = vld [vmem:[%s11002_s1 + $0x298] sm:$0xff] }
  0xbe   :  { %5919 = vmatmul.mubr.msk.f32.gmra.mrb[22].mxu1 %vm116_vm2, %v8196_v37  ;;  %v8672_v37 = vsel %vm1793_vm5, %v1810_v6, %v1812_v40  ;;  %v6105_v6 = vld [vmem:[%s11002_s1 + $0x288] sm:$0xff]  ;;  %v6068_v40 = vld [vmem:[%s11002_s1 + $0x270] sm:$0xf] }
  0xbf   :  { %5991 = vmatmul.mubr.msk.f32.gmra.mrb[14].mxu0 %vm116_vm2, %v8653_v61  ;;  %1338 = vmatprep.mubr.f32.mxu1 %v7656_v3 }
  0xc0   :  { %1965 = vmatprep.mubr.f32.mxu0 %v7656_v3  ;;  %6822 = vmatpush1.bf16.msra.mxu1 %v6821_v27  ;;  %v6871_v27 = vpack.c.bf16 %v6107_v29, %v6105_v6  ;;  %v6002_v6 = vld [vmem:[%s11004_s2 + $0x1d0] sm:$0xf] }
  0xc1   :  { %5960 = vmatprep.subr.msk.mxu1 %vm137_vm0, %v5959_v30  ;;  %v8784_v30 = vsel %vm2160_vm6, %v2166_v19, %v2168_v36 }
  0xc2   :  { %5920 = vmatmul.mubr.msk.f32.gmra.mrb[24].mxu1 %vm116_vm2, %v8215_v48  ;;  %v8697_v48 = vld [vmem:[%s11003_s0 + $0x8] sm:$0xff] }
  0xc3   :  { %5992 = vmatmul.mubr.msk.f32.gmra.mrb[16].mxu0 %vm116_vm2, %v8672_v37  ;;  %1344 = vmatprep.mubr.f32.mxu1 %v7656_v3  ;;  %v2162_v7 = vrot.slane %v8697_v48, 6 }
  0xc4   :  { %1971 = vmatprep.mubr.f32.mxu0 %v7656_v3  ;;  %5961 = vmatpush1.msk.msra.mxu1 %vm137_vm0, %v5958_v54  ;;  %v2173_v54 = vrot.slane %v7941_v14, 6  ;;  %v5996_v14 = vld [vmem:[%s11004_s2 + $0x1a0] sm:$0xff] }
  0xc5   :  { %6832 = vmatprep.subr.bf16.mxu1 %v6831_v55  ;;  %v8720_v39 = vsel %vm2160_vm6, %v2161_v60, %v2162_v7  ;;  %v2175_v55 = vrot.slane %v7963_v20, 6  ;;  %v6001_v60 = vld [vmem:[%s11004_s2 + $0x1c8] sm:$0xff]  ;;  %v6833_v20 = vpack.c.bf16 %v5996_v14, %v5994_v12 }
  0xc6   :  { %5921 = vmatmul.mubr.msk.f32.gmra.mrb[26].mxu1 %vm116_vm2, %v8241_v62  ;;  %v8725_v62 = vld [vmem:[%s11003_s0 + $0x10] sm:$0xff] }
  0xc7   :  { %5993 = vmatmul.mubr.msk.f32.gmra.mrb[18].mxu0 %vm116_vm2, %v8686_v56  ;;  %1350 = vmatprep.mubr.f32.mxu1 %v7656_v3  ;;  %v2164_v53 = vrot.slane %v8725_v62, 6 }
  0xc8   :  { %2284 = vmatprep.mubr.f32.mxu0 %v7656_v3 }
  0xc9   :  { %v8741_v38 = vsel %vm2160_vm6, %v2162_v7, %v2164_v53  ;;  %v8833_v7 = vsel %vm2160_vm6, %v2173_v54, %v2175_v55 }
  0xca   :  { %5922 = vmatmul.mubr.msk.f32.gmra.mrb[28].mxu1 %vm116_vm2, %v8258_v10  ;;  %v6069_v10 = vld [vmem:[%s11002_s1 + $0x278] sm:$0xf] }
  0xcb   :  { %6028 = vmatmul.mubr.msk.f32.vlgmr.msra.gmra.mrb[0].mxu0 %vm116_vm2, %v8720_v39  ;;  %1356 = vmatprep.mubr.f32.mxu1 %v7656_v3 }
  0xcc   :  { %2290 = vmatprep.mubr.f32.mxu0 %v7656_v3  ;;  %6858 = vmatpush1.bf16.msra.mxu0 %v6857_v16  ;;  %v2179_v16 = vrot.slane %v7996_v32, 6  ;;  %v6041_v32 = vld [vmem:[%s11004_s2 + $0x1f8] sm:$0xff] }
  0xcd   :  { %6860 = vmatprep.subr.bf16.mxu0 %v6859_v2  ;;  %v6837_v2 = vpack.c.bf16 %v6000_v9, %v5998_v18  ;;  %v2533_v9 = vrot.slane %v8746_v8, 7 }
  0xce   :  { %5923 = vmatmul.mubr.msk.f32.gmra.mrb[30].mxu1 %vm116_vm2, %v8278_v26  ;;  %v8765_v26 = vsel %vm2160_vm6, %v2164_v53, %v2166_v19  ;;  %v6039_v19 = vld [vmem:[%s11004_s2 + $0x1e8] sm:$0xff] }
  0xcf   :  { %6029 = vmatmul.mubr.msk.f32.gmra.mrb[2].mxu0 %vm116_vm2, %v8741_v38  ;;  %1362 = vmatprep.mubr.f32.mxu1 %v7656_v3  ;;  %v6847_v29 = vpack.c.bf16 %v6041_v32, %v6039_v19  ;;  %v2535_v32 = vrot.slane %v8770_v34, 7 }
  0xd0   :  { %2296 = vmatprep.mubr.f32.mxu0 %v7656_v3  ;;  %6862 = vmatpush1.bf16.msra.mxu0 %v6861_v21  ;;  %v2181_v21 = vrot.slane %v8027_v45, 6 }
  0xd1   :  { %6070 = vmatprep.subr.msk.mxu0 %vm137_vm0, %v6069_v10 }
  0xd2   :  { %5924 = vmatmul.mubr.msk.f32.gmra.mrb[32].mxu1 %vm116_vm2, %v8305_v31  ;;  %v8800_v31 = vsel %vm2160_vm6, %v2168_v36, %v2170_v4  ;;  %v8894_v45 = vsel %vm2160_vm6, %v2179_v16, %v2181_v21 }
  0xd3   :  { %6030 = vmatmul.mubr.msk.f32.gmra.mrb[4].mxu0 %vm116_vm2, %v8765_v26  ;;  %1368 = vmatprep.mubr.f32.mxu1 %v7656_v3 }
  0xd4   :  { %2302 = vmatprep.mubr.f32.mxu0 %v7656_v3  ;;  %6071 = vmatpush1.msk.msra.mxu0 %vm137_vm0, %v6068_v40  ;;  %v2528_v40 = vrot.slane %v8691_v59, 7  ;;  %v6109_v59 = vld [vmem:[%s11002_s1 + $0x2a8] sm:$0xff] }
  0xd5   :  { %6872 = vmatprep.subr.bf16.mxu0 %v6871_v27  ;;  %v2529_v27 = vrot.slane %v8697_v48, 7 }
  0xd6   :  { %5925 = vmatmul.mubr.msk.f32.gmra.mrb[34].mxu1 %vm116_vm2, %v8321_v43  ;;  %v8811_v43 = vsel %vm2160_vm6, %v2172_v49, %v2173_v54  ;;  %v6106_v49 = vld [vmem:[%s11002_s1 + $0x290] sm:$0xff] }
  0xd7   :  { %6031 = vmatmul.mubr.msk.f32.gmra.mrb[6].mxu0 %vm116_vm2, %v8784_v30  ;;  %1374 = vmatprep.mubr.f32.mxu1 %v7656_v3  ;;  %v8922_v12 = vsel %vm2527_vm7, %v2528_v40, %v2529_v27  ;;  %v2537_v40 = vrot.slane %v8789_v28, 7 }
  0xd8   :  { %2308 = vmatprep.mubr.f32.mxu0 %v7656_v3 }
  0xda   :  { %5926 = vmatmul.mubr.msk.f32.gmra.mrb[36].mxu1 %vm116_vm2, %v8340_v51  ;;  %v5999_v51 = vld [vmem:[%s11004_s2 + $0x1b8] sm:$0xff] }
  0xdb   :  { %6032 = vmatmul.mubr.msk.f32.gmra.mrb[8].mxu0 %vm116_vm2, %v8800_v31  ;;  %1380 = vmatprep.mubr.f32.mxu1 %v7656_v3  ;;  %v6835_v5 = vpack.c.bf16 %v6001_v60, %v5999_v51 }
  0xdc   :  { %2314 = vmatprep.mubr.f32.mxu0 %v7656_v3 }
  0xde   :  { %5927 = vmatmul.mubr.msk.f32.gmra.mrb[38].mxu1 %vm116_vm2, %v8354_v58  ;;  %v2177_v58 = vrot.slane %v7979_v23, 6 }
  0xdf   :  { %6033 = vmatmul.mubr.msk.f32.gmra.mrb[10].mxu0 %vm116_vm2, %v8811_v43  ;;  %1692 = vmatprep.mubr.f32.mxu1 %v7656_v3 }
  0xe0   :  { %2320 = vmatprep.mubr.f32.mxu0 %v7656_v3  ;;  %v8853_v23 = vsel %vm2160_vm6, %v2175_v55, %v2177_v58  ;;  %v6111_v55 = vld [vmem:[%s11002_s1 + $0x2b8] sm:$0xff] }
  0xe1   :  { %v8836_v63 = vpop.f32.mrb[0].mxu1  ;;  %v6875_v60 = vpack.c.bf16 %v6111_v55, %v6109_v59  ;;  %v9011_v55 = vld [vmem:[%s11003_s0 + $0x40] sm:$0xff] }
  0xe2   :  { %v8844_v53 = vpop.f32.mrb[1].mxu1  ;;  %5962 = vmatmul.mubr.msk.f32.vlgmr.msra.gmra.mrb[20].mxu1 %vm116_vm2, %v8378_v13  ;;  %v6003_v13 = vld [vmem:[%s11004_s2 + $0x1d8] sm:$0xf] }
  0xe3   :  { %6034 = vmatmul.mubr.msk.f32.gmra.mrb[12].mxu0 %vm116_vm2, %v8833_v7  ;;  %6834 = vmatpush1.bf16.msra.mxu1 %v6833_v20  ;;  %v6108_v20 = vld [vmem:[%s11002_s1 + $0x2a0] sm:$0xff] }
  0xe4   :  { %1698 = vmatprep.mubr.f32.mxu1 %v7656_v3  ;;  %2326 = vmatprep.mubr.f32.mxu0 %v7656_v3 }
  0xe5   :  { %v8856_v0 = vpop.f32.mrb[2].mxu1  ;;  %6836 = vmatprep.subr.bf16.mxu1 %v6835_v5 }
  0xe6   :  { %v8858_v42 = vpop.f32.mrb[3].mxu1  ;;  %5963 = vmatmul.mubr.msk.f32.gmra.mrb[22].mxu1 %vm116_vm2, %v8394_v17  ;;  %v8876_v17 = vsel %vm2160_vm6, %v2177_v58, %v2179_v16  ;;  %v6110_v58 = vld [vmem:[%s11002_s1 + $0x2b0] sm:$0xff] }
  0xe7   :  { %6035 = vmatmul.mubr.msk.f32.gmra.mrb[14].mxu0 %vm116_vm2, %v8853_v23  ;;  %1704 = vmatprep.mubr.f32.mxu1 %v7656_v3  ;;  %v6877_v16 = vpack.c.bf16 %v6110_v58, %v6108_v20  ;;  %v6045_v20 = vld [vmem:[%s11004_s2 + $0x218] sm:$0xff] }
  0xe8   :  { %2332 = vmatprep.mubr.f32.mxu0 %v7656_v3  ;;  %6838 = vmatpush1.bf16.msra.mxu1 %v6837_v2 }
  0xe9   :  { %v8879_v10 = vpop.f32.mrb[4].mxu1  ;;  %6004 = vmatprep.subr.msk.mxu1 %vm137_vm0, %v6003_v13 }
  0xea   :  { %v8885_v36 = vpop.f32.mrb[5].mxu1  ;;  %5964 = vmatmul.mubr.msk.f32.gmra.mrb[24].mxu1 %vm116_vm2, %v8413_v25  ;;  %v6104_v25 = vld [vmem:[%s11002_s1 + $0x280] sm:$0xff] }
  0xeb   :  { %6036 = vmatmul.mubr.msk.f32.gmra.mrb[16].mxu0 %vm116_vm2, %v8876_v17  ;;  %1710 = vmatprep.mubr.f32.mxu1 %v7656_v3  ;;  %v6873_v14 = vpack.c.bf16 %v6106_v49, %v6104_v25  ;;  %v8996_v49 = vld [vmem:[%s11003_s0 + $0x38] sm:$0xff] }
  0xec   :  { %2338 = vmatprep.mubr.f32.mxu0 %v7656_v3  ;;  %6005 = vmatpush1.msk.msra.mxu1 %vm137_vm0, %v6002_v6 }
  0xed   :  { %v8899_v4 = vpop.f32.mrb[6].mxu1  ;;  %6848 = vmatprep.subr.bf16.mxu1 %v6847_v29  ;;  %v8977_v29 = vsel %vm2527_vm7, %v2533_v9, %v2535_v32 }
  0xee   :  { %v8907_v54 = vpop.f32.mrb[7].mxu1  ;;  %5965 = vmatmul.mubr.msk.f32.gmra.mrb[26].mxu1 %vm116_vm2, %v8427_v41  ;;  %v2531_v41 = vrot.slane %v8725_v62, 7 }
  0xef   :  { %6037 = vmatmul.mubr.msk.f32.gmra.mrb[18].mxu0 %vm116_vm2, %v8894_v45  ;;  %1716 = vmatprep.mubr.f32.mxu1 %v7656_v3 }
  0xf0   :  { %2651 = vmatprep.mubr.f32.mxu0 %v7656_v3  ;;  %v8942_v18 = vsel %vm2527_vm7, %v2529_v27, %v2531_v41  ;;  %v8959_v19 = vsel %vm2527_vm7, %v2531_v41, %v2533_v9  ;;  %v7650_v27 = vld [vmem:[%s11003_s0 + $0x30] sm:$0xff]  ;;  %v2542_v41 = vrot.slane %v9011_v55, 7 }
  0xf1   :  { %v8925_v51 = vpop.f32.mrb[8].mxu1  ;;  %v2539_v25 = vrot.slane %v7650_v27, 7  ;;  %v9059_v27 = vld [vmem:[%s11003_s0 + $0x50] sm:$0xff] }
  0xf2   :  { %v8933_v5 = vpop.f32.mrb[9].mxu1  ;;  %5966 = vmatmul.mubr.msk.f32.gmra.mrb[28].mxu1 %vm116_vm2, %v8438_v46  ;;  %v6113_v46 = vld [vmem:[%s11002_s1 + $0x2c8] sm:$0xf] }
  0xf3   :  { %6072 = vmatmul.mubr.msk.f32.vlgmr.msra.gmra.mrb[0].mxu0 %vm116_vm2, %v8922_v12  ;;  %1722 = vmatprep.mubr.f32.mxu1 %v7656_v3 }
  0xf4   :  { %2657 = vmatprep.mubr.f32.mxu0 %v7656_v3  ;;  %6874 = vmatpush1.bf16.msra.mxu0 %v6873_v14  ;;  %v6040_v14 = vld [vmem:[%s11004_s2 + $0x1f0] sm:$0xff] }
  0xf5   :  { %v8945_v2 = vpop.f32.mrb[10].mxu1  ;;  %6876 = vmatprep.subr.bf16.mxu0 %v6875_v60  ;;  %v6043_v60 = vld [vmem:[%s11004_s2 + $0x208] sm:$0xff] }
  0xf6   :  { %v8947_v13 = vpop.f32.mrb[11].mxu1  ;;  %5967 = vmatmul.mubr.msk.f32.gmra.mrb[30].mxu1 %vm116_vm2, %v8449_v50  ;;  %v6112_v50 = vld [vmem:[%s11002_s1 + $0x2c0] sm:$0xf] }
  0xf7   :  { %6073 = vmatmul.mubr.msk.f32.gmra.mrb[2].mxu0 %vm116_vm2, %v8942_v18  ;;  %1728 = vmatprep.mubr.f32.mxu1 %v7656_v3 }
  0xf8   :  { %2663 = vmatprep.mubr.f32.mxu0 %v7656_v3  ;;  %6878 = vmatpush1.bf16.msra.mxu0 %v6877_v16 }
  0xf9   :  { %v8962_v21 = vpop.f32.mrb[12].mxu1  ;;  %6114 = vmatprep.subr.msk.mxu0 %vm137_vm0, %v6113_v46  ;;  %v6851_v46 = vpack.c.bf16 %v6045_v20, %v6043_v60  ;;  %v6046_v20 = vld [vmem:[%s11004_s2 + $0x220] sm:$0xf] }
  0xfa   :  { %v8968_v6 = vpop.f32.mrb[13].mxu1  ;;  %5968 = vmatmul.mubr.msk.f32.gmra.mrb[32].mxu1 %vm116_vm2, %v8471_v1  ;;  %v8988_v1 = vsel %vm2527_vm7, %v2535_v32, %v2537_v40  ;;  %v6042_v32 = vld [vmem:[%s11004_s2 + $0x200] sm:$0xff] }
  0xfb   :  { %6074 = vmatmul.mubr.msk.f32.gmra.mrb[4].mxu0 %vm116_vm2, %v8959_v19  ;;  %1734 = vmatprep.mubr.f32.mxu1 %v7656_v3 }
  0xfc   :  { %2669 = vmatprep.mubr.f32.mxu0 %v7656_v3  ;;  %6115 = vmatpush1.msk.msra.mxu0 %vm137_vm0, %v6112_v50  ;;  %v6044_v50 = vld [vmem:[%s11004_s2 + $0x210] sm:$0xff] }
  0xfe   :  { %5969 = vmatmul.mubr.msk.f32.gmra.mrb[34].mxu1 %vm116_vm2, %v8487_v11  ;;  %v2540_v11 = vrot.slane %v8996_v49, 7 }
  0xff   :  { %6075 = vmatmul.mubr.msk.f32.gmra.mrb[6].mxu0 %vm116_vm2, %v8977_v29  ;;  %1740 = vmatprep.mubr.f32.mxu1 %v7656_v3 }
 0x100   :  { %2675 = vmatprep.mubr.f32.mxu0 %v7656_v3  ;;  %v9006_v59 = vsel %vm2527_vm7, %v2539_v25, %v2540_v11  ;;  %v9033_v9 = vsel %vm2527_vm7, %v2540_v11, %v2542_v41  ;;  %v2546_v25 = vrot.slane %v9059_v27, 7  ;;  %v6853_v11 = vpack.c.bf16 %v6044_v50, %v6042_v32 }
 0x102   :  { %5970 = vmatmul.mubr.msk.f32.gmra.mrb[36].mxu1 %vm116_vm2, %v8506_v52  ;;  %v6038_v52 = vld [vmem:[%s11004_s2 + $0x1e0] sm:$0xff] }
 0x103   :  { %6076 = vmatmul.mubr.msk.f32.gmra.mrb[8].mxu0 %vm116_vm2, %v8988_v1  ;;  %1746 = vmatprep.mubr.f32.mxu1 %v7656_v3  ;;  %v6849_v58 = vpack.c.bf16 %v6040_v14, %v6038_v52  ;;  %v6085_v52 = vld [vmem:[%s11004_s2 + $0x248] sm:$0xff]  ;;  %v9083_v14 = vld [vmem:[%s11003_s0 + $0x58] sm:$0xff] }
 0x104   :  { %2681 = vmatprep.mubr.f32.mxu0 %v7656_v3  ;;  %v2548_v60 = vrot.slane %v9083_v14, 7 }
 0x106   :  { %5971 = vmatmul.mubr.msk.f32.gmra.mrb[38].mxu1 %vm116_vm2, %v8520_v33  ;;  %v9038_v33 = vld [vmem:[%s11003_s0 + $0x48] sm:$0xff] }
 0x107   :  { %6077 = vmatmul.mubr.msk.f32.gmra.mrb[10].mxu0 %vm116_vm2, %v9006_v59  ;;  %2059 = vmatprep.mubr.f32.mxu1 %v7656_v3  ;;  %v2544_v16 = vrot.slane %v9038_v33, 7 }
 0x108   :  { %2687 = vmatprep.mubr.f32.mxu0 %v7656_v3 }
 0x109   :  { %v9054_v40 = vsel %vm2527_vm7, %v2542_v41, %v2544_v16  ;;  %v6083_v41 = vld [vmem:[%s11004_s2 + $0x238] sm:$0xff] }
 0x10a   :  { %6006 = vmatmul.mubr.msk.f32.vlgmr.msra.gmra.mrb[20].mxu1 %vm116_vm2, %v8544_v47  ;;  %v6047_v47 = vld [vmem:[%s11004_s2 + $0x228] sm:$0xf] }
 0x10b   :  { %6078 = vmatmul.mubr.msk.f32.gmra.mrb[12].mxu0 %vm116_vm2, %v9033_v9  ;;  %6850 = vmatpush1.bf16.msra.mxu1 %v6849_v58  ;;  %v6863_v58 = vpack.c.bf16 %v6085_v52, %v6083_v41  ;;  %v6129_v41 = vld [vmem:[%s11004_s2 + $0x298] sm:$0xff]  ;;  %v6090_v52 = vld [vmem:[%s11004_s2 + $0x270] sm:$0xf] }
 0x10c   :  { %2065 = vmatprep.mubr.f32.mxu1 %v7656_v3  ;;  %2693 = vmatprep.mubr.f32.mxu0 %v7656_v3 }
 0x10d   :  { %6852 = vmatprep.subr.bf16.mxu1 %v6851_v46  ;;  %v6088_v46 = vld [vmem:[%s11004_s2 + $0x260] sm:$0xff] }
 0x10e   :  { %6007 = vmatmul.mubr.msk.f32.gmra.mrb[22].mxu1 %vm116_vm2, %v8560_v35  ;;  %v9078_v35 = vsel %vm2527_vm7, %v2544_v16, %v2546_v25  ;;  %v9097_v16 = vsel %vm2527_vm7, %v2546_v25, %v2548_v60 }
 0x10f   :  { %6079 = vmatmul.mubr.msk.f32.gmra.mrb[14].mxu0 %vm116_vm2, %v9054_v40  ;;  %2071 = vmatprep.mubr.f32.mxu1 %v7656_v3 }
 0x110   :  { %2699 = vmatprep.mubr.f32.mxu0 %v7656_v3  ;;  %6854 = vmatpush1.bf16.msra.mxu1 %v6853_v11 }
 0x111   :  { %6048 = vmatprep.subr.msk.mxu1 %vm137_vm0, %v6047_v47  ;;  %v6127_v47 = vld [vmem:[%s11004_s2 + $0x288] sm:$0xff] }
 0x112   :  { %6008 = vmatmul.mubr.msk.f32.gmra.mrb[24].mxu1 %vm116_vm2, %v8579_v44  ;;  %v6082_v44 = vld [vmem:[%s11004_s2 + $0x230] sm:$0xff]  ;;  %v6879_v60 = vpack.c.bf16 %v6129_v41, %v6127_v47  ;;  %v6184_v47 = vld [vmem:[%s11006_s5 + $0xd8] sm:$0xff] }
 0x113   :  { %6080 = vmatmul.mubr.msk.f32.gmra.mrb[16].mxu0 %vm116_vm2, %v9078_v35  ;;  %2077 = vmatprep.mubr.f32.mxu1 %v7656_v3 }
 0x114   :  { %2705 = vmatprep.mubr.f32.mxu0 %v7656_v3  ;;  %6049 = vmatpush1.msk.msra.mxu1 %vm137_vm0, %v6046_v20 }
 0x115   :  { %6864 = vmatprep.subr.bf16.mxu1 %v6863_v58  ;;  %v6132_v58 = vld [vmem:[%s11004_s2 + $0x2b0] sm:$0xff] }
 0x116   :  { %6009 = vmatmul.mubr.msk.f32.gmra.mrb[26].mxu1 %vm116_vm2, %v8593_v57  ;;  %v6084_v57 = vld [vmem:[%s11004_s2 + $0x240] sm:$0xff] }
 0x117   :  { %6081 = vmatmul.mubr.msk.f32.gmra.mrb[18].mxu0 %vm116_vm2, %v9097_v16  ;;  %2083 = vmatprep.mubr.f32.mxu1 %v7656_v3 }
 0x118   :  { %2979 = vmatprep.mubr.f32.mxu0 %v7656_v3 }
 0x11a   :  { %6010 = vmatmul.mubr.msk.f32.gmra.mrb[28].mxu1 %vm116_vm2, %v8604_v15  ;;  %v6087_v15 = vld [vmem:[%s11004_s2 + $0x258] sm:$0xff] }
 0x11b   :  { %6116 = vmatmul.mubr.msk.f32.vlgmr.msra.gmra.mrb[0].mxu0 %vm116_vm2, %v8697_v48  ;;  %2089 = vmatprep.mubr.f32.mxu1 %v7656_v3 }
 0x11c   :  { %2985 = vmatprep.mubr.f32.mxu0 %v7656_v3 }
 0x11e   :  { %6011 = vmatmul.mubr.msk.f32.gmra.mrb[30].mxu1 %vm116_vm2, %v8615_v24  ;;  %v6089_v24 = vld [vmem:[%s11004_s2 + $0x268] sm:$0xff] }
 0x11f   :  { %6117 = vmatmul.mubr.msk.f32.gmra.mrb[2].mxu0 %vm116_vm2, %v8725_v62  ;;  %2095 = vmatprep.mubr.f32.mxu1 %v7656_v3 }
 0x120   :  { %2991 = vmatprep.mubr.f32.mxu0 %v7656_v3 }
 0x122   :  { %6012 = vmatmul.mubr.msk.f32.gmra.mrb[32].mxu1 %vm116_vm2, %v8637_v22  ;;  %v6865_v22 = vpack.c.bf16 %v6084_v57, %v6082_v44  ;;  %v6180_v57 = vld [vmem:[%s11006_s5 + $0xb8] sm:$0xff] }
 0x123   :  { %6118 = vmatmul.mubr.msk.f32.gmra.mrb[4].mxu0 %vm116_vm2, %v8746_v8  ;;  %2101 = vmatprep.mubr.f32.mxu1 %v7656_v3 }
 0x124   :  { %2997 = vmatprep.mubr.f32.mxu0 %v7656_v3 }
 0x126   :  { %6013 = vmatmul.mubr.msk.f32.gmra.mrb[34].mxu1 %vm116_vm2, %v8653_v61 }
 0x127   :  { %6119 = vmatmul.mubr.msk.f32.gmra.mrb[6].mxu0 %vm116_vm2, %v8770_v34  ;;  %2107 = vmatprep.mubr.f32.mxu1 %v7656_v3 }
 0x128   :  { %3003 = vmatprep.mubr.f32.mxu0 %v7656_v3 }
 0x12a   :  { %6014 = vmatmul.mubr.msk.f32.gmra.mrb[36].mxu1 %vm116_vm2, %v8672_v37  ;;  %v6867_v37 = vpack.c.bf16 %v6089_v24, %v6087_v15 }
 0x12b   :  { %6120 = vmatmul.mubr.msk.f32.gmra.mrb[8].mxu0 %vm116_vm2, %v8789_v28  ;;  %2113 = vmatprep.mubr.f32.mxu1 %v7656_v3 }
 0x12c   :  { %3009 = vmatprep.mubr.f32.mxu0 %v7656_v3 }
 0x12e   :  { %6015 = vmatmul.mubr.msk.f32.gmra.mrb[38].mxu1 %vm116_vm2, %v8686_v56  ;;  %v6086_v56 = vld [vmem:[%s11004_s2 + $0x250] sm:$0xff] }
 0x12f   :  { %6121 = vmatmul.mubr.msk.f32.gmra.mrb[10].mxu0 %vm116_vm2, %v8996_v49  ;;  %2426 = vmatprep.mubr.f32.mxu1 %v7656_v3  ;;  %v6869_v50 = vpack.c.bf16 %v6088_v46, %v6086_v56  ;;  %v6156_v56 = vld [vmem:[%s11005_s4 + $0xd0] sm:$0xff]  ;;  %v6157_v46 = vld [vmem:[%s11005_s4 + $0xd8] sm:$0xff] }
 0x130   :  { %3015 = vmatprep.mubr.f32.mxu0 %v7656_v3 }
 0x131   :  { %v9154_v61 = vpop.f32.mrb[14].mxu1 }
 0x132   :  { %v9162_v32 = vpop.f32.mrb[15].mxu1  ;;  %6050 = vmatmul.mubr.msk.f32.vlgmr.msra.gmra.mrb[20].mxu1 %vm116_vm2, %v8720_v39  ;;  %v6091_v39 = vld [vmem:[%s11004_s2 + $0x278] sm:$0xf] }
 0x133   :  { %6122 = vmatmul.mubr.msk.f32.gmra.mrb[12].mxu0 %vm116_vm2, %v9011_v55  ;;  %6866 = vmatpush1.bf16.msra.mxu1 %v6865_v22 }
 0x134   :  { %2432 = vmatprep.mubr.f32.mxu1 %v7656_v3  ;;  %3021 = vmatprep.mubr.f32.mxu0 %v7656_v3 }
 0x135   :  { %v9170_v25 = vpop.f32.mrb[16].mxu1  ;;  %6868 = vmatprep.subr.bf16.mxu1 %v6867_v37  ;;  %v6182_v37 = vld [vmem:[%s11006_s5 + $0xc8] sm:$0xff] }
 0x136   :  { %v9172_v11 = vpop.f32.mrb[17].mxu1  ;;  %6051 = vmatmul.mubr.msk.f32.gmra.mrb[22].mxu1 %vm116_vm2, %v8741_v38 }
 0x137   :  { %6123 = vmatmul.mubr.msk.f32.gmra.mrb[14].mxu0 %vm116_vm2, %v9038_v33  ;;  %2438 = vmatprep.mubr.f32.mxu1 %v7656_v3 }
 0x138   :  { %3027 = vmatprep.mubr.f32.mxu0 %v7656_v3  ;;  %6870 = vmatpush1.bf16.msra.mxu1 %v6869_v50  ;;  %v6183_v50 = vld [vmem:[%s11006_s5 + $0xd0] sm:$0xff] }
 0x139   :  { %v9189_v38 = vpop.f32.mrb[18].mxu1  ;;  %6092 = vmatprep.subr.msk.mxu1 %vm137_vm0, %v6091_v39  ;;  %v6900_v39 = vpack.c.bf16 %v6157_v46, %v6156_v56  ;;  %v6928_v41 = vpack.c.bf16 %v6184_v47, %v6183_v50 }
 0x13a   :  { %v9195_v20 = vpop.f32.mrb[19].mxu1  ;;  %6052 = vmatmul.mubr.msk.f32.gmra.mrb[24].mxu1 %vm116_vm2, %v8765_v26  ;;  %v6126_v26 = vld [vmem:[%s11004_s2 + $0x280] sm:$0xff] }
 0x13b   :  { %6124 = vmatmul.mubr.msk.f32.gmra.mrb[16].mxu0 %vm116_vm2, %v9059_v27  ;;  %2444 = vmatprep.mubr.f32.mxu1 %v7656_v3 }
 0x13c   :  { %3033 = vmatprep.mubr.f32.mxu0 %v7656_v3  ;;  %6093 = vmatpush1.msk.msra.mxu1 %vm137_vm0, %v6090_v52  ;;  %v6158_v52 = vld [vmem:[%s11005_s4 + $0xe0] sm:$0xff] }
 0x13d   :  { %6880 = vmatprep.subr.bf16.mxu1 %v6879_v60  ;;  %v6159_v60 = vld [vmem:[%s11005_s4 + $0xe8] sm:$0xff] }
 0x13e   :  { %6053 = vmatmul.mubr.msk.f32.gmra.mrb[26].mxu1 %vm116_vm2, %v8784_v30  ;;  %v6128_v30 = vld [vmem:[%s11004_s2 + $0x290] sm:$0xff] }
 0x13f   :  { %6125 = vmatmul.mubr.msk.f32.gmra.mrb[18].mxu0 %vm116_vm2, %v9083_v14  ;;  %2450 = vmatprep.mubr.f32.mxu1 %v7656_v3 }
 0x142   :  { %6054 = vmatmul.mubr.msk.f32.gmra.mrb[28].mxu1 %vm116_vm2, %v8800_v31  ;;  %v6131_v31 = vld [vmem:[%s11004_s2 + $0x2a8] sm:$0xff] }
 0x143   :  { %2456 = vmatprep.mubr.f32.mxu1 %v7656_v3 }
 0x146   :  { %6055 = vmatmul.mubr.msk.f32.gmra.mrb[30].mxu1 %vm116_vm2, %v8811_v43  ;;  %v6133_v43 = vld [vmem:[%s11004_s2 + $0x2b8] sm:$0xff] }
 0x147   :  { %2462 = vmatprep.mubr.f32.mxu1 %v7656_v3 }
 0x14a   :  { %6056 = vmatmul.mubr.msk.f32.gmra.mrb[32].mxu1 %vm116_vm2, %v8833_v7  ;;  %v6881_v7 = vpack.c.bf16 %v6128_v30, %v6126_v26  ;;  %v6185_v26 = vld [vmem:[%s11006_s5 + $0xe0] sm:$0xff]  ;;  %v6903_v30 = vpack.c.bf16 %v6159_v60, %v6158_v52 }
 0x14b   :  { %2468 = vmatprep.mubr.f32.mxu1 %v7656_v3 }
 0x14e   :  { %6057 = vmatmul.mubr.msk.f32.gmra.mrb[34].mxu1 %vm116_vm2, %v8853_v23  ;;  %v6883_v23 = vpack.c.bf16 %v6133_v43, %v6131_v31  ;;  %v6186_v31 = vld [vmem:[%s11006_s5 + $0xe8] sm:$0xff] }
 0x14f   :  { %2474 = vmatprep.mubr.f32.mxu1 %v7656_v3  ;;  %v6931_v43 = vpack.c.bf16 %v6186_v31, %v6185_v26 }
 0x152   :  { %6058 = vmatmul.mubr.msk.f32.gmra.mrb[36].mxu1 %vm116_vm2, %v8876_v17  ;;  %v6130_v17 = vld [vmem:[%s11004_s2 + $0x2a0] sm:$0xff] }
 0x153   :  { %2480 = vmatprep.mubr.f32.mxu1 %v7656_v3  ;;  %v6885_v44 = vpack.c.bf16 %v6132_v58, %v6130_v17  ;;  %v6187_v17 = vld [vmem:[%s11006_s5 + $0xf0] sm:$0xff] }
 0x156   :  { %6059 = vmatmul.mubr.msk.f32.gmra.mrb[38].mxu1 %vm116_vm2, %v8894_v45  ;;  %v6135_v45 = vld [vmem:[%s11004_s2 + $0x2c8] sm:$0xf] }
 0x157   :  { %2793 = vmatprep.mubr.f32.mxu1 %v7656_v3 }
 0x15a   :  { %6094 = vmatmul.mubr.msk.f32.vlgmr.msra.gmra.mrb[20].mxu1 %vm116_vm2, %v8922_v12  ;;  %v6134_v12 = vld [vmem:[%s11004_s2 + $0x2c0] sm:$0xf] }
 0x15b   :  { %6882 = vmatpush1.bf16.msra.mxu1 %v6881_v7  ;;  %2799 = vmatprep.mubr.f32.mxu1 %v7656_v3  ;;  %v6160_v7 = vld [vmem:[%s11005_s4 + $0xf0] sm:$0xff] }
 0x15c   :  { %6884 = vmatprep.subr.bf16.mxu1 %v6883_v23  ;;  %v6161_v23 = vld [vmem:[%s11005_s4 + $0xf8] sm:$0xff] }
 0x15d   :  { %v6906_v58 = vpack.c.bf16 %v6161_v23, %v6160_v7  ;;  %v3224_v23 = vlaneseq }
 0x15e   :  { %6095 = vmatmul.mubr.msk.f32.gmra.mrb[22].mxu1 %vm116_vm2, %v8942_v18  ;;  %v6176_v18 = vld [vmem:[%s11006_s5 + $0x98] sm:$0xff] }
 0x15f   :  { %2805 = vmatprep.mubr.f32.mxu1 %v7656_v3  ;;  %6886 = vmatpush1.bf16.msra.mxu1 %v6885_v44  ;;  %v6188_v44 = vld [vmem:[%s11006_s5 + $0xf8] sm:$0xff] }
 0x160   :  { %6136 = vmatprep.subr.msk.mxu1 %vm137_vm0, %v6135_v45  ;;  %v6934_v45 = vpack.c.bf16 %v6188_v44, %v6187_v17  ;;  %v3225_v17 = vshrl.u32 %v3224_v23, 7 }
 0x162   :  { %6096 = vmatmul.mubr.msk.f32.gmra.mrb[24].mxu1 %vm116_vm2, %v8959_v19  ;;  %v6150_v19 = vld [vmem:[%s11005_s4 + $0xa0] sm:$0xff] }
 0x163   :  { %2811 = vmatprep.mubr.f32.mxu1 %v7656_v3  ;;  %6137 = vmatpush1.msk.msra.mxu1 %vm137_vm0, %v6134_v12  ;;  %v6162_v12 = vld [vmem:[%s11005_s4 + $0x100] sm:$0xff] }
 0x166   :  { %6097 = vmatmul.mubr.msk.f32.gmra.mrb[26].mxu1 %vm116_vm2, %v8977_v29  ;;  %v6151_v29 = vld [vmem:[%s11005_s4 + $0xa8] sm:$0xff] }
 0x167   :  { %2817 = vmatprep.mubr.f32.mxu1 %v7656_v3 }
 0x16a   :  { %6098 = vmatmul.mubr.msk.f32.gmra.mrb[28].mxu1 %vm116_vm2, %v8988_v1 }
 0x16b   :  { %2823 = vmatprep.mubr.f32.mxu1 %v7656_v3 }
 0x16e   :  { %6099 = vmatmul.mubr.msk.f32.gmra.mrb[30].mxu1 %vm116_vm2, %v9006_v59  ;;  %v6178_v59 = vld [vmem:[%s11006_s5 + $0xa8] sm:$0xff] }
 0x16f   :  { %2829 = vmatprep.mubr.f32.mxu1 %v7656_v3 }
 0x172   :  { %6100 = vmatmul.mubr.msk.f32.gmra.mrb[32].mxu1 %vm116_vm2, %v9033_v9 }
 0x173   :  { %2835 = vmatprep.mubr.f32.mxu1 %v7656_v3 }
 0x176   :  { %6101 = vmatmul.mubr.msk.f32.gmra.mrb[34].mxu1 %vm116_vm2, %v9054_v40  ;;  %v6152_v40 = vld [vmem:[%s11005_s4 + $0xb0] sm:$0xff] }
 0x177   :  { %2841 = vmatprep.mubr.f32.mxu1 %v7656_v3 }
 0x17a   :  { %6102 = vmatmul.mubr.msk.f32.gmra.mrb[36].mxu1 %vm116_vm2, %v9078_v35  ;;  %v6153_v35 = vld [vmem:[%s11005_s4 + $0xb8] sm:$0xff] }
 0x17b   :  { %2847 = vmatprep.mubr.f32.mxu1 %v7656_v3  ;;  %v6894_v15 = vpack.c.bf16 %v6153_v35, %v6152_v40 }
 0x17e   :  { %6103 = vmatmul.mubr.msk.f32.gmra.mrb[38].mxu1 %vm116_vm2, %v9097_v16  ;;  %v6179_v16 = vld [vmem:[%s11006_s5 + $0xb0] sm:$0xff] }
 0x17f   :  { %3121 = vmatprep.mubr.f32.mxu1 %v7656_v3  ;;  %v6922_v24 = vpack.c.bf16 %v6180_v57, %v6179_v16 }
 0x182   :  { %6138 = vmatmul.mubr.msk.f32.vlgmr.msra.gmra.mrb[20].mxu1 %vm116_vm2, %v8697_v48  ;;  %v11014_v48 = vmov 0.0|0.0  }
 0x183   :  { %3127 = vmatprep.mubr.f32.mxu1 %v7656_v3  ;;  %6887 = vmatprep.subr.bf16.mxu0 %v11014_v48 }
 0x184   :  { %6915 = vmatprep.subr.bf16.mxu1 %v11014_v48 }
 0x186   :  { %6139 = vmatmul.mubr.msk.f32.gmra.mrb[22].mxu1 %vm116_vm2, %v8725_v62  ;;  %v6148_v62 = vld [vmem:[%s11005_s4 + $0x90] sm:$0xff] }
 0x187   :  { %3133 = vmatprep.mubr.f32.mxu1 %v7656_v3 }
 0x18a   :  { %6140 = vmatmul.mubr.msk.f32.gmra.mrb[24].mxu1 %vm116_vm2, %v8746_v8  ;;  %v6149_v8 = vld [vmem:[%s11005_s4 + $0x98] sm:$0xff] }
 0x18b   :  { %3139 = vmatprep.mubr.f32.mxu1 %v7656_v3 }
 0x18e   :  { %6141 = vmatmul.mubr.msk.f32.gmra.mrb[26].mxu1 %vm116_vm2, %v8770_v34  ;;  %v6175_v34 = vld [vmem:[%s11006_s5 + $0x90] sm:$0xff] }
 0x18f   :  { %3145 = vmatprep.mubr.f32.mxu1 %v7656_v3  ;;  %v6916_v1 = vpack.c.bf16 %v6176_v18, %v6175_v34 }
 0x191   :  { %6917 = vmatpush1.bf16.msra.mxu1 %v6916_v1  ;;  %v6191_v1 = vld [vmem:[%s11006_s5 + $0x110] sm:$0xff] }
 0x192   :  { %6142 = vmatmul.mubr.msk.f32.gmra.mrb[28].mxu1 %vm116_vm2, %v8789_v28  ;;  %v6888_v28 = vpack.c.bf16 %v6149_v8, %v6148_v62  ;;  %6918 = vmatprep.subr.bf16.mxu1 %v11014_v48  ;;  %v6163_v62 = vld [vmem:[%s11005_s4 + $0x108] sm:$0xff]  ;;  %v6189_v8 = vld [vmem:[%s11006_s5 + $0x100] sm:$0xff] }
 0x193   :  { %3151 = vmatprep.mubr.f32.mxu1 %v7656_v3  ;;  %v6909_v34 = vpack.c.bf16 %v6163_v62, %v6162_v12  ;;  %v9518_v12 = vld [vmem:[%s11006_s5] sm:$0xff]  ;;  %v9523_v62 = vld [vmem:[%s11006_s5 + $0x8] sm:$0xff] }
 0x194   :  { %6889 = vmatpush1.bf16.msra.mxu0 %v6888_v28  ;;  %v6190_v28 = vld [vmem:[%s11006_s5 + $0x108] sm:$0xff] }
 0x195   :  { %6890 = vmatprep.subr.bf16.mxu0 %v11014_v48  ;;  %v6937_v18 = vpack.c.bf16 %v6190_v28, %v6189_v8  ;;  %v9532_v28 = vld [vmem:[%s11005_s4 + $0x10] sm:$0xff] }
 0x196   :  { %6143 = vmatmul.mubr.msk.f32.gmra.mrb[30].mxu1 %vm116_vm2, %v8996_v49  ;;  %v6177_v49 = vld [vmem:[%s11006_s5 + $0xa0] sm:$0xff] }
 0x197   :  { %3157 = vmatprep.mubr.f32.mxu1 %v7656_v3  ;;  %v6919_v9 = vpack.c.bf16 %v6178_v59, %v6177_v49  ;;  %v6192_v59 = vld [vmem:[%s11006_s5 + $0x118] sm:$0xf] }
 0x199   :  { %6920 = vmatpush1.bf16.msra.mxu1 %v6919_v9  ;;  %v6940_v9 = vpack.c.bf16 %v6192_v59, %v6191_v1  ;;  %v9550_v1 = vld [vmem:[%s11006_s5 + $0x18] sm:$0xff]  ;;  %v9560_v59 = vld [vmem:[%s11005_s4 + $0x28] sm:$0xff] }
 0x19a   :  { %6144 = vmatmul.mubr.msk.f32.gmra.mrb[32].mxu1 %vm116_vm2, %v9011_v55  ;;  %v6891_v55 = vpack.c.bf16 %v6151_v29, %v6150_v19  ;;  %6921 = vmatprep.subr.bf16.mxu1 %v11014_v48  ;;  %v6164_v19 = vld [vmem:[%s11005_s4 + $0x110] sm:$0xff]  ;;  %v6165_v29 = vld [vmem:[%s11005_s4 + $0x118] sm:$0xf] }
 0x19b   :  { %3163 = vmatprep.mubr.f32.mxu1 %v7656_v3  ;;  %v6912_v49 = vpack.c.bf16 %v6165_v29, %v6164_v19  ;;  %v9542_v19 = vld [vmem:[%s11006_s5 + $0x10] sm:$0xff] }
 0x19c   :  { %6892 = vmatpush1.bf16.msra.mxu0 %v6891_v55  ;;  %v11025_v55 = vmov 0 }
 0x19d   :  { %6893 = vmatprep.subr.bf16.mxu0 %v11014_v48  ;;  %6923 = vmatpush1.bf16.msra.mxu1 %v6922_v24  ;;  %v11026_v55 = vsel %vm9439_vm9, 4294967295, %v11025_v55 }
 0x19e   :  { %6145 = vmatmul.mubr.msk.f32.gmra.mrb[34].mxu1 %vm116_vm2, %v9038_v33  ;;  %6924 = vmatprep.subr.bf16.mxu1 %v11014_v48  ;;  %v6154_v33 = vld [vmem:[%s11005_s4 + $0xc0] sm:$0xff]  ;;  %11027 = vst [vmem:[#allocation2_spill] sm:$0xff] %v11026_v55 }
 0x19f   :  { %3169 = vmatprep.mubr.f32.mxu1 %v7656_v3 }
 0x1a0   :  { %6895 = vmatpush1.bf16.msra.mxu0 %v6894_v15 }
 0x1a1   :  { %6896 = vmatprep.subr.bf16.mxu0 %v11014_v48 }
 0x1a2   :  { %6146 = vmatmul.mubr.msk.f32.gmra.mrb[36].mxu1 %vm116_vm2, %v9059_v27  ;;  %v6155_v27 = vld [vmem:[%s11005_s4 + $0xc8] sm:$0xff] }
 0x1a3   :  { %3175 = vmatprep.mubr.f32.mxu1 %v7656_v3  ;;  %v6181_v3 = vld [vmem:[%s11006_s5 + $0xc0] sm:$0xff]  ;;  %v6897_v22 = vpack.c.bf16 %v6155_v27, %v6154_v33 }
 0x1a5   :  { %6898 = vmatpush1.bf16.msra.mxu0 %v6897_v22 }
 0x1a6   :  { %6147 = vmatmul.mubr.msk.f32.gmra.mrb[38].mxu1 %vm116_vm2, %v9083_v14  ;;  %v6925_v14 = vpack.c.bf16 %v6182_v37, %v6181_v3  ;;  %6899 = vmatprep.subr.bf16.mxu0 %v11014_v48 }
 0x1a8   :  { %6926 = vmatpush1.bf16.msra.mxu1 %v6925_v14 }
 0x1a9   :  { %6927 = vmatprep.subr.bf16.mxu1 %v11014_v48  ;;  %6901 = vmatpush1.bf16.msra.mxu0 %v6900_v39 }
 0x1aa   :  { %6902 = vmatprep.subr.bf16.mxu0 %v11014_v48 }
 0x1ac   :  { %6929 = vmatpush1.bf16.msra.mxu1 %v6928_v41 }
 0x1ad   :  { %6930 = vmatprep.subr.bf16.mxu1 %v11014_v48  ;;  %6904 = vmatpush1.bf16.msra.mxu0 %v6903_v30 }
 0x1ae   :  { %6905 = vmatprep.subr.bf16.mxu0 %v11014_v48 }
 0x1b0   :  { %6932 = vmatpush1.bf16.msra.mxu1 %v6931_v43 }
 0x1b1   :  { %6933 = vmatprep.subr.bf16.mxu1 %v11014_v48  ;;  %6907 = vmatpush1.bf16.msra.mxu0 %v6906_v58  ;;  %v3230_v58 = vsub.s32 1, %v3225_v17 }
 0x1b2   :  { %6908 = vmatprep.subr.bf16.mxu0 %v11014_v48 }
 0x1b4   :  { %6935 = vmatpush1.bf16.msra.mxu1 %v6934_v45  ;;  %v9513_v45 = vld [vmem:[%s11005_s4 + $0x8] sm:$0xff] }
 0x1b5   :  { %6936 = vmatprep.subr.bf16.mxu1 %v11014_v48  ;;  %6910 = vmatpush1.bf16.msra.mxu0 %v6909_v34 }
 0x1b6   :  { %6911 = vmatprep.subr.bf16.mxu0 %v11014_v48 }
 0x1b8   :  { %6938 = vmatpush1.bf16.msra.mxu1 %v6937_v18  ;;  %v9537_v18 = vld [vmem:[%s11005_s4 + $0x18] sm:$0xff] }
 0x1b9   :  { %6939 = vmatprep.subr.bf16.mxu1 %v11014_v48  ;;  %6914 = vmatpush1.bf16.msk.msra.mxu0 %vm9439_vm9, %v6912_v49  ;;  %v9555_v49 = vld [vmem:[%s11005_s4 + $0x20] sm:$0xff] }
 0x1ba   :  { %6943 = vmatprep.subr.bf16.mxu0 %v11014_v48 }
 0x1bc   :  { %6942 = vmatpush1.bf16.msk.msra.mxu1 %vm9439_vm9, %v6940_v9 }
 0x1bd   :  { %6971 = vmatprep.subr.bf16.mxu1 %v11014_v48 }
 0x1ee   :  { %v2981_v40 = vpop.f32.mrb[0].mxu0 }
 0x1ef   :  { %v7305_v35 = vadd.f32 %v2981_v40, %v8836_v63  ;;  %v2983_v16 = vpop.f32.mrb[1].mxu0 }
 0x1f0   :  { %v7306_v57 = vadd.f32 %v2983_v16, %v8844_v53  ;;  %v9576_v16 = vld [vmem:[%s11006_s5 + $0x28] sm:$0xff] }
 0x1f2   :  { %v2987_v15 = vpop.f32.mrb[2].mxu0 }
 0x1f3   :  { %v7307_v24 = vadd.f32 %v2987_v15, %v8856_v0  ;;  %v2989_v33 = vpop.f32.mrb[3].mxu0 }
 0x1f4   :  { %v7308_v27 = vadd.f32 %v2989_v33, %v8858_v42 }
 0x1f6   :  { %v2993_v3 = vpop.f32.mrb[4].mxu0 }
 0x1f7   :  { %v7309_v22 = vadd.f32 %v2993_v3, %v8879_v10  ;;  %v2995_v37 = vpop.f32.mrb[5].mxu0  ;;  %v9592_v3 = vld [vmem:[%s11005_s4 + $0x38] sm:$0xff] }
 0x1f8   :  { %v7310_v14 = vadd.f32 %v2995_v37, %v8885_v36 }
 0x1fa   :  { %v2999_v56 = vpop.f32.mrb[6].mxu0 }
 0x1fb   :  { %v9456_v46 = vadd.f32 %v2999_v56, %v8899_v4  ;;  %v3001_v63 = vpop.f32.mrb[7].mxu0 }
 0x1fc   :  { %v9459_v50 = vadd.f32 %v3001_v63, %v8907_v54 }
 0x1fe   :  { %v3005_v53 = vpop.f32.mrb[8].mxu0 }
 0x1ff   :  { %v9462_v0 = vadd.f32 %v3005_v53, %v8925_v51  ;;  %v3007_v39 = vpop.f32.mrb[9].mxu0  ;;  %v9602_v53 = vld [vmem:[%s11006_s5 + $0x30] sm:$0xff] }
 0x200   :  { %v9465_v42 = vadd.f32 %v3007_v39, %v8933_v5  ;;  %v9607_v39 = vld [vmem:[%s11006_s5 + $0x38] sm:$0xff] }
 0x202   :  { %v3011_v10 = vpop.f32.mrb[10].mxu0 }
 0x203   :  { %v9468_v47 = vadd.f32 %v3011_v10, %v8945_v2  ;;  %v3013_v36 = vpop.f32.mrb[11].mxu0 }
 0x204   :  { %v9471_v4 = vadd.f32 %v3013_v36, %v8947_v13 }
 0x206   :  { %v3017_v41 = vpop.f32.mrb[12].mxu0 }
 0x207   :  { %v9474_v54 = vadd.f32 %v3017_v41, %v8962_v21  ;;  %v3019_v52 = vpop.f32.mrb[13].mxu0 }
 0x208   :  { %v9477_v51 = vadd.f32 %v3019_v52, %v8968_v6 }
 0x20a   :  { %v3023_v60 = vpop.f32.mrb[14].mxu0 }
 0x20b   :  { %v9480_v5 = vadd.f32 %v3023_v60, %v9154_v61  ;;  %v3025_v26 = vpop.f32.mrb[15].mxu0 }
 0x20c   :  { %v9483_v2 = vadd.f32 %v3025_v26, %v9162_v32  ;;  %v3226_v32 = vsub.s32 0, %v3225_v17 }
 0x20e   :  { %v3029_v30 = vpop.f32.mrb[16].mxu0 }
 0x20f   :  { %v9486_v13 = vadd.f32 %v3029_v30, %v9170_v25  ;;  %v3031_v31 = vpop.f32.mrb[17].mxu0  ;;  %v3222_v25 = vld [vmem:[%s11007_s3] sm:$0x3] }
 0x210   :  { %v9489_v21 = vadd.f32 %v3031_v31, %v9172_v11  ;;  %v9500_v44 = vrot.slane %v3222_v25, %v3226_v32  ;;  %v9502_v11 = vrot.slane %v3222_v25, %v3230_v58  ;;  %v9635_v32 = vld [vmem:[%s11005_s4 + $0x40] sm:$0xff]  ;;  %v9640_v25 = vld [vmem:[%s11005_s4 + $0x48] sm:$0xff] }
 0x212   :  { %v3035_v43 = vpop.f32.mrb[18].mxu0  ;;  %v3235_v8 = vadd.f32 %v7306_v57, %v9502_v11  ;;  %v9527_v34 = vadd.f32 %v7307_v24, %v9500_v44  ;;  %v9545_v29 = vadd.f32 %v7308_v27, %v9502_v11  ;;  %v9563_v9 = vadd.f32 %v7309_v22, %v9500_v44  ;;  %v9587_v27 = vld [vmem:[%s11005_s4 + $0x30] sm:$0xff] }
 0x213   :  { %v9492_v6 = vadd.f32 %v3035_v43, %v9189_v38  ;;  %v3037_v7 = vpop.f32.mrb[19].mxu0  ;;  %v9507_v38 = vld [vmem:[%s11005_s4] sm:$0xff]  ;;  %v9566_v40 = vadd.f32 %v7310_v14, %v9502_v11  ;;  %v9612_v36 = vadd.f32 %v9456_v46, %v9500_v44  ;;  %v9628_v46 = vadd.f32 %v9462_v0, %v9500_v44 }
 0x214   :  { %v9495_v61 = vadd.f32 %v3037_v7, %v9195_v20  ;;  %v3234_v20 = vadd.f32 %v7305_v35, %v9500_v44  ;;  %v9571_v35 = vld [vmem:[%s11006_s5 + $0x20] sm:$0xff]  ;;  %v3255_v22 = vmax.f32 %v3235_v8, 0.0  ;;  %v3256_v37 = vmax.f32 %v9527_v34, 0.0 }
 0x215   :  { %v3257_v10 = vmax.f32 %v9545_v29, 0.0  ;;  %v3258_v26 = vmax.f32 %v9563_v9, 0.0  ;;  %v3259_v30 = vmax.f32 %v9566_v40, 0.0  ;;  %v9624_v7 = vadd.f32 %v9459_v50, %v9502_v11  ;;  %v9657_v34 = vld [vmem:[%s11006_s5 + $0x40] sm:$0xff] }
 0x216   :  { %v3254_v57 = vmax.f32 %v3234_v20, 0.0  ;;  %v9644_v50 = vadd.f32 %v9465_v42, %v9502_v11  ;;  %v9648_v0 = vadd.f32 %v9468_v47, %v9500_v44  ;;  %v9652_v58 = vadd.f32 %v9471_v4, %v9502_v11  ;;  %v9662_v42 = vld [vmem:[%s11006_s5 + $0x48] sm:$0xff] }
 0x217   :  { %v3260_v29 = vmax.f32 %v9612_v36, 0.0  ;;  %v9667_v47 = vadd.f32 %v9474_v54, %v9500_v44  ;;  %v9691_v36 = vadd.f32 %v9480_v5, %v9500_v44  ;;  %v9697_v60 = vadd.f32 %v9483_v2, %v9502_v11 }
 0x218   :  { %v9702_v56 = vadd.f32 %v9486_v13, %v9500_v44 }
 0x255   :  { %v3123_v14 = vpop.f32.mrb[20].mxu1 }
 0x256   :  { %v3274_v41 = vadd.f32 %v9500_v44, %v3123_v14  ;;  %v3125_v52 = vpop.f32.mrb[21].mxu1  ;;  %v9674_v14 = vadd.f32 %v9477_v51, %v9502_v11 }
 0x257   :  { %v3275_v31 = vadd.f32 %v9502_v11, %v3125_v52 }
 0x258   :  { %v3294_v23 = vmax.f32 %v3274_v41, 0.0 }
 0x259   :  { %v3295_v20 = vmax.f32 %v3275_v31, 0.0  ;;  %v3129_v8 = vpop.f32.mrb[22].mxu1  ;;  %v3261_v31 = vmax.f32 %v9624_v7, 0.0 }
 0x25a   :  { %v9669_v4 = vmax.f32 %v3254_v57, %v3294_v23  ;;  %v3276_v9 = vadd.f32 %v9500_v44, %v3129_v8  ;;  %v3131_v40 = vpop.f32.mrb[23].mxu1 }
 0x25b   :  { %v9676_v41 = vmax.f32 %v3255_v22, %v3295_v20  ;;  %v3277_v52 = vadd.f32 %v9502_v11, %v3131_v40 }
 0x25c   :  { %v3296_v57 = vmax.f32 %v3276_v9, 0.0  ;;  %v11016_v5 = vrot.slane %v9669_v4, 1 }
 0x25d   :  { %11028 = vst [vmem:[#allocation3_spill] sm:$0xff] %v9676_v41  ;;  %v3297_v20 = vmax.f32 %v3277_v52, 0.0  ;;  %v3135_v17 = vpop.f32.mrb[24].mxu1 }
 0x25e   :  { %v3316_v7 = vmax.f32 %v3256_v37, %v3296_v57  ;;  %v3278_v9 = vadd.f32 %v9500_v44, %v3135_v17  ;;  %v3137_v43 = vpop.f32.mrb[25].mxu1  ;;  %v9707_v17 = vadd.f32 %v9489_v21, %v9502_v11  ;;  %v11017_v57 = vrot.slane %v9676_v41, 1 }
 0x25f   :  { %v3317_v63 = vmax.f32 %v3257_v10, %v3297_v20  ;;  %v3279_v52 = vadd.f32 %v9502_v11, %v3137_v43 }
 0x260   :  { %v3355_v33 = vrot.slane %v3316_v7, 1  ;;  %v3298_v37 = vmax.f32 %v3278_v9, 0.0 }
 0x261   :  { %v3358_v23 = vrot.slane %v3317_v63, 1  ;;  %v3299_v2 = vmax.f32 %v3279_v52, 0.0  ;;  %v3141_v40 = vpop.f32.mrb[26].mxu1 }
 0x262   :  { %v3356_v13 = vsel %vm82_vm1, %v11016_v5, %v3355_v33  ;;  %v3318_v43 = vmax.f32 %v3258_v26, %v3298_v37  ;;  %v3280_v20 = vadd.f32 %v9500_v44, %v3141_v40  ;;  %v3143_v48 = vpop.f32.mrb[27].mxu1 }
 0x263   :  { %v9716_v9 = vmax.f32 %v9669_v4, %v3356_v13  ;;  %v3359_v21 = vsel %vm82_vm1, %v11017_v57, %v3358_v23  ;;  %v3319_v52 = vmax.f32 %v3259_v30, %v3299_v2  ;;  %v3281_v24 = vadd.f32 %v9502_v11, %v3143_v48 }
 0x264   :  { %v9724_v15 = vmax.f32 %v9676_v41, %v3359_v21  ;;  %v3360_v26 = vrot.slane %v3318_v43, 1  ;;  %v3300_v37 = vmax.f32 %v3280_v20, 0.0  ;;  %v9730_v57 = vadd.f32 %v9492_v6, %v9500_v44 }
 0x265   :  { %11029 = vst [vmem:[#allocation4_spill] sm:$0xff] %v9716_v9  ;;  %v3362_v13 = vrot.slane %v3319_v52, 1  ;;  %v3301_v22 = vmax.f32 %v3281_v24, 0.0  ;;  %v3147_v51 = vpop.f32.mrb[28].mxu1  ;;  %v3492_v6 = vrot.slane %v9716_v9, 2 }
 0x266   :  { %v3361_v48 = vsel %vm82_vm1, %v3355_v33, %v3360_v26  ;;  %v3320_v30 = vmax.f32 %v3260_v29, %v3300_v37  ;;  %v3282_v2 = vadd.f32 %v9500_v44, %v3147_v51  ;;  %v3149_v21 = vpop.f32.mrb[29].mxu1  ;;  %v3495_v29 = vrot.slane %v9724_v15, 2 }
 0x267   :  { %v9734_v10 = vmax.f32 %v3316_v7, %v3361_v48  ;;  %v3363_v20 = vsel %vm82_vm1, %v3358_v23, %v3362_v13  ;;  %v3321_v40 = vmax.f32 %v3261_v31, %v3301_v22  ;;  %v3283_v5 = vadd.f32 %v9502_v11, %v3149_v21 }
 0x268   :  { %v9738_v8 = vmax.f32 %v3317_v63, %v3363_v20  ;;  %v3364_v24 = vrot.slane %v3320_v30, 1  ;;  %v3302_v54 = vmax.f32 %v3282_v2, 0.0  ;;  %v11031_v23 = vmax.f32 %v9628_v46, 0.0 }
 0x269   :  { %11030 = vst [vmem:[#allocation5_spill] sm:$0xff] %v9734_v10  ;;  %v3366_v55 = vrot.slane %v3321_v40, 1  ;;  %v3303_v41 = vmax.f32 %v3283_v5, 0.0  ;;  %v3153_v33 = vpop.f32.mrb[30].mxu1  ;;  %v3493_v51 = vrot.slane %v9734_v10, 2  ;;  %v11032_v5 = vmax.f32 %v9644_v50, 0.0 }
 0x26a   :  { %v3365_v7 = vsel %vm82_vm1, %v3360_v26, %v3364_v24  ;;  %v3322_v31 = vmax.f32 %v11031_v23, %v3302_v54  ;;  %v3284_v22 = vadd.f32 %v9500_v44, %v3153_v33  ;;  %v3155_v63 = vpop.f32.mrb[31].mxu1  ;;  %v3496_v37 = vrot.slane %v9738_v8, 2 }
 0x26b   :  { %v9748_v48 = vmax.f32 %v3318_v43, %v3365_v7  ;;  %v3367_v2 = vsel %vm82_vm1, %v3362_v13, %v3366_v55  ;;  %v3323_v21 = vmax.f32 %v11032_v5, %v3303_v41  ;;  %v3285_v20 = vadd.f32 %v9502_v11, %v3155_v63 }
 0x26c   :  { %v9754_v10 = vmax.f32 %v3319_v52, %v3367_v2  ;;  %v3368_v26 = vrot.slane %v3322_v31, 1  ;;  %v3304_v9 = vmax.f32 %v3284_v22, 0.0  ;;  %v3497_v46 = vsel %vm693_vm3, %v3495_v29, %v3496_v37 }
 0x26d   :  { %v3370_v54 = vrot.slane %v3323_v21, 1  ;;  %v3305_v33 = vmax.f32 %v3285_v20, 0.0  ;;  %v3159_v23 = vpop.f32.mrb[32].mxu1  ;;  %6167 = vmatprep.mubr.msk.f32.mxu0 %vm3555_vm10, %v3497_v46  ;;  %6194 = vmatprep.mubr.msk.f32.mxu1 %vm3555_vm10, %v3497_v46  ;;  %v3494_v43 = vsel %vm693_vm3, %v3492_v6, %v3493_v51  ;;  %v3498_v50 = vrot.slane %v9748_v48, 2 }
 0x26e   :  { %v3369_v41 = vsel %vm82_vm1, %v3364_v24, %v3368_v26  ;;  %v11033_v52 = vmax.f32 %v9648_v0, 0.0  ;;  %v3286_v7 = vadd.f32 %v9500_v44, %v3159_v23  ;;  %v3161_v22 = vpop.f32.mrb[33].mxu1  ;;  %3640 = vmatmul.mubr.f32.vlgmr.msra.gmra.mrb[20].mxu0 %v3494_v43  ;;  %3767 = vmatmul.mubr.f32.vlgmr.msra.gmra.mrb[40].mxu1 %v3494_v43  ;;  %v3500_v29 = vrot.slane %v9754_v10, 2 }
 0x26f   :  { %v9766_v63 = vmax.f32 %v3320_v30, %v3369_v41  ;;  %v3371_v2 = vsel %vm82_vm1, %v3366_v55, %v3370_v54  ;;  %v11034_v6 = vmax.f32 %v9652_v58, 0.0  ;;  %v3287_v20 = vadd.f32 %v9502_v11, %v3161_v22 }
 0x270   :  { %v3324_v13 = vmax.f32 %v11033_v52, %v3304_v9  ;;  %v11035_v0 = vpack.c.bf16 %v9513_v45, %v9507_v38  ;;  %v9775_v9 = vmax.f32 %v3321_v40, %v3371_v2  ;;  %v3306_v46 = vmax.f32 %v3286_v7, 0.0 }
 0x271   :  { %v3325_v5 = vmax.f32 %v11034_v6, %v3305_v33  ;;  %v11036_v23 = vpack.c.bf16 %v9523_v62, %v9518_v12  ;;  %v3501_v30 = vsel %vm693_vm3, %v3496_v37, %v3500_v29  ;;  %v11037_v55 = vmov 0.0|0.0   ;;  %v3165_v43 = vpop.f32.mrb[34].mxu1 }
 0x272   :  { %6945 = vmatpush1.bf16.msra.mxu0 %v11035_v0  ;;  %v3372_v24 = vrot.slane %v3324_v13, 1  ;;  %v3307_v33 = vmax.f32 %v3287_v20, 0.0  ;;  %6168 = vmatprep.mubr.msk.f32.mxu0 %vm3555_vm10, %v3501_v30  ;;  %v3499_v38 = vsel %vm693_vm3, %v3493_v51, %v3498_v50  ;;  %v3502_v45 = vrot.slane %v9766_v63, 2  ;;  %v3167_v41 = vpop.f32.mrb[35].mxu1 }
 0x273   :  { %6973 = vmatpush1.bf16.msra.mxu1 %v11036_v23  ;;  %6946 = vmatprep.subr.bf16.mxu0 %v11037_v55  ;;  %v3374_v58 = vrot.slane %v3325_v5, 1  ;;  %v11038_v12 = vmax.f32 %v9667_v47, 0.0  ;;  %v3288_v37 = vadd.f32 %v9500_v44, %v3165_v43  ;;  %v3504_v52 = vrot.slane %v9775_v9, 2 }
 0x274   :  { %6195 = vmatprep.mubr.msk.f32.mxu1 %vm3555_vm10, %v3501_v30  ;;  %v3373_v40 = vsel %vm82_vm1, %v3368_v26, %v3372_v24  ;;  %6974 = vmatprep.subr.bf16.mxu1 %v11037_v55  ;;  %v11039_v51 = vmax.f32 %v9674_v14, 0.0  ;;  %v3289_v26 = vadd.f32 %v9502_v11, %v3167_v41  ;;  %v11040_v0 = vpack.c.bf16 %v9537_v18, %v9532_v28 }
 0x275   :  { %v3326_v62 = vmax.f32 %v11038_v12, %v3306_v46  ;;  %3645 = vmatmul.mubr.f32.gmra.mrb[22].mxu0 %v3499_v38  ;;  %v9792_v7 = vmax.f32 %v3322_v31, %v3373_v40  ;;  %v3375_v22 = vsel %vm82_vm1, %v3370_v54, %v3374_v58  ;;  %3772 = vmatmul.mubr.f32.gmra.mrb[42].mxu1 %v3499_v38  ;;  %v3308_v20 = vmax.f32 %v3288_v37, 0.0  ;;  %v3171_v23 = vpop.f32.mrb[36].mxu1 }
 0x276   :  { %v3327_v2 = vmax.f32 %v11039_v51, %v3307_v33  ;;  %v9798_v47 = vmax.f32 %v3323_v21, %v3375_v22  ;;  %6948 = vmatpush1.bf16.msra.mxu0 %v11040_v0  ;;  %v11041_v31 = vpack.c.bf16 %v9550_v1, %v9542_v19  ;;  %v3505_v54 = vsel %vm693_vm3, %v3500_v29, %v3504_v52  ;;  %v3173_v1 = vpop.f32.mrb[37].mxu1 }
 0x277   :  { %v3376_v6 = vrot.slane %v3326_v62, 1  ;;  %v3309_v14 = vmax.f32 %v3289_v26, 0.0  ;;  %6169 = vmatprep.mubr.msk.f32.mxu0 %vm3555_vm10, %v3505_v54  ;;  %6196 = vmatprep.mubr.msk.f32.mxu1 %vm3555_vm10, %v3505_v54  ;;  %v3503_v21 = vsel %vm693_vm3, %v3498_v50, %v3502_v45  ;;  %v3506_v30 = vrot.slane %v9792_v7, 2 }
 0x278   :  { %6976 = vmatpush1.bf16.msra.mxu1 %v11041_v31  ;;  %v3378_v46 = vrot.slane %v3327_v2, 1  ;;  %v11042_v18 = vmax.f32 %v9691_v36, 0.0  ;;  %v3290_v19 = vadd.f32 %v9500_v44, %v3171_v23  ;;  %6949 = vmatprep.subr.bf16.mxu0 %v11037_v55  ;;  %v3508_v29 = vrot.slane %v9798_v47, 2 }
 0x279   :  { %v3377_v28 = vsel %vm82_vm1, %v3372_v24, %v3376_v6  ;;  %6977 = vmatprep.subr.bf16.mxu1 %v11037_v55  ;;  %v11043_v38 = vmax.f32 %v9697_v60, 0.0  ;;  %v3291_v24 = vadd.f32 %v9502_v11, %v3173_v1  ;;  %3650 = vmatmul.mubr.f32.gmra.mrb[24].mxu0 %v3503_v21  ;;  %v11044_v41 = vpack.c.bf16 %v9560_v59, %v9555_v49 }
 0x27a   :  { %v3328_v33 = vmax.f32 %v11042_v18, %v3308_v20  ;;  %v9818_v43 = vmax.f32 %v3324_v13, %v3377_v28  ;;  %v3379_v50 = vsel %vm82_vm1, %v3374_v58, %v3378_v46  ;;  %v3310_v37 = vmax.f32 %v3290_v19, 0.0  ;;  %3777 = vmatmul.mubr.f32.gmra.mrb[44].mxu1 %v3503_v21 }
 0x27b   :  { %v3329_v40 = vmax.f32 %v11043_v38, %v3309_v14  ;;  %v9824_v36 = vmax.f32 %v3325_v5, %v3379_v50  ;;  %6951 = vmatpush1.bf16.msra.mxu0 %v11044_v41  ;;  %v3509_v13 = vsel %vm693_vm3, %v3504_v52, %v3508_v29  ;;  %v3253_v58 = vadd.f32 %v9495_v61, %v9502_v11  ;;  %v3177_v5 = vpop.f32.mrb[38].mxu1 }
 0x27c   :  { %v3380_v12 = vrot.slane %v3328_v33, 1  ;;  %v3311_v60 = vmax.f32 %v3291_v24, 0.0  ;;  %v11045_v51 = vpack.c.bf16 %v9576_v16, %v9571_v35  ;;  %6170 = vmatprep.mubr.msk.f32.mxu0 %vm3555_vm10, %v3509_v13  ;;  %v3507_v26 = vsel %vm693_vm3, %v3502_v45, %v3506_v30  ;;  %6197 = vmatprep.mubr.msk.f32.mxu1 %vm3555_vm10, %v3509_v13  ;;  %v3179_v61 = vpop.f32.mrb[39].mxu1  ;;  %v3465_v30 = vld [vmem:[%s11006_s5 + $0x58] sm:$0xff] }
 0x27d   :  { %v3382_v22 = vrot.slane %v3329_v40, 1  ;;  %v11046_v49 = vmax.f32 %v9702_v56, 0.0  ;;  %v3292_v52 = vadd.f32 %v9500_v44, %v3177_v5  ;;  %6952 = vmatprep.subr.bf16.mxu0 %v11037_v55  ;;  %v11047_v16 = vmax.f32 %v9707_v17, 0.0  ;;  %3655 = vmatmul.mubr.f32.gmra.mrb[26].mxu0 %v3507_v26  ;;  %v11053_v5 = vld [vmem:[#allocation3_spill] sm:$0xff] }
 0x27e   :  { %6979 = vmatpush1.bf16.msra.mxu1 %v11045_v51  ;;  %v3381_v20 = vsel %vm82_vm1, %v3376_v6, %v3380_v12  ;;  %v3293_v45 = vadd.f32 %v9502_v11, %v3179_v61  ;;  %v3272_v56 = vmax.f32 %v9730_v57, 0.0  ;;  %v3273_v14 = vmax.f32 %v3253_v58, 0.0  ;;  %v3446_v57 = vld [vmem:[%s11005_s4 + $0x50] sm:$0xff] }
 0x27f   :  { %v3330_v59 = vmax.f32 %v11046_v49, %v3310_v37  ;;  %v9843_v0 = vmax.f32 %v3326_v62, %v3381_v20  ;;  %v3383_v35 = vsel %vm82_vm1, %v3378_v46, %v3382_v22  ;;  %v3331_v31 = vmax.f32 %v11047_v16, %v3311_v60  ;;  %6980 = vmatprep.subr.bf16.mxu1 %v11037_v55  ;;  %v3466_v49 = vld [vmem:[%s11006_s5 + $0x60] sm:$0xff] }
 0x280   :  { %v9851_v6 = vmax.f32 %v3327_v2, %v3383_v35  ;;  %v3312_v54 = vmax.f32 %v3292_v52, 0.0  ;;  %3782 = vmatmul.mubr.f32.gmra.mrb[46].mxu1 %v3507_v26  ;;  %v3313_v23 = vmax.f32 %v3293_v45, 0.0  ;;  %v11048_v46 = vpack.c.bf16 %v9592_v3, %v9587_v27  ;;  %v3467_v52 = vld [vmem:[%s11006_s5 + $0x68] sm:$0xff] }
 0x281   :  { %v3384_v44 = vrot.slane %v3330_v59, 1  ;;  %v3386_v62 = vrot.slane %v3331_v31, 1  ;;  %v11049_v17 = vpack.c.bf16 %v9607_v39, %v9602_v53  ;;  %v3511_v11 = vrot.slane %v9843_v0, 2  ;;  %v3447_v53 = vld [vmem:[%s11005_s4 + $0x58] sm:$0xff]  ;;  %v3464_v39 = vld [vmem:[%s11006_s5 + $0x50] sm:$0xff] }
 0x282   :  { %6954 = vmatpush1.bf16.msra.mxu0 %v11048_v46  ;;  %v3332_v21 = vmax.f32 %v3272_v56, %v3312_v54  ;;  %v3513_v27 = vrot.slane %v9824_v36, 2  ;;  %v3514_v3 = vrot.slane %v9851_v6, 2  ;;  %v3333_v19 = vmax.f32 %v3273_v14, %v3313_v23  ;;  %v3469_v23 = vld [vmem:[%s11006_s5 + $0x78] sm:$0xff] }
 0x283   :  { %6982 = vmatpush1.bf16.msra.mxu1 %v11049_v17  ;;  %v3385_v2 = vsel %vm82_vm1, %v3380_v12, %v3384_v44  ;;  %6955 = vmatprep.subr.bf16.mxu0 %v11037_v55  ;;  %v3387_v18 = vsel %vm82_vm1, %v3382_v22, %v3386_v62  ;;  %v3510_v1 = vrot.slane %v9818_v43, 2  ;;  %v11050_v12 = vpack.c.bf16 %v9640_v25, %v9635_v32 }
 0x284   :  { %6983 = vmatprep.subr.bf16.mxu1 %v11037_v55  ;;  %v9877_v28 = vmax.f32 %v3328_v33, %v3385_v2  ;;  %v9881_v29 = vmax.f32 %v3329_v40, %v3387_v18  ;;  %v3388_v50 = vrot.slane %v3332_v21, 1  ;;  %v3515_v38 = vsel %vm693_vm3, %v3513_v27, %v3514_v3  ;;  %v3452_v2 = vld [vmem:[%s11005_s4 + $0x80] sm:$0xff] }
 0x285   :  { %v3390_v24 = vrot.slane %v3333_v19, 1  ;;  %v11051_v37 = vpack.c.bf16 %v9662_v42, %v9657_v34  ;;  %v3512_v33 = vsel %vm693_vm3, %v3510_v1, %v3511_v11  ;;  %v6959_v41 = vpack.c.bf16 %v3447_v53, %v3446_v57  ;;  %6171 = vmatprep.mubr.msk.f32.mxu0 %vm3555_vm10, %v3515_v38  ;;  %6198 = vmatprep.mubr.msk.f32.mxu1 %vm3555_vm10, %v3515_v38  ;;  %v3448_v34 = vld [vmem:[%s11005_s4 + $0x60] sm:$0xff]  ;;  %v3449_v42 = vld [vmem:[%s11005_s4 + $0x68] sm:$0xff] }
 0x286   :  { %6957 = vmatpush1.bf16.msra.mxu0 %v11050_v12  ;;  %v6987_v13 = vpack.c.bf16 %v3465_v30, %v3464_v39  ;;  %v3389_v58 = vsel %vm82_vm1, %v3384_v44, %v3388_v50  ;;  %v11052_v40 = vrot.slane %v9669_v4, 1  ;;  %v3518_v32 = vrot.slane %v9881_v29, 2  ;;  %3787 = vmatmul.mubr.f32.gmra.mrb[48].mxu1 %v3512_v33  ;;  %v3451_v44 = vld [vmem:[%s11005_s4 + $0x78] sm:$0xff]  ;;  %v3470_v53 = vld [vmem:[%s11006_s5 + $0x80] sm:$0xff]  ;;  %v3471_v39 = vld [vmem:[%s11006_s5 + $0x88] sm:$0xf] }
 0x287   :  { %6985 = vmatpush1.bf16.msra.mxu1 %v11051_v37  ;;  %v3516_v25 = vrot.slane %v9877_v28, 2  ;;  %v9905_v60 = vmax.f32 %v3330_v59, %v3389_v58  ;;  %v3391_v51 = vsel %vm82_vm1, %v3386_v62, %v3390_v24  ;;  %v11054_v26 = vrot.slane %v11053_v5, 1  ;;  %6958 = vmatprep.subr.bf16.mxu0 %v11037_v55  ;;  %v3468_v62 = vld [vmem:[%s11006_s5 + $0x70] sm:$0xff]  ;;  %v6220_v1 = vld [vmem:[%s11005_s4 + $0x120] sm:$0xff]  ;;  %v6248_v12 = vld [vmem:[%s11006_s5 + $0x128] sm:$0xff] }
 0x288   :  { %v3414_v22 = vsel %vm82_vm1, %v3388_v50, %v11052_v40  ;;  %v9920_v59 = vmax.f32 %v3331_v31, %v3391_v51  ;;  %6986 = vmatprep.subr.bf16.mxu1 %v11037_v55  ;;  %3660 = vmatmul.mubr.f32.gmra.mrb[28].mxu0 %v3512_v33  ;;  %v3519_v35 = vsel %vm693_vm3, %v3514_v3, %v3518_v32  ;;  %v3450_v31 = vld [vmem:[%s11005_s4 + $0x70] sm:$0xff]  ;;  %v6221_v50 = vld [vmem:[%s11005_s4 + $0x128] sm:$0xff]  ;;  %v6223_v58 = vld [vmem:[%s11005_s4 + $0x138] sm:$0xff] }
 0x289   :  { %v9907_v4 = vmax.f32 %v3332_v21, %v3414_v22  ;;  %v3415_v20 = vsel %vm82_vm1, %v3390_v24, %v11054_v26  ;;  %v6962_v16 = vpack.c.bf16 %v3449_v42, %v3448_v34  ;;  %6172 = vmatprep.mubr.msk.f32.mxu0 %vm3555_vm10, %v3519_v35  ;;  %v6990_v45 = vpack.c.bf16 %v3467_v52, %v3466_v49  ;;  %v3453_v21 = vld [vmem:[%s11005_s4 + $0x88] sm:$0xf]  ;;  %v6247_v24 = vld [vmem:[%s11006_s5 + $0x120] sm:$0xff]  ;;  %v6249_v40 = vld [vmem:[%s11006_s5 + $0x130] sm:$0xff] }
 0x28a   :  { %v9922_v61 = vmax.f32 %v3333_v19, %v3415_v20  ;;  %6960 = vmatpush1.bf16.msra.mxu0 %v6959_v41  ;;  %v3522_v56 = vrot.slane %v9920_v59, 2  ;;  %6199 = vmatprep.mubr.msk.f32.mxu1 %vm3555_vm10, %v3519_v35  ;;  %v3517_v54 = vsel %vm693_vm3, %v3511_v11, %v3516_v25  ;;  %v3520_v14 = vrot.slane %v9905_v60, 2  ;;  %v6250_v22 = vld [vmem:[%s11006_s5 + $0x138] sm:$0xff]  ;;  %v6224_v42 = vld [vmem:[%s11005_s4 + $0x140] sm:$0xff]  ;;  %v6225_v51 = vld [vmem:[%s11005_s4 + $0x148] sm:$0xff] }
 0x28b   :  { %6988 = vmatpush1.bf16.msra.mxu1 %v6987_v13  ;;  %6961 = vmatprep.subr.bf16.mxu0 %v11037_v55  ;;  %v6965_v17 = vpack.c.bf16 %v3451_v44, %v3450_v31  ;;  %v6993_v57 = vpack.c.bf16 %v3469_v23, %v3468_v62  ;;  %v3524_v3 = vrot.slane %v9907_v4, 2  ;;  %v6968_v18 = vpack.c.bf16 %v3453_v21, %v3452_v2  ;;  %v6222_v13 = vld [vmem:[%s11005_s4 + $0x130] sm:$0xff]  ;;  %v6251_v5 = vld [vmem:[%s11006_s5 + $0x140] sm:$0xff]  ;;  %v6252_v26 = vld [vmem:[%s11006_s5 + $0x148] sm:$0xff] }
 0x28c   :  { %6989 = vmatprep.subr.bf16.mxu1 %v11037_v55  ;;  %3665 = vmatmul.mubr.f32.gmra.mrb[30].mxu0 %v3517_v54  ;;  %v3523_v46 = vsel %vm693_vm3, %v3518_v32, %v3522_v56  ;;  %v3526_v11 = vrot.slane %v9922_v61, 2  ;;  %v3521_v27 = vsel %vm693_vm3, %v3516_v25, %v3520_v14  ;;  %v6996_v19 = vpack.c.bf16 %v3471_v39, %v3470_v53  ;;  %v11056_v32 = vld [vmem:[#allocation4_spill] sm:$0xff]  ;;  %v11057_v20 = vld [vmem:[#allocation5_spill] sm:$0xff]  ;;  %v6255_v62 = vld [vmem:[%s11006_s5 + $0x160] sm:$0xff] }
 0x28d   :  { %3792 = vmatmul.mubr.f32.gmra.mrb[50].mxu1 %v3517_v54  ;;  %6173 = vmatprep.mubr.msk.f32.mxu0 %vm3555_vm10, %v3523_v46  ;;  %v3525_v38 = vsel %vm693_vm3, %v3520_v14, %v3524_v3  ;;  %v7000_v33 = vpack.c.bf16 %v6221_v50, %v6220_v1  ;;  %v7028_v41 = vpack.c.bf16 %v6248_v12, %v6247_v24  ;;  %v6226_v35 = vld [vmem:[%s11005_s4 + $0x150] sm:$0xff]  ;;  %v6228_v54 = vld [vmem:[%s11005_s4 + $0x160] sm:$0xff]  ;;  %v6229_v14 = vld [vmem:[%s11005_s4 + $0x168] sm:$0xff] }
 0x28e   :  { %6963 = vmatpush1.bf16.msra.mxu0 %v6962_v16  ;;  %6200 = vmatprep.mubr.msk.f32.mxu1 %vm3555_vm10, %v3523_v46  ;;  %v3527_v30 = vsel %vm693_vm3, %v3522_v56, %v3526_v11  ;;  %v7003_v25 = vpack.c.bf16 %v6223_v58, %v6222_v13  ;;  %v7031_v34 = vpack.c.bf16 %v6250_v22, %v6249_v40  ;;  %v6227_v16 = vld [vmem:[%s11005_s4 + $0x158] sm:$0xff]  ;;  %v6256_v23 = vld [vmem:[%s11006_s5 + $0x168] sm:$0xff]  ;;  %v6230_v11 = vld [vmem:[%s11005_s4 + $0x170] sm:$0xff]  ;;  %v4042_v22 = vrot.slane %v9724_v15, 4 }
 0x28f   :  { %6991 = vmatpush1.bf16.msra.mxu1 %v6990_v45  ;;  %6964 = vmatprep.subr.bf16.mxu0 %v11037_v55  ;;  %v7006_v49 = vpack.c.bf16 %v6225_v51, %v6224_v42  ;;  %v7034_v52 = vpack.c.bf16 %v6252_v26, %v6251_v5  ;;  %v6253_v45 = vld [vmem:[%s11006_s5 + $0x150] sm:$0xff]  ;;  %v6254_v56 = vld [vmem:[%s11006_s5 + $0x158] sm:$0xff]  ;;  %v7009_v31 = vpack.c.bf16 %v6227_v16, %v6226_v35  ;;  %v6232_v53 = vld [vmem:[%s11005_s4 + $0x180] sm:$0xff]  ;;  %v4040_v26 = vrot.slane %v11057_v20, 4 }
 0x290   :  { %6992 = vmatprep.subr.bf16.mxu1 %v11037_v55  ;;  %3670 = vmatmul.mubr.f32.gmra.mrb[32].mxu0 %v3521_v27  ;;  %v7037_v44 = vpack.c.bf16 %v6254_v56, %v6253_v45  ;;  %v7012_v46 = vpack.c.bf16 %v6229_v14, %v6228_v54  ;;  %v6257_v2 = vld [vmem:[%s11006_s5 + $0x170] sm:$0xff]  ;;  %v6258_v21 = vld [vmem:[%s11006_s5 + $0x178] sm:$0xff]  ;;  %v6233_v39 = vld [vmem:[%s11005_s4 + $0x188] sm:$0xff]  ;;  %v4047_v35 = vrot.slane %v9754_v10, 4  ;;  %v4039_v56 = vrot.slane %v11056_v32, 4 }
 0x291   :  { %3797 = vmatmul.mubr.f32.gmra.mrb[52].mxu1 %v3521_v27  ;;  %6174 = vmatprep.mubr.msk.f32.mxu0 %vm3555_vm10, %v3527_v30  ;;  %v7043_v3 = vpack.c.bf16 %v6258_v21, %v6257_v2  ;;  %v6234_v50 = vld [vmem:[%s11005_s4 + $0x190] sm:$0xff]  ;;  %v6262_v12 = vld [vmem:[%s11006_s5 + $0x198] sm:$0xff]  ;;  %v6236_v58 = vld [vmem:[%s11005_s4 + $0x1a0] sm:$0xff]  ;;  %v4045_v14 = vrot.slane %v9748_v48, 4 }
 0x292   :  { %6966 = vmatpush1.bf16.msra.mxu0 %v6965_v17  ;;  %6201 = vmatprep.mubr.msk.f32.mxu1 %vm3555_vm10, %v3527_v30  ;;  %v7040_v17 = vpack.c.bf16 %v6256_v23, %v6255_v62  ;;  %v6259_v30 = vld [vmem:[%s11006_s5 + $0x180] sm:$0xff]  ;;  %v6261_v24 = vld [vmem:[%s11006_s5 + $0x190] sm:$0xff]  ;;  %v6237_v40 = vld [vmem:[%s11005_s4 + $0x1a8] sm:$0xf] }
 0x293   :  { %6994 = vmatpush1.bf16.msra.mxu1 %v6993_v57  ;;  %6967 = vmatprep.subr.bf16.mxu0 %v11037_v55  ;;  %v6231_v57 = vld [vmem:[%s11005_s4 + $0x178] sm:$0xff]  ;;  %v7049_v13 = vpack.c.bf16 %v6262_v12, %v6261_v24  ;;  %v7024_v51 = vpack.c.bf16 %v6237_v40, %v6236_v58  ;;  %v6301_v16 = vld [vmem:[%s11006_s5 + $0x1b0] sm:$0xff]  ;;  %v6276_v62 = vld [vmem:[%s11005_s4 + $0x1c0] sm:$0xff]  ;;  %v4046_v21 = vsel %vm137_vm0, %v4040_v26, %v4045_v14  ;;  %v4053_v12 = vrot.slane %v9792_v7, 4 }
 0x294   :  { %6995 = vmatprep.subr.bf16.mxu1 %v11037_v55  ;;  %3675 = vmatmul.mubr.f32.gmra.mrb[34].mxu0 %v3525_v38  ;;  %v7015_v27 = vpack.c.bf16 %v6231_v57, %v6230_v11  ;;  %v6302_v45 = vld [vmem:[%s11006_s5 + $0x1b8] sm:$0xff]  ;;  %v6277_v23 = vld [vmem:[%s11005_s4 + $0x1c8] sm:$0xff]  ;;  %v6303_v11 = vld [vmem:[%s11006_s5 + $0x1c0] sm:$0xff]  ;;  %v4061_v58 = vrot.slane %v9851_v6, 4 }
 0x295   :  { %3802 = vmatmul.mubr.f32.gmra.mrb[54].mxu1 %v3525_v38  ;;  %6203 = vmatprep.mubr.msk.f32.mxu0 %vm3555_vm10, %v9724_v15  ;;  %v6235_v38 = vld [vmem:[%s11005_s4 + $0x198] sm:$0xff]  ;;  %v7084_v54 = vpack.c.bf16 %v6302_v45, %v6301_v16  ;;  %v6304_v57 = vld [vmem:[%s11006_s5 + $0x1c8] sm:$0xff]  ;;  %v7059_v2 = vpack.c.bf16 %v6277_v23, %v6276_v62  ;;  %v6307_v40 = vld [vmem:[%s11006_s5 + $0x1e0] sm:$0xff] }
 0x296   :  { %6970 = vmatpush1.bf16.msk.msra.mxu0 %vm9439_vm9, %v6968_v18  ;;  %6212 = vmatprep.mubr.msk.f32.mxu1 %vm3555_vm10, %v9724_v15  ;;  %v6260_v18 = vld [vmem:[%s11006_s5 + $0x188] sm:$0xff]  ;;  %v6309_v16 = vld [vmem:[%s11006_s5 + $0x1f0] sm:$0xff]  ;;  %v6310_v45 = vld [vmem:[%s11006_s5 + $0x1f8] sm:$0xff] }
 0x297   :  { %6998 = vmatpush1.bf16.msk.msra.mxu1 %vm9439_vm9, %v6996_v19  ;;  %6999 = vmatprep.subr.bf16.mxu0 %v11037_v55  ;;  %v7018_v19 = vpack.c.bf16 %v6233_v39, %v6232_v53  ;;  %v7046_v1 = vpack.c.bf16 %v6260_v18, %v6259_v30  ;;  %v6278_v53 = vld [vmem:[%s11005_s4 + $0x1d0] sm:$0xff]  ;;  %v6279_v39 = vld [vmem:[%s11005_s4 + $0x1d8] sm:$0xff]  ;;  %v4055_v18 = vrot.slane %v9798_v47, 4  ;;  %v6284_v62 = vld [vmem:[%s11005_s4 + $0x200] sm:$0xff] }
 0x298   :  { %7027 = vmatprep.subr.bf16.mxu1 %v11037_v55  ;;  %v6285_v23 = vld [vmem:[%s11005_s4 + $0x208] sm:$0xff] }
 0x299   :  { %3891 = vmatmul.mubr.f32.vlgmr.msra.gmra.mrb[36].mxu0 %v11056_v32 }
 0x29a   :  { %3999 = vmatmul.mubr.f32.vlgmr.msra.gmra.mrb[56].mxu1 %v11056_v32  ;;  %7001 = vmatpush1.bf16.msra.mxu0 %v7000_v33  ;;  %v7021_v33 = vpack.c.bf16 %v6235_v38, %v6234_v50  ;;  %v7062_v50 = vpack.c.bf16 %v6279_v39, %v6278_v53  ;;  %v6286_v53 = vld [vmem:[%s11005_s4 + $0x210] sm:$0xff]  ;;  %v6287_v39 = vld [vmem:[%s11005_s4 + $0x218] sm:$0xff] }
 0x29b   :  { %7029 = vmatpush1.bf16.msra.mxu1 %v7028_v41  ;;  %6204 = vmatprep.mubr.msk.f32.mxu0 %vm3555_vm10, %v9738_v8  ;;  %v4043_v41 = vrot.slane %v9738_v8, 4 }
 0x29c   :  { %6213 = vmatprep.mubr.msk.f32.mxu1 %vm3555_vm10, %v9738_v8  ;;  %7002 = vmatprep.subr.bf16.mxu0 %v11037_v55 }
 0x29d   :  { %7030 = vmatprep.subr.bf16.mxu1 %v11037_v55  ;;  %3896 = vmatmul.mubr.f32.gmra.mrb[38].mxu0 %v11057_v20  ;;  %v4044_v42 = vsel %vm137_vm0, %v4042_v22, %v4043_v41  ;;  %v6308_v22 = vld [vmem:[%s11006_s5 + $0x1e8] sm:$0xff] }
 0x29e   :  { %4004 = vmatmul.mubr.f32.gmra.mrb[58].mxu1 %v11057_v20  ;;  %7004 = vmatpush1.bf16.msra.mxu0 %v7003_v25  ;;  %v6263_v25 = vld [vmem:[%s11006_s5 + $0x1a0] sm:$0xff] }
 0x29f   :  { %7032 = vmatpush1.bf16.msra.mxu1 %v7031_v34  ;;  %6205 = vmatprep.mubr.msk.f32.mxu0 %vm3555_vm10, %v9754_v10  ;;  %v6264_v34 = vld [vmem:[%s11006_s5 + $0x1a8] sm:$0xf] }
 0x2a0   :  { %6214 = vmatprep.mubr.msk.f32.mxu1 %vm3555_vm10, %v9754_v10  ;;  %7005 = vmatprep.subr.bf16.mxu0 %v11037_v55  ;;  %v7052_v5 = vpack.c.bf16 %v6264_v34, %v6263_v25  ;;  %v4060_v25 = vrot.slane %v9824_v36, 4 }
 0x2a1   :  { %7033 = vmatprep.subr.bf16.mxu1 %v11037_v55  ;;  %3901 = vmatmul.mubr.f32.gmra.mrb[40].mxu0 %v9748_v48 }
 0x2a2   :  { %4009 = vmatmul.mubr.f32.gmra.mrb[60].mxu1 %v9748_v48  ;;  %7007 = vmatpush1.bf16.msra.mxu0 %v7006_v49  ;;  %v6274_v49 = vld [vmem:[%s11005_s4 + $0x1b0] sm:$0xff] }
 0x2a3   :  { %7035 = vmatpush1.bf16.msra.mxu1 %v7034_v52  ;;  %6206 = vmatprep.mubr.msk.f32.mxu0 %vm3555_vm10, %v9775_v9  ;;  %v6275_v52 = vld [vmem:[%s11005_s4 + $0x1b8] sm:$0xff] }
 0x2a4   :  { %6215 = vmatprep.mubr.msk.f32.mxu1 %vm3555_vm10, %v9775_v9  ;;  %7008 = vmatprep.subr.bf16.mxu0 %v11037_v55 }
 0x2a5   :  { %7036 = vmatprep.subr.bf16.mxu1 %v11037_v55  ;;  %3906 = vmatmul.mubr.f32.gmra.mrb[42].mxu0 %v9766_v63 }
 0x2a6   :  { %4014 = vmatmul.mubr.f32.gmra.mrb[62].mxu1 %v9766_v63  ;;  %7010 = vmatpush1.bf16.msra.mxu0 %v7009_v31  ;;  %v7056_v31 = vpack.c.bf16 %v6275_v52, %v6274_v49  ;;  %v6283_v49 = vld [vmem:[%s11005_s4 + $0x1f8] sm:$0xff]  ;;  %v4062_v52 = vsel %vm137_vm0, %v4060_v25, %v4061_v58 }
 0x2a7   :  { %7038 = vmatpush1.bf16.msra.mxu1 %v7037_v44  ;;  %6207 = vmatprep.mubr.msk.f32.mxu0 %vm3555_vm10, %v9824_v36  ;;  %v4041_v44 = vsel %vm137_vm0, %v4039_v56, %v4040_v26  ;;  %v6282_v26 = vld [vmem:[%s11005_s4 + $0x1f0] sm:$0xff]  ;;  %v4057_v56 = vrot.slane %v9818_v43, 4 }
 0x2a8   :  { %6216 = vmatprep.mubr.msk.f32.mxu1 %vm3555_vm10, %v9824_v36  ;;  %7011 = vmatprep.subr.bf16.mxu0 %v11037_v55 }
 0x2a9   :  { %7039 = vmatprep.subr.bf16.mxu1 %v11037_v55  ;;  %3911 = vmatmul.mubr.f32.gmra.mrb[44].mxu0 %v9818_v43 }
 0x2aa   :  { %4019 = vmatmul.mubr.f32.gmra.mrb[64].mxu1 %v9818_v43  ;;  %7013 = vmatpush1.bf16.msra.mxu0 %v7012_v46  ;;  %v4048_v46 = vsel %vm137_vm0, %v4043_v41, %v4047_v35  ;;  %v6281_v41 = vld [vmem:[%s11005_s4 + $0x1e8] sm:$0xff] }
 0x2ab   :  { %7041 = vmatpush1.bf16.msra.mxu1 %v7040_v17  ;;  %6208 = vmatprep.mubr.msk.f32.mxu0 %vm3555_vm10, %v9851_v6  ;;  %v4051_v17 = vrot.slane %v9775_v9, 4 }
 0x2ac   :  { %6217 = vmatprep.mubr.msk.f32.mxu1 %vm3555_vm10, %v9851_v6  ;;  %7014 = vmatprep.subr.bf16.mxu0 %v11037_v55 }
 0x2ad   :  { %7042 = vmatprep.subr.bf16.mxu1 %v11037_v55  ;;  %3916 = vmatmul.mubr.f32.gmra.mrb[46].mxu0 %v9843_v0  ;;  %v4052_v30 = vsel %vm137_vm0, %v4047_v35, %v4051_v17  ;;  %v4065_v35 = vrot.slane %v9881_v29, 4 }
 0x2ae   :  { %4024 = vmatmul.mubr.f32.gmra.mrb[66].mxu1 %v9843_v0  ;;  %7016 = vmatpush1.bf16.msra.mxu0 %v7015_v27  ;;  %v7087_v27 = vpack.c.bf16 %v6304_v57, %v6303_v11  ;;  %v6311_v11 = vld [vmem:[%s11006_s5 + $0x200] sm:$0xff]  ;;  %v6312_v57 = vld [vmem:[%s11006_s5 + $0x208] sm:$0xff] }
 0x2af   :  { %7044 = vmatpush1.bf16.msra.mxu1 %v7043_v3  ;;  %6209 = vmatprep.mubr.msk.f32.mxu0 %vm3555_vm10, %v9881_v29  ;;  %v4049_v3 = vrot.slane %v9766_v63, 4 }
 0x2b0   :  { %6218 = vmatprep.mubr.msk.f32.mxu1 %vm3555_vm10, %v9881_v29  ;;  %7017 = vmatprep.subr.bf16.mxu0 %v11037_v55 }
 0x2b1   :  { %7045 = vmatprep.subr.bf16.mxu1 %v11037_v55  ;;  %3921 = vmatmul.mubr.f32.gmra.mrb[48].mxu0 %v9877_v28  ;;  %v4050_v38 = vsel %vm137_vm0, %v4045_v14, %v4049_v3  ;;  %v4063_v14 = vrot.slane %v9877_v28, 4 }
 0x2b2   :  { %4029 = vmatmul.mubr.f32.gmra.mrb[68].mxu1 %v9877_v28  ;;  %7019 = vmatpush1.bf16.msra.mxu0 %v7018_v19  ;;  %v6305_v19 = vld [vmem:[%s11006_s5 + $0x1d0] sm:$0xff] }
 0x2b3   :  { %7047 = vmatpush1.bf16.msra.mxu1 %v7046_v1  ;;  %6210 = vmatprep.mubr.msk.f32.mxu0 %vm3555_vm10, %v9920_v59  ;;  %v6306_v1 = vld [vmem:[%s11006_s5 + $0x1d8] sm:$0xff] }
 0x2b4   :  { %6219 = vmatprep.mubr.msk.f32.mxu1 %vm3555_vm10, %v9920_v59  ;;  %7020 = vmatprep.subr.bf16.mxu0 %v11037_v55  ;;  %v7090_v24 = vpack.c.bf16 %v6306_v1, %v6305_v19  ;;  %v6313_v19 = vld [vmem:[%s11006_s5 + $0x210] sm:$0xff]  ;;  %v6314_v1 = vld [vmem:[%s11006_s5 + $0x218] sm:$0xff] }
 0x2b5   :  { %7048 = vmatprep.subr.bf16.mxu1 %v11037_v55  ;;  %3926 = vmatmul.mubr.f32.gmra.mrb[50].mxu0 %v9905_v60 }
 0x2b6   :  { %4034 = vmatmul.mubr.f32.gmra.mrb[70].mxu1 %v9905_v60  ;;  %7022 = vmatpush1.bf16.msra.mxu0 %v7021_v33  ;;  %v6280_v33 = vld [vmem:[%s11005_s4 + $0x1e0] sm:$0xff] }
 0x2b7   :  { %7050 = vmatpush1.bf16.msra.mxu1 %v7049_v13  ;;  %6239 = vmatprep.mubr.msk.f32.mxu0 %vm3555_vm10, %v4044_v42  ;;  %v4056_v13 = vsel %vm137_vm0, %v4051_v17, %v4055_v18  ;;  %v7065_v34 = vpack.c.bf16 %v6281_v41, %v6280_v33  ;;  %v4069_v17 = vrot.slane %v9920_v59, 4  ;;  %v4073_v18 = vrot.slane %v9922_v61, 4  ;;  %v6288_v33 = vld [vmem:[%s11005_s4 + $0x220] sm:$0xff]  ;;  %v6289_v41 = vld [vmem:[%s11005_s4 + $0x228] sm:$0xff] }
 0x2b8   :  { %6266 = vmatprep.mubr.msk.f32.mxu1 %vm3555_vm10, %v4044_v42  ;;  %7023 = vmatprep.subr.bf16.mxu0 %v11037_v55  ;;  %v4054_v42 = vsel %vm137_vm0, %v4049_v3, %v4053_v12  ;;  %v4067_v3 = vrot.slane %v9905_v60, 4  ;;  %v4071_v12 = vrot.slane %v9907_v4, 4  ;;  %v7077_v25 = vpack.c.bf16 %v6289_v41, %v6288_v33 }
 0x2b9   :  { %7051 = vmatprep.subr.bf16.mxu1 %v11037_v55 }
 0x2ba   :  { %7026 = vmatpush1.bf16.msk.msra.mxu0 %vm9439_vm9, %v7024_v51  ;;  %v7093_v51 = vpack.c.bf16 %v6308_v22, %v6307_v40  ;;  %v6315_v40 = vld [vmem:[%s11006_s5 + $0x220] sm:$0xff]  ;;  %v6316_v22 = vld [vmem:[%s11006_s5 + $0x228] sm:$0xff] }
 0x2bb   :  { %7054 = vmatpush1.bf16.msk.msra.mxu1 %vm9439_vm9, %v7052_v5  ;;  %7055 = vmatprep.subr.bf16.mxu0 %v11037_v55  ;;  %v4058_v5 = vrot.slane %v9843_v0, 4 }
 0x2bc   :  { %7083 = vmatprep.subr.bf16.mxu1 %v11037_v55 }
 0x2bd   :  { %4186 = vmatmul.mubr.f32.vlgmr.msra.gmra.mrb[52].mxu0 %v4041_v44 }
 0x2be   :  { %4313 = vmatmul.mubr.f32.vlgmr.msra.gmra.mrb[72].mxu1 %v4041_v44  ;;  %6240 = vmatprep.mubr.msk.f32.mxu0 %vm3555_vm10, %v4048_v46  ;;  %v4059_v44 = vsel %vm137_vm0, %v4057_v56, %v4058_v5  ;;  %v6328_v56 = vld [vmem:[%s11005_s4 + $0x240] sm:$0xff] }
 0x2bf   :  { %6267 = vmatprep.mubr.msk.f32.mxu1 %vm3555_vm10, %v4048_v46  ;;  %7057 = vmatpush1.bf16.msra.mxu0 %v7056_v31  ;;  %v7068_v31 = vpack.c.bf16 %v6283_v49, %v6282_v26  ;;  %v4066_v46 = vsel %vm137_vm0, %v4061_v58, %v4065_v35  ;;  %v4373_v58 = vrot.slane %v9738_v8, 6  ;;  %v6291_v26 = vld [vmem:[%s11005_s4 + $0x238] sm:$0xf] }
 0x2c0   :  { %7085 = vmatpush1.bf16.msra.mxu1 %v7084_v54  ;;  %7058 = vmatprep.subr.bf16.mxu0 %v11037_v55  ;;  %v7096_v54 = vpack.c.bf16 %v6310_v45, %v6309_v16  ;;  %v4370_v45 = vrot.slane %v11057_v20, 6 }
 0x2c1   :  { %4191 = vmatmul.mubr.f32.gmra.mrb[54].mxu0 %v4046_v21  ;;  %7086 = vmatprep.subr.bf16.mxu1 %v11037_v55 }
 0x2c2   :  { %4318 = vmatmul.mubr.f32.gmra.mrb[74].mxu1 %v4046_v21  ;;  %6241 = vmatprep.mubr.msk.f32.mxu0 %vm3555_vm10, %v4052_v30  ;;  %v4064_v21 = vsel %vm137_vm0, %v4058_v5, %v4063_v14  ;;  %v6290_v5 = vld [vmem:[%s11005_s4 + $0x230] sm:$0xff] }
 0x2c3   :  { %6268 = vmatprep.mubr.msk.f32.mxu1 %vm3555_vm10, %v4052_v30  ;;  %7060 = vmatpush1.bf16.msra.mxu0 %v7059_v2  ;;  %v7071_v2 = vpack.c.bf16 %v6285_v23, %v6284_v62  ;;  %v4070_v30 = vsel %vm137_vm0, %v4065_v35, %v4069_v17  ;;  %v7080_v35 = vpack.c.bf16 %v6291_v26, %v6290_v5  ;;  %v4369_v62 = vrot.slane %v11056_v32, 6  ;;  %v6331_v32 = vld [vmem:[%s11005_s4 + $0x258] sm:$0xff] }
 0x2c4   :  { %7088 = vmatpush1.bf16.msra.mxu1 %v7087_v27  ;;  %7061 = vmatprep.subr.bf16.mxu0 %v11037_v55  ;;  %v7099_v27 = vpack.c.bf16 %v6312_v57, %v6311_v11  ;;  %v4375_v11 = vrot.slane %v9748_v48, 6  ;;  %v6330_v57 = vld [vmem:[%s11005_s4 + $0x250] sm:$0xff]  ;;  %v4390_v5 = vrot.slane %v9824_v36, 6 }
 0x2c5   :  { %4196 = vmatmul.mubr.f32.gmra.mrb[56].mxu0 %v4050_v38  ;;  %7089 = vmatprep.subr.bf16.mxu1 %v11037_v55 }
 0x2c6   :  { %4323 = vmatmul.mubr.f32.gmra.mrb[76].mxu1 %v4050_v38  ;;  %6242 = vmatprep.mubr.msk.f32.mxu0 %vm3555_vm10, %v4056_v13  ;;  %v4068_v38 = vsel %vm137_vm0, %v4063_v14, %v4067_v3  ;;  %v6356_v14 = vld [vmem:[%s11006_s5 + $0x248] sm:$0xff] }
 0x2c7   :  { %6269 = vmatprep.mubr.msk.f32.mxu1 %vm3555_vm10, %v4056_v13  ;;  %7063 = vmatpush1.bf16.msra.mxu0 %v7062_v50  ;;  %v7074_v50 = vpack.c.bf16 %v6287_v39, %v6286_v53  ;;  %v4074_v13 = vsel %vm137_vm0, %v4069_v17, %v4073_v18  ;;  %v7115_v53 = vpack.c.bf16 %v6331_v32, %v6330_v57  ;;  %v4379_v18 = vrot.slane %v9766_v63, 6  ;;  %v6365_v57 = vld [vmem:[%s11006_s5 + $0x290] sm:$0xff]  ;;  %v6366_v32 = vld [vmem:[%s11006_s5 + $0x298] sm:$0xff] }
 0x2c8   :  { %7091 = vmatpush1.bf16.msra.mxu1 %v7090_v24  ;;  %7064 = vmatprep.subr.bf16.mxu0 %v11037_v55  ;;  %v7102_v24 = vpack.c.bf16 %v6314_v1, %v6313_v19  ;;  %v4376_v39 = vsel %vm2160_vm6, %v4370_v45, %v4375_v11  ;;  %v6332_v19 = vld [vmem:[%s11005_s4 + $0x260] sm:$0xff]  ;;  %v6333_v1 = vld [vmem:[%s11005_s4 + $0x268] sm:$0xff] }
 0x2c9   :  { %4201 = vmatmul.mubr.f32.gmra.mrb[58].mxu0 %v4054_v42  ;;  %7092 = vmatprep.subr.bf16.mxu1 %v11037_v55  ;;  %v7118_v33 = vpack.c.bf16 %v6333_v1, %v6332_v19  ;;  %v4380_v41 = vsel %vm2160_vm6, %v4375_v11, %v4379_v18  ;;  %v4399_v11 = vrot.slane %v9920_v59, 6  ;;  %v6367_v19 = vld [vmem:[%s11006_s5 + $0x2a0] sm:$0xff]  ;;  %v6368_v1 = vld [vmem:[%s11006_s5 + $0x2a8] sm:$0xff] }
 0x2ca   :  { %4328 = vmatmul.mubr.f32.gmra.mrb[78].mxu1 %v4054_v42  ;;  %6243 = vmatprep.mubr.msk.f32.mxu0 %vm3555_vm10, %v4062_v52  ;;  %v4072_v42 = vsel %vm137_vm0, %v4067_v3, %v4071_v12  ;;  %v6358_v3 = vld [vmem:[%s11006_s5 + $0x258] sm:$0xff]  ;;  %v6360_v12 = vld [vmem:[%s11006_s5 + $0x268] sm:$0xff] }
 0x2cb   :  { %6270 = vmatprep.mubr.msk.f32.mxu1 %vm3555_vm10, %v4062_v52  ;;  %7066 = vmatpush1.bf16.msra.mxu0 %v7065_v34  ;;  %v4372_v34 = vrot.slane %v9724_v15, 6  ;;  %v6317_v15 = vld [vmem:[%s11006_s5 + $0x230] sm:$0xff]  ;;  %v6318_v52 = vld [vmem:[%s11006_s5 + $0x238] sm:$0xf] }
 0x2cc   :  { %7094 = vmatpush1.bf16.msra.mxu1 %v7093_v51  ;;  %7067 = vmatprep.subr.bf16.mxu0 %v11037_v55  ;;  %v7105_v51 = vpack.c.bf16 %v6316_v22, %v6315_v40  ;;  %v7108_v16 = vpack.c.bf16 %v6318_v52, %v6317_v15  ;;  %v6334_v40 = vld [vmem:[%s11005_s4 + $0x270] sm:$0xff]  ;;  %v6335_v22 = vld [vmem:[%s11005_s4 + $0x278] sm:$0xff]  ;;  %v4388_v52 = vrot.slane %v9843_v0, 6 }
 0x2cd   :  { %4206 = vmatmul.mubr.f32.gmra.mrb[60].mxu0 %v4059_v44  ;;  %7095 = vmatprep.subr.bf16.mxu1 %v11037_v55  ;;  %v4374_v49 = vsel %vm2160_vm6, %v4372_v34, %v4373_v58  ;;  %v4391_v34 = vrot.slane %v9851_v6, 6  ;;  %v7121_v26 = vpack.c.bf16 %v6335_v22, %v6334_v40  ;;  %v6370_v40 = vld [vmem:[%s11006_s5 + $0x2b8] sm:$0xff] }
 0x2ce   :  { %4333 = vmatmul.mubr.f32.gmra.mrb[80].mxu1 %v4059_v44  ;;  %6244 = vmatprep.mubr.msk.f32.mxu0 %vm3555_vm10, %v4066_v46  ;;  %v4377_v44 = vrot.slane %v9754_v10, 6 }
 0x2cf   :  { %6271 = vmatprep.mubr.msk.f32.mxu1 %vm3555_vm10, %v4066_v46  ;;  %7069 = vmatpush1.bf16.msra.mxu0 %v7068_v31  ;;  %v6329_v31 = vld [vmem:[%s11005_s4 + $0x248] sm:$0xff]  ;;  %v4371_v46 = vsel %vm2160_vm6, %v4369_v62, %v4370_v45  ;;  %v4392_v36 = vsel %vm2160_vm6, %v4390_v5, %v4391_v34  ;;  %v4395_v45 = vrot.slane %v9881_v29, 6  ;;  %v6371_v5 = vld [vmem:[%s11006_s5 + $0x2c0] sm:$0xff] }
 0x2d0   :  { %7097 = vmatpush1.bf16.msra.mxu1 %v7096_v54  ;;  %7070 = vmatprep.subr.bf16.mxu0 %v11037_v55  ;;  %v6355_v54 = vld [vmem:[%s11006_s5 + $0x240] sm:$0xff]  ;;  %v7112_v23 = vpack.c.bf16 %v6329_v31, %v6328_v56  ;;  %v6364_v31 = vld [vmem:[%s11006_s5 + $0x288] sm:$0xff] }
 0x2d1   :  { %4211 = vmatmul.mubr.f32.gmra.mrb[62].mxu0 %v4064_v21  ;;  %7098 = vmatprep.subr.bf16.mxu1 %v11037_v55  ;;  %v7140_v17 = vpack.c.bf16 %v6356_v14, %v6355_v54  ;;  %v6363_v56 = vld [vmem:[%s11006_s5 + $0x280] sm:$0xff] }
 0x2d2   :  { %4338 = vmatmul.mubr.f32.gmra.mrb[82].mxu1 %v4064_v21  ;;  %6245 = vmatprep.mubr.msk.f32.mxu0 %vm3555_vm10, %v4070_v30  ;;  %v4381_v21 = vrot.slane %v9775_v9, 6  ;;  %v7152_v62 = vpack.c.bf16 %v6364_v31, %v6363_v56 }
 0x2d3   :  { %6272 = vmatprep.mubr.msk.f32.mxu1 %vm3555_vm10, %v4070_v30  ;;  %7072 = vmatpush1.bf16.msra.mxu0 %v7071_v2  ;;  %v4378_v2 = vsel %vm2160_vm6, %v4373_v58, %v4377_v44  ;;  %v4383_v58 = vrot.slane %v9792_v7, 6 }
 0x2d4   :  { %7100 = vmatpush1.bf16.msra.mxu1 %v7099_v27  ;;  %7073 = vmatprep.subr.bf16.mxu0 %v11037_v55  ;;  %v6357_v27 = vld [vmem:[%s11006_s5 + $0x250] sm:$0xff] }
 0x2d5   :  { %4216 = vmatmul.mubr.f32.gmra.mrb[64].mxu0 %v4068_v38  ;;  %7101 = vmatprep.subr.bf16.mxu1 %v11037_v55  ;;  %v7143_v30 = vpack.c.bf16 %v6358_v3, %v6357_v27  ;;  %v7155_v27 = vpack.c.bf16 %v6366_v32, %v6365_v57  ;;  %v4397_v3 = vrot.slane %v9905_v60, 6  ;;  %v6387_v32 = vld [vmem:[%s11008_s7 + $0x88] sm:$0xff] }
 0x2d6   :  { %4343 = vmatmul.mubr.f32.gmra.mrb[84].mxu1 %v4068_v38  ;;  %6246 = vmatprep.mubr.msk.f32.mxu0 %vm3555_vm10, %v4074_v13  ;;  %v4385_v38 = vrot.slane %v9798_v47, 6 }
 0x2d7   :  { %6273 = vmatprep.mubr.msk.f32.mxu1 %vm3555_vm10, %v4074_v13  ;;  %7075 = vmatpush1.bf16.msra.mxu0 %v7074_v50  ;;  %v4382_v50 = vsel %vm2160_vm6, %v4377_v44, %v4381_v21  ;;  %v4387_v44 = vrot.slane %v9818_v43, 6  ;;  %v6339_v43 = vld [vmem:[%s11005_s4 + $0x298] sm:$0xff] }
 0x2d8   :  { %7103 = vmatpush1.bf16.msra.mxu1 %v7102_v24  ;;  %7076 = vmatprep.subr.bf16.mxu0 %v11037_v55  ;;  %v6359_v24 = vld [vmem:[%s11006_s5 + $0x260] sm:$0xff] }
 0x2d9   :  { %4221 = vmatmul.mubr.f32.gmra.mrb[66].mxu0 %v4072_v42  ;;  %7104 = vmatprep.subr.bf16.mxu1 %v11037_v55  ;;  %v7146_v13 = vpack.c.bf16 %v6360_v12, %v6359_v24  ;;  %v4389_v14 = vsel %vm2160_vm6, %v4387_v44, %v4388_v52  ;;  %v7158_v24 = vpack.c.bf16 %v6368_v1, %v6367_v19  ;;  %v4401_v12 = vrot.slane %v9907_v4, 6 }
 0x2da   :  { %4348 = vmatmul.mubr.f32.gmra.mrb[86].mxu1 %v4072_v42  ;;  %6293 = vmatprep.mubr.msk.f32.mxu0 %vm3555_vm10, %v4374_v49  ;;  %v6361_v42 = vld [vmem:[%s11006_s5 + $0x270] sm:$0xff] }
 0x2db   :  { %7078 = vmatpush1.bf16.msra.mxu0 %v7077_v25  ;;  %6320 = vmatprep.mubr.msk.f32.mxu1 %vm3555_vm10, %v4374_v49  ;;  %v4386_v25 = vsel %vm2160_vm6, %v4381_v21, %v4385_v38  ;;  %v4384_v49 = vsel %vm2160_vm6, %v4379_v18, %v4383_v58  ;;  %v4403_v18 = vrot.slane %v9922_v61, 6  ;;  %v6369_v58 = vld [vmem:[%s11006_s5 + $0x2b0] sm:$0xff] }
 0x2dc   :  { %7106 = vmatpush1.bf16.msra.mxu1 %v7105_v51  ;;  %7079 = vmatprep.subr.bf16.mxu0 %v11037_v55  ;;  %v6362_v51 = vld [vmem:[%s11006_s5 + $0x278] sm:$0xff] }
 0x2dd   :  { %7107 = vmatprep.subr.bf16.mxu1 %v11037_v55  ;;  %v7149_v15 = vpack.c.bf16 %v6362_v51, %v6361_v42  ;;  %v6344_v42 = vld [vmem:[%s11005_s4 + $0x2c0] sm:$0xff]  ;;  %v6345_v51 = vld [vmem:[%s11005_s4 + $0x2c8] sm:$0xf] }
 0x2df   :  { %7082 = vmatpush1.bf16.msk.msra.mxu0 %vm9439_vm9, %v7080_v35  ;;  %v6336_v35 = vld [vmem:[%s11005_s4 + $0x280] sm:$0xff] }
 0x2e0   :  { %7110 = vmatpush1.bf16.msk.msra.mxu1 %vm9439_vm9, %v7108_v16  ;;  %7111 = vmatprep.subr.bf16.mxu0 %v11037_v55  ;;  %v6337_v16 = vld [vmem:[%s11005_s4 + $0x288] sm:$0xff] }
 0x2e1   :  { %7139 = vmatprep.subr.bf16.mxu1 %v11037_v55  ;;  %v7124_v54 = vpack.c.bf16 %v6337_v16, %v6336_v35 }
 0x2e2   :  { %4516 = vmatmul.mubr.f32.vlgmr.msra.gmra.mrb[68].mxu0 %v4371_v46 }
 0x2e3   :  { %4643 = vmatmul.mubr.f32.vlgmr.msra.gmra.mrb[88].mxu1 %v4371_v46  ;;  %6294 = vmatprep.mubr.msk.f32.mxu0 %vm3555_vm10, %v4378_v2  ;;  %v6338_v46 = vld [vmem:[%s11005_s4 + $0x290] sm:$0xff] }
 0x2e4   :  { %6321 = vmatprep.mubr.msk.f32.mxu1 %vm3555_vm10, %v4378_v2  ;;  %7113 = vmatpush1.bf16.msra.mxu0 %v7112_v23  ;;  %v4393_v23 = vrot.slane %v9877_v28, 6  ;;  %v7127_v2 = vpack.c.bf16 %v6339_v43, %v6338_v46 }
 0x2e5   :  { %7141 = vmatpush1.bf16.msra.mxu1 %v7140_v17  ;;  %7114 = vmatprep.subr.bf16.mxu0 %v11037_v55  ;;  %v4396_v17 = vsel %vm2160_vm6, %v4391_v34, %v4395_v45  ;;  %v7161_v34 = vpack.c.bf16 %v6370_v40, %v6369_v58 }
 0x2e6   :  { %4521 = vmatmul.mubr.f32.gmra.mrb[70].mxu0 %v4376_v39  ;;  %7142 = vmatprep.subr.bf16.mxu1 %v11037_v55  ;;  %v4394_v21 = vsel %vm2160_vm6, %v4388_v52, %v4393_v23  ;;  %v4398_v38 = vsel %vm2160_vm6, %v4393_v23, %v4397_v3  ;;  %v6386_v23 = vld [vmem:[%s11008_s7 + $0x80] sm:$0xff] }
 0x2e7   :  { %4648 = vmatmul.mubr.f32.gmra.mrb[90].mxu1 %v4376_v39  ;;  %6295 = vmatprep.mubr.msk.f32.mxu0 %vm3555_vm10, %v4382_v50  ;;  %v6341_v39 = vld [vmem:[%s11005_s4 + $0x2a8] sm:$0xff] }
 0x2e8   :  { %6322 = vmatprep.mubr.msk.f32.mxu1 %vm3555_vm10, %v4382_v50  ;;  %7116 = vmatpush1.bf16.msra.mxu0 %v7115_v53  ;;  %v6340_v53 = vld [vmem:[%s11005_s4 + $0x2a0] sm:$0xff] }
 0x2e9   :  { %7144 = vmatpush1.bf16.msra.mxu1 %v7143_v30  ;;  %7117 = vmatprep.subr.bf16.mxu0 %v11037_v55  ;;  %v4400_v30 = vsel %vm2160_vm6, %v4395_v45, %v4399_v11  ;;  %v7130_v50 = vpack.c.bf16 %v6341_v39, %v6340_v53 }
 0x2ea   :  { %4526 = vmatmul.mubr.f32.gmra.mrb[72].mxu0 %v4380_v41  ;;  %7145 = vmatprep.subr.bf16.mxu1 %v11037_v55 }
 0x2eb   :  { %4653 = vmatmul.mubr.f32.gmra.mrb[92].mxu1 %v4380_v41  ;;  %6296 = vmatprep.mubr.msk.f32.mxu0 %vm3555_vm10, %v4386_v25  ;;  %v6343_v41 = vld [vmem:[%s11005_s4 + $0x2b8] sm:$0xff] }
 0x2ec   :  { %6323 = vmatprep.mubr.msk.f32.mxu1 %vm3555_vm10, %v4386_v25  ;;  %7119 = vmatpush1.bf16.msra.mxu0 %v7118_v33  ;;  %v6342_v33 = vld [vmem:[%s11005_s4 + $0x2b0] sm:$0xff]  ;;  %v4402_v25 = vsel %vm2160_vm6, %v4397_v3, %v4401_v12 }
 0x2ed   :  { %7147 = vmatpush1.bf16.msra.mxu1 %v7146_v13  ;;  %7120 = vmatprep.subr.bf16.mxu0 %v11037_v55  ;;  %v4404_v13 = vsel %vm2160_vm6, %v4399_v11, %v4403_v18  ;;  %v7133_v22 = vpack.c.bf16 %v6343_v41, %v6342_v33 }
 0x2ee   :  { %4531 = vmatmul.mubr.f32.gmra.mrb[74].mxu0 %v4384_v49  ;;  %7148 = vmatprep.subr.bf16.mxu1 %v11037_v55 }
 0x2ef   :  { %4658 = vmatmul.mubr.f32.gmra.mrb[94].mxu1 %v4384_v49  ;;  %6297 = vmatprep.mubr.msk.f32.mxu0 %vm3555_vm10, %v4392_v36  ;;  %v7136_v49 = vpack.c.bf16 %v6345_v51, %v6344_v42 }
 0x2f0   :  { %6324 = vmatprep.mubr.msk.f32.mxu1 %vm3555_vm10, %v4392_v36  ;;  %7122 = vmatpush1.bf16.msra.mxu0 %v7121_v26  ;;  %v6372_v26 = vld [vmem:[%s11006_s5 + $0x2c8] sm:$0xf] }
 0x2f1   :  { %7150 = vmatpush1.bf16.msra.mxu1 %v7149_v15  ;;  %7123 = vmatprep.subr.bf16.mxu0 %v11037_v55  ;;  %v7164_v15 = vpack.c.bf16 %v6372_v26, %v6371_v5 }
 0x2f2   :  { %4536 = vmatmul.mubr.f32.gmra.mrb[76].mxu0 %v4389_v14  ;;  %7151 = vmatprep.subr.bf16.mxu1 %v11037_v55 }
 0x2f3   :  { %4663 = vmatmul.mubr.f32.gmra.mrb[96].mxu1 %v4389_v14  ;;  %6298 = vmatprep.mubr.msk.f32.mxu0 %vm3555_vm10, %v4396_v17 }
 0x2f4   :  { %6325 = vmatprep.mubr.msk.f32.mxu1 %vm3555_vm10, %v4396_v17  ;;  %7125 = vmatpush1.bf16.msra.mxu0 %v7124_v54 }
 0x2f5   :  { %7153 = vmatpush1.bf16.msra.mxu1 %v7152_v62  ;;  %7126 = vmatprep.subr.bf16.mxu0 %v11037_v55  ;;  %v6385_v62 = vld [vmem:[%s11008_s7 + $0x78] sm:$0xff] }
 0x2f6   :  { %4541 = vmatmul.mubr.f32.gmra.mrb[78].mxu0 %v4394_v21  ;;  %7154 = vmatprep.subr.bf16.mxu1 %v11037_v55  ;;  %v7171_v17 = vpack.c.bf16 %v6386_v23, %v6385_v62 }
 0x2f7   :  { %4668 = vmatmul.mubr.f32.gmra.mrb[98].mxu1 %v4394_v21  ;;  %6299 = vmatprep.mubr.msk.f32.mxu0 %vm3555_vm10, %v4400_v30 }
 0x2f8   :  { %6326 = vmatprep.mubr.msk.f32.mxu1 %vm3555_vm10, %v4400_v30  ;;  %7128 = vmatpush1.bf16.msra.mxu0 %v7127_v2  ;;  %v6388_v2 = vld [vmem:[%s11008_s7 + $0x90] sm:$0xff] }
 0x2f9   :  { %7156 = vmatpush1.bf16.msra.mxu1 %v7155_v27  ;;  %7129 = vmatprep.subr.bf16.mxu0 %v11037_v55  ;;  %v7175_v3 = vpack.c.bf16 %v6388_v2, %v6387_v32 }
 0x2fa   :  { %4546 = vmatmul.mubr.f32.gmra.mrb[80].mxu0 %v4398_v38  ;;  %7157 = vmatprep.subr.bf16.mxu1 %v11037_v55 }
 0x2fb   :  { %4673 = vmatmul.mubr.f32.gmra.mrb[100].mxu1 %v4398_v38  ;;  %6300 = vmatprep.mubr.msk.f32.mxu0 %vm3555_vm10, %v4404_v13  ;;  %v6389_v38 = vld [vmem:[%s11008_s7 + $0x98] sm:$0xff] }
 0x2fc   :  { %6327 = vmatprep.mubr.msk.f32.mxu1 %vm3555_vm10, %v4404_v13  ;;  %7131 = vmatpush1.bf16.msra.mxu0 %v7130_v50 }
 0x2fd   :  { %7159 = vmatpush1.bf16.msra.mxu1 %v7158_v24  ;;  %7132 = vmatprep.subr.bf16.mxu0 %v11037_v55  ;;  %v6390_v24 = vld [vmem:[%s11008_s7 + $0xa0] sm:$0xff] }
 0x2fe   :  { %4551 = vmatmul.mubr.f32.gmra.mrb[82].mxu0 %v4402_v25  ;;  %7160 = vmatprep.subr.bf16.mxu1 %v11037_v55  ;;  %v7179_v12 = vpack.c.bf16 %v6390_v24, %v6389_v38 }
 0x2ff   :  { %4678 = vmatmul.mubr.f32.gmra.mrb[102].mxu1 %v4402_v25  ;;  %6347 = vmatprep.mubr.msk.f32.mxu0 %vm3555_vm10, %v9738_v8 }
 0x300   :  { %7134 = vmatpush1.bf16.msra.mxu0 %v7133_v22  ;;  %6374 = vmatprep.mubr.msk.f32.mxu1 %vm3555_vm10, %v9738_v8 }
 0x301   :  { %7162 = vmatpush1.bf16.msra.mxu1 %v7161_v34  ;;  %7135 = vmatprep.subr.bf16.mxu0 %v11037_v55 }
 0x302   :  { %7163 = vmatprep.subr.bf16.mxu1 %v11037_v55 }
 0x304   :  { %7138 = vmatpush1.bf16.msk.msra.mxu0 %vm9439_vm9, %v7136_v49  ;;  %v6391_v49 = vld [vmem:[%s11008_s7 + $0xa8] sm:$0xff] }
 0x305   :  { %7166 = vmatpush1.bf16.msk.msra.mxu1 %vm9439_vm9, %v7164_v15  ;;  %v6392_v15 = vld [vmem:[%s11008_s7 + $0xb0] sm:$0xff] }
 0x307   :  { %4790 = vmatmul.mubr.f32.vlgmr.msra.gmra.mrb[84].mxu0 %v11057_v20 }
 0x308   :  { %4917 = vmatmul.mubr.f32.vlgmr.msra.gmra.mrb[104].mxu1 %v11057_v20  ;;  %6348 = vmatprep.mubr.msk.f32.mxu0 %vm3555_vm10, %v9754_v10 }
 0x309   :  { %6375 = vmatprep.mubr.msk.f32.mxu1 %vm3555_vm10, %v9754_v10 }
 0x30b   :  { %4795 = vmatmul.mubr.f32.gmra.mrb[86].mxu0 %v9748_v48 }
 0x30c   :  { %4922 = vmatmul.mubr.f32.gmra.mrb[106].mxu1 %v9748_v48  ;;  %6349 = vmatprep.mubr.msk.f32.mxu0 %vm3555_vm10, %v9775_v9 }
 0x30d   :  { %6376 = vmatprep.mubr.msk.f32.mxu1 %vm3555_vm10, %v9775_v9 }
 0x30f   :  { %4800 = vmatmul.mubr.f32.gmra.mrb[88].mxu0 %v9766_v63 }
 0x310   :  { %4927 = vmatmul.mubr.f32.gmra.mrb[108].mxu1 %v9766_v63  ;;  %6350 = vmatprep.mubr.msk.f32.mxu0 %vm3555_vm10, %v9798_v47 }
 0x311   :  { %6377 = vmatprep.mubr.msk.f32.mxu1 %vm3555_vm10, %v9798_v47 }
 0x313   :  { %4805 = vmatmul.mubr.f32.gmra.mrb[90].mxu0 %v9792_v7 }
 0x314   :  { %4932 = vmatmul.mubr.f32.gmra.mrb[110].mxu1 %v9792_v7  ;;  %6351 = vmatprep.mubr.msk.f32.mxu0 %vm3555_vm10, %v9851_v6 }
 0x315   :  { %6378 = vmatprep.mubr.msk.f32.mxu1 %vm3555_vm10, %v9851_v6 }
 0x317   :  { %4810 = vmatmul.mubr.f32.gmra.mrb[92].mxu0 %v9843_v0 }
 0x318   :  { %4937 = vmatmul.mubr.f32.gmra.mrb[112].mxu1 %v9843_v0  ;;  %6352 = vmatprep.mubr.msk.f32.mxu0 %vm3555_vm10, %v9881_v29 }
 0x319   :  { %6379 = vmatprep.mubr.msk.f32.mxu1 %vm3555_vm10, %v9881_v29 }
 0x31b   :  { %4815 = vmatmul.mubr.f32.gmra.mrb[94].mxu0 %v9877_v28 }
 0x31c   :  { %4942 = vmatmul.mubr.f32.gmra.mrb[114].mxu1 %v9877_v28  ;;  %6353 = vmatprep.mubr.msk.f32.mxu0 %vm3555_vm10, %v9920_v59 }
 0x31d   :  { %6380 = vmatprep.mubr.msk.f32.mxu1 %vm3555_vm10, %v9920_v59 }
 0x31f   :  { %4820 = vmatmul.mubr.f32.gmra.mrb[96].mxu0 %v9905_v60 }
 0x320   :  { %4947 = vmatmul.mubr.f32.gmra.mrb[116].mxu1 %v9905_v60  ;;  %6354 = vmatprep.mubr.msk.f32.mxu0 %vm3555_vm10, %v9922_v61 }
 0x321   :  { %6381 = vmatprep.mubr.msk.f32.mxu1 %vm3555_vm10, %v9922_v61  ;;  %v6384_v61 = vld [vmem:[%s11008_s7 + $0x70] sm:$0xff] }
 0x323   :  { %4825 = vmatmul.mubr.f32.gmra.mrb[98].mxu0 %v9907_v4 }
 0x324   :  { %4952 = vmatmul.mubr.f32.gmra.mrb[118].mxu1 %v9907_v4  ;;  %v6383_v4 = vld [vmem:[%s11008_s7 + $0x68] sm:$0xff] }
 0x325   :  { %v7167_v52 = vpack.c.bf16 %v6384_v61, %v6383_v4 }
 0x327   :  { %7168 = vmatprep.subr.bf16.mxu0 %v7167_v52 }
 0x328   :  { %7170 = vmatpush3.bf16.msra.mxu0 %v7167_v52 }
 0x329   :  { %7172 = vmatprep.subr.bf16.mxu0 %v7171_v17 }
 0x32c   :  { %7174 = vmatpush3.bf16.msra.mxu0 %v7171_v17 }
 0x32d   :  { %7176 = vmatprep.subr.bf16.mxu0 %v7175_v3 }
 0x330   :  { %7178 = vmatpush3.bf16.msra.mxu0 %v7175_v3 }
 0x331   :  { %7180 = vmatprep.subr.bf16.mxu0 %v7179_v12 }
 0x334   :  { %7182 = vmatpush3.bf16.msra.mxu0 %v7179_v12 }
 0x341   :  { %v3641_v8 = vpop.f32.mrb[20].mxu0  ;;  %v3768_v10 = vpop.f32.mrb[40].mxu1 }
 0x342   :  { %v3643_v48 = vpop.f32.mrb[21].mxu0  ;;  %v3770_v63 = vpop.f32.mrb[41].mxu1 }
 0x343   :  { %v6393_v48 = vld [vmem:[%s11008_s7 + $0xb8] sm:$0xff]  ;;  %v6394_v63 = vld [vmem:[%s11008_s7 + $0xc0] sm:$0xff] }
 0x348   :  { %v3646_v9 = vpop.f32.mrb[22].mxu0  ;;  %v3773_v55 = vpop.f32.mrb[42].mxu1 }
 0x349   :  { %v3648_v7 = vpop.f32.mrb[23].mxu0  ;;  %v3775_v47 = vpop.f32.mrb[43].mxu1 }
 0x34a   :  { %v7187_v47 = vpack.c.bf16 %v6394_v63, %v6393_v48 }
 0x34c   :  { %v3651_v0 = vpop.f32.mrb[24].mxu0 }
 0x34d   :  { %v3778_v6 = vpop.f32.mrb[44].mxu1  ;;  %v3653_v28 = vpop.f32.mrb[25].mxu0 }
 0x34e   :  { %v3780_v29 = vpop.f32.mrb[45].mxu1 }
 0x350   :  { %v10565_v60 = vpop.f32.mrb[26].mxu0 }
 0x351   :  { %v3658_v37 = vpop.f32.mrb[27].mxu0 }
 0x353   :  { %v10567_v59 = vpop.f32.mrb[46].mxu1 }
 0x354   :  { %v3785_v20 = vpop.f32.mrb[47].mxu1 }
 0x359   :  { %v10577_v16 = vpop.f32.mrb[48].mxu1 }
 0x35a   :  { %v3790_v45 = vpop.f32.mrb[49].mxu1 }
 0x35b   :  { %v10575_v35 = vpop.f32.mrb[28].mxu0 }
 0x35c   :  { %v3663_v36 = vpop.f32.mrb[29].mxu0 }
 0x35f   :  { %v10579_v56 = vpop.f32.mrb[30].mxu0 }
 0x360   :  { %v10581_v31 = vpop.f32.mrb[50].mxu1  ;;  %v3668_v44 = vpop.f32.mrb[31].mxu0 }
 0x361   :  { %v3795_v54 = vpop.f32.mrb[51].mxu1 }
 0x362   :  { %v5062_v54 = vld [vmem:[%s11008_s7 + $0x8] sm:$0xff] }
 0x363   :  { %v10583_v14 = vpop.f32.mrb[32].mxu0 }
 0x364   :  { %v10591_v46 = vpop.f32.mrb[52].mxu1  ;;  %v3673_v43 = vpop.f32.mrb[33].mxu0 }
 0x365   :  { %v3800_v11 = vpop.f32.mrb[53].mxu1 }
 0x367   :  { %v10593_v57 = vpop.f32.mrb[34].mxu0 }
 0x368   :  { %v10601_v21 = vpop.f32.mrb[54].mxu1  ;;  %v3678_v27 = vpop.f32.mrb[35].mxu0 }
 0x369   :  { %v3805_v53 = vpop.f32.mrb[55].mxu1 }
 0x36c   :  { %v3892_v39 = vpop.f32.mrb[36].mxu0 }
 0x36d   :  { %v10603_v30 = vadd.f32 %v3892_v39, %v3641_v8  ;;  %v4000_v18 = vpop.f32.mrb[56].mxu1  ;;  %v3894_v19 = vpop.f32.mrb[37].mxu0 }
 0x36e   :  { %v10605_v1 = vadd.f32 %v4000_v18, %v3768_v10  ;;  %v4002_v50 = vpop.f32.mrb[57].mxu1  ;;  %v7183_v10 = vpack.c.bf16 %v6392_v15, %v6391_v49 }
 0x370   :  { %v3897_v33 = vpop.f32.mrb[38].mxu0  ;;  %7184 = vmatprep.subr.bf16.mxu0 %v7183_v10 }
 0x371   :  { %v10613_v41 = vadd.f32 %v3897_v33, %v3646_v9  ;;  %v4005_v13 = vpop.f32.mrb[58].mxu1  ;;  %v3899_v58 = vpop.f32.mrb[39].mxu0  ;;  %7186 = vmatpush3.bf16.msra.mxu0 %v7183_v10 }
 0x372   :  { %v10615_v40 = vadd.f32 %v4005_v13, %v3773_v55  ;;  %v4007_v22 = vpop.f32.mrb[59].mxu1  ;;  %7188 = vmatprep.subr.bf16.mxu0 %v7187_v47 }
 0x374   :  { %v3902_v25 = vpop.f32.mrb[40].mxu0 }
 0x375   :  { %v10617_v34 = vadd.f32 %v3902_v25, %v3651_v0  ;;  %v4010_v42 = vpop.f32.mrb[60].mxu1  ;;  %v3904_v51 = vpop.f32.mrb[41].mxu0  ;;  %7190 = vmatpush3.bf16.msra.mxu0 %v7187_v47 }
 0x376   :  { %v10619_v5 = vadd.f32 %v4010_v42, %v3778_v6  ;;  %v4012_v26 = vpop.f32.mrb[61].mxu1 }
 0x378   :  { %v3907_v8 = vpop.f32.mrb[42].mxu0 }
 0x379   :  { %v3908_v9 = vadd.f32 %v3907_v8, %v10565_v60  ;;  %v4015_v55 = vpop.f32.mrb[62].mxu1  ;;  %v3909_v7 = vpop.f32.mrb[43].mxu0  ;;  %v6395_v60 = vld [vmem:[%s11008_s7 + $0xc8] sm:$0xf] }
 0x37a   :  { %v4016_v0 = vadd.f32 %v4015_v55, %v10567_v59  ;;  %v4017_v6 = vpop.f32.mrb[63].mxu1  ;;  %6587 = vmatprep.subr.msk.mxu0 %vm137_vm0, %v6395_v60 }
 0x37b   :  { %6588 = vmatpush3.msk.msra.mxu0 %vm137_vm0, %v6395_v60 }
 0x37c   :  { %v3912_v28 = vpop.f32.mrb[44].mxu0 }
 0x37d   :  { %v3913_v29 = vadd.f32 %v3912_v28, %v10575_v35  ;;  %v4020_v4 = vpop.f32.mrb[64].mxu1  ;;  %v3914_v61 = vpop.f32.mrb[45].mxu0 }
 0x37e   :  { %v4021_v37 = vadd.f32 %v4020_v4, %v10577_v16  ;;  %v4022_v20 = vpop.f32.mrb[65].mxu1  ;;  %v5061_v16 = vld [vmem:[%s11008_s7] sm:$0xff] }
 0x37f   :  { %v10650_v23 = vpack.c.bf16 %v5062_v54, %v5061_v16 }
 0x380   :  { %v3917_v52 = vpop.f32.mrb[46].mxu0 }
 0x381   :  { %v3918_v59 = vadd.f32 %v3917_v52, %v10579_v56  ;;  %v4025_v36 = vpop.f32.mrb[66].mxu1  ;;  %v3919_v45 = vpop.f32.mrb[47].mxu0  ;;  %7192 = vmatprep.subr.bf16.mxu0 %v10650_v23 }
 0x382   :  { %v4026_v44 = vadd.f32 %v4025_v36, %v10581_v31  ;;  %v4027_v35 = vpop.f32.mrb[67].mxu1 }
 0x384   :  { %v3922_v62 = vpop.f32.mrb[48].mxu0 }
 0x385   :  { %v3923_v56 = vadd.f32 %v3922_v62, %v10583_v14  ;;  %v4030_v43 = vpop.f32.mrb[68].mxu1  ;;  %v3924_v17 = vpop.f32.mrb[49].mxu0 }
 0x386   :  { %v4031_v31 = vadd.f32 %v4030_v43, %v10591_v46  ;;  %v4032_v11 = vpop.f32.mrb[69].mxu1 }
 0x388   :  { %v3927_v32 = vpop.f32.mrb[50].mxu0 }
 0x389   :  { %v3928_v2 = vadd.f32 %v3927_v32, %v10593_v57  ;;  %v4035_v27 = vpop.f32.mrb[70].mxu1  ;;  %v3929_v3 = vpop.f32.mrb[51].mxu0 }
 0x38a   :  { %v4036_v53 = vadd.f32 %v4035_v27, %v10601_v21  ;;  %v4037_v39 = vpop.f32.mrb[71].mxu1 }
 0x390   :  { %v4187_v18 = vpop.f32.mrb[52].mxu0 }
 0x391   :  { %v4353_v19 = vadd.f32 %v4187_v18, %v10603_v30  ;;  %v4314_v50 = vpop.f32.mrb[72].mxu1  ;;  %v4189_v14 = vpop.f32.mrb[53].mxu0 }
 0x392   :  { %v4361_v38 = vadd.f32 %v4314_v50, %v10605_v1  ;;  %v4316_v24 = vpop.f32.mrb[73].mxu1 }
 0x394   :  { %v4192_v46 = vpop.f32.mrb[54].mxu0 }
 0x395   :  { %v4354_v12 = vadd.f32 %v4192_v46, %v10613_v41  ;;  %v4319_v33 = vpop.f32.mrb[74].mxu1  ;;  %v4194_v13 = vpop.f32.mrb[55].mxu0 }
 0x396   :  { %v4362_v57 = vadd.f32 %v4319_v33, %v10615_v40  ;;  %v4321_v58 = vpop.f32.mrb[75].mxu1 }
 0x398   :  { %v4197_v22 = vpop.f32.mrb[56].mxu0 }
 0x399   :  { %v4355_v21 = vadd.f32 %v4197_v22, %v10617_v34  ;;  %v4324_v25 = vpop.f32.mrb[76].mxu1  ;;  %v4199_v42 = vpop.f32.mrb[57].mxu0 }
 0x39a   :  { %v4363_v30 = vadd.f32 %v4324_v25, %v10619_v5  ;;  %v4326_v51 = vpop.f32.mrb[77].mxu1 }
 0x39c   :  { %v4202_v26 = vpop.f32.mrb[58].mxu0 }
 0x39d   :  { %v4356_v49 = vadd.f32 %v4202_v26, %v3908_v9  ;;  %v4329_v1 = vpop.f32.mrb[78].mxu1  ;;  %v4204_v15 = vpop.f32.mrb[59].mxu0 }
 0x39e   :  { %v4364_v8 = vadd.f32 %v4329_v1, %v4016_v0  ;;  %v4331_v10 = vpop.f32.mrb[79].mxu1 }
 0x3a0   :  { %v4207_v41 = vpop.f32.mrb[60].mxu0 }
 0x3a1   :  { %v4357_v48 = vadd.f32 %v4207_v41, %v3913_v29  ;;  %v4334_v63 = vpop.f32.mrb[80].mxu1  ;;  %v4209_v55 = vpop.f32.mrb[61].mxu0 }
 0x3a2   :  { %v4365_v40 = vadd.f32 %v4334_v63, %v4021_v37  ;;  %v4336_v7 = vpop.f32.mrb[81].mxu1 }
 0x3a4   :  { %v4212_v47 = vpop.f32.mrb[62].mxu0 }
 0x3a5   :  { %v4358_v6 = vadd.f32 %v4212_v47, %v3918_v59  ;;  %v4339_v34 = vpop.f32.mrb[82].mxu1  ;;  %v4214_v28 = vpop.f32.mrb[63].mxu0 }
 0x3a6   :  { %v4366_v4 = vadd.f32 %v4339_v34, %v4026_v44  ;;  %v4341_v61 = vpop.f32.mrb[83].mxu1 }
 0x3a8   :  { %v4217_v5 = vpop.f32.mrb[64].mxu0 }
 0x3a9   :  { %v4359_v20 = vadd.f32 %v4217_v5, %v3923_v56  ;;  %v4344_v60 = vpop.f32.mrb[84].mxu1  ;;  %v4219_v9 = vpop.f32.mrb[65].mxu0 }
 0x3aa   :  { %v4367_v52 = vadd.f32 %v4344_v60, %v4031_v31  ;;  %v4346_v36 = vpop.f32.mrb[85].mxu1 }
 0x3ac   :  { %v4222_v0 = vpop.f32.mrb[66].mxu0 }
 0x3ad   :  { %v4360_v45 = vadd.f32 %v4222_v0, %v3928_v2  ;;  %v4349_v35 = vpop.f32.mrb[86].mxu1  ;;  %v4224_v29 = vpop.f32.mrb[67].mxu0 }
 0x3ae   :  { %v4368_v16 = vadd.f32 %v4349_v35, %v4036_v53  ;;  %v4351_v54 = vpop.f32.mrb[87].mxu1 }
 0x3b5   :  { %v4517_v37 = vpop.f32.mrb[68].mxu0 }
 0x3b6   :  { %v4683_v62 = vadd.f32 %v4517_v37, %v4353_v19  ;;  %v4644_v43 = vpop.f32.mrb[88].mxu1  ;;  %v4519_v59 = vpop.f32.mrb[69].mxu0 }
 0x3b7   :  { %v4691_v17 = vadd.f32 %v4644_v43, %v4361_v38  ;;  %v4646_v11 = vpop.f32.mrb[89].mxu1 }
 0x3b9   :  { %v4522_v44 = vpop.f32.mrb[70].mxu0 }
 0x3ba   :  { %v4684_v32 = vadd.f32 %v4522_v44, %v4354_v12  ;;  %v4649_v27 = vpop.f32.mrb[90].mxu1  ;;  %v4524_v56 = vpop.f32.mrb[71].mxu0 }
 0x3bb   :  { %v4692_v3 = vadd.f32 %v4649_v27, %v4362_v57  ;;  %v4651_v39 = vpop.f32.mrb[91].mxu1 }
 0x3bd   :  { %v4527_v31 = vpop.f32.mrb[72].mxu0 }
 0x3be   :  { %v4685_v18 = vadd.f32 %v4527_v31, %v4355_v21  ;;  %v4654_v50 = vpop.f32.mrb[92].mxu1  ;;  %v4529_v2 = vpop.f32.mrb[73].mxu0 }
 0x3bf   :  { %v4693_v14 = vadd.f32 %v4654_v50, %v4363_v30  ;;  %v4656_v24 = vpop.f32.mrb[93].mxu1 }
 0x3c0   :  { %v5649_v24 = vld [vmem:[%s11010_s9 + $0x8] sm:$0xff] }
 0x3c1   :  { %v4532_v53 = vpop.f32.mrb[74].mxu0 }
 0x3c2   :  { %v10663_v46 = vadd.f32 %v4532_v53, %v4356_v49  ;;  %v4659_v19 = vpop.f32.mrb[94].mxu1  ;;  %v4534_v33 = vpop.f32.mrb[75].mxu0  ;;  %v5650_v53 = vld [vmem:[%s11010_s9 + $0x10] sm:$0xff] }
 0x3c3   :  { %v10665_v13 = vadd.f32 %v4659_v19, %v4364_v8  ;;  %v4661_v38 = vpop.f32.mrb[95].mxu1 }
 0x3c4   :  { %v5651_v38 = vld [vmem:[%s11010_s9 + $0x18] sm:$0xff] }
 0x3c5   :  { %v4537_v58 = vpop.f32.mrb[76].mxu0 }
 0x3c6   :  { %v10667_v12 = vadd.f32 %v4537_v58, %v4357_v48  ;;  %v4664_v22 = vpop.f32.mrb[96].mxu1  ;;  %v4539_v57 = vpop.f32.mrb[77].mxu0 }
 0x3c7   :  { %v10669_v25 = vadd.f32 %v4664_v22, %v4365_v40  ;;  %v4666_v21 = vpop.f32.mrb[97].mxu1 }
 0x3c9   :  { %v4542_v42 = vpop.f32.mrb[78].mxu0 }
 0x3ca   :  { %v10671_v51 = vadd.f32 %v4542_v42, %v4358_v6  ;;  %v4669_v30 = vpop.f32.mrb[98].mxu1  ;;  %v4544_v26 = vpop.f32.mrb[79].mxu0  ;;  %v7291_v42 = vpack.c.bf16 %v5651_v38, %v5650_v53  ;;  %v5064_v38 = vld [vmem:[%s11008_s7 + $0x18] sm:$0xff] }
 0x3cb   :  { %v10673_v49 = vadd.f32 %v4669_v30, %v4366_v4  ;;  %v4671_v1 = vpop.f32.mrb[99].mxu1  ;;  %v10686_v4 = vld [vmem:[%s11009_s6] ss:$0 sm:$0xff]  ;;  %v5653_v26 = vld [vmem:[%s11010_s9 + $0x28] sm:$0xff] }
 0x3cc   :  { %v5652_v30 = vld [vmem:[%s11010_s9 + $0x20] sm:$0xff] }
 0x3cd   :  { %v4547_v15 = vpop.f32.mrb[80].mxu0 }
 0x3ce   :  { %v10675_v8 = vadd.f32 %v4547_v15, %v4359_v20  ;;  %v4674_v10 = vpop.f32.mrb[100].mxu1  ;;  %v4549_v41 = vpop.f32.mrb[81].mxu0 }
 0x3cf   :  { %v10677_v48 = vadd.f32 %v4674_v10, %v4367_v52  ;;  %v4676_v63 = vpop.f32.mrb[101].mxu1 }
 0x3d1   :  { %v4552_v55 = vpop.f32.mrb[82].mxu0 }
 0x3d2   :  { %v10679_v40 = vadd.f32 %v4552_v55, %v4360_v45  ;;  %v4679_v7 = vpop.f32.mrb[102].mxu1  ;;  %v4554_v47 = vpop.f32.mrb[83].mxu0 }
 0x3d3   :  { %v10681_v6 = vadd.f32 %v4679_v7, %v4368_v16  ;;  %v4681_v34 = vpop.f32.mrb[103].mxu1 }
 0x3da   :  { %v4791_v28 = vpop.f32.mrb[84].mxu0 }
 0x3db   :  { %v4957_v61 = vadd.f32 %v4791_v28, %v4683_v62  ;;  %v4918_v5 = vpop.f32.mrb[104].mxu1  ;;  %v4793_v20 = vpop.f32.mrb[85].mxu0  ;;  %v7295_v28 = vpack.c.bf16 %v5653_v26, %v5652_v30 }
 0x3dc   :  { %v4965_v60 = vadd.f32 %v4918_v5, %v4691_v17  ;;  %v4920_v9 = vpop.f32.mrb[105].mxu1 }
 0x3dd   :  { %v4980_v52 = vadd.f32 %v10686_v4, %v4957_v61 }
 0x3de   :  { %v4996_v36 = vadd.f32 %v10686_v4, %v4965_v60  ;;  %v4796_v0 = vpop.f32.mrb[86].mxu0 }
 0x3df   :  { %v4988_v45 = vmax.f32 %v4980_v52, 0.0  ;;  %v4958_v35 = vadd.f32 %v4796_v0, %v4684_v32  ;;  %v4923_v29 = vpop.f32.mrb[106].mxu1  ;;  %v4798_v16 = vpop.f32.mrb[87].mxu0 }
 0x3e0   :  { %v5004_v54 = vmax.f32 %v4996_v36, 0.0  ;;  %v4966_v37 = vadd.f32 %v4923_v29, %v4692_v3  ;;  %v4925_v43 = vpop.f32.mrb[107].mxu1  ;;  %v5648_v3 = vld [vmem:[%s11010_s9] sm:$0xff] }
 0x3e1   :  { %v4981_v59 = vadd.f32 %v10686_v4, %v4958_v35 }
 0x3e2   :  { %v10691_v11 = vmax.f32 %v4988_v45, %v5004_v54  ;;  %v4997_v62 = vadd.f32 %v10686_v4, %v4966_v37  ;;  %v4801_v17 = vpop.f32.mrb[88].mxu0 }
 0x3e3   :  { %v4989_v44 = vmax.f32 %v4981_v59, 0.0  ;;  %v4959_v27 = vadd.f32 %v4801_v17, %v4685_v18  ;;  %v4928_v56 = vpop.f32.mrb[108].mxu1  ;;  %v4803_v39 = vpop.f32.mrb[89].mxu0 }
 0x3e4   :  { %v5005_v31 = vmax.f32 %v4997_v62, 0.0  ;;  %v4967_v50 = vadd.f32 %v4928_v56, %v4693_v14  ;;  %v4930_v2 = vpop.f32.mrb[109].mxu1  ;;  %v7287_v14 = vpack.c.bf16 %v5649_v24, %v5648_v3  ;;  %v5028_v1 = vrot.slane %v10691_v11, 2 }
 0x3e5   :  { %v4982_v32 = vadd.f32 %v10686_v4, %v4959_v27 }
 0x3e6   :  { %v5013_v18 = vmax.f32 %v4989_v44, %v5005_v31  ;;  %v4998_v19 = vadd.f32 %v10686_v4, %v4967_v50  ;;  %v4806_v33 = vpop.f32.mrb[90].mxu0  ;;  %7288 = vmatprep.subr.bf16.mxu1 %v7287_v14 }
 0x3e7   :  { %v4990_v58 = vmax.f32 %v4982_v32, 0.0  ;;  %v4960_v22 = vadd.f32 %v4806_v33, %v10663_v46  ;;  %v4933_v57 = vpop.f32.mrb[110].mxu1  ;;  %v4808_v21 = vpop.f32.mrb[91].mxu0  ;;  %7290 = vmatpush3.bf16.msra.mxu1 %v7287_v14  ;;  %v5063_v14 = vld [vmem:[%s11008_s7 + $0x10] sm:$0xff] }
 0x3e8   :  { %v5029_v15 = vrot.slane %v5013_v18, 2  ;;  %v5006_v10 = vmax.f32 %v4998_v19, 0.0  ;;  %v4968_v41 = vadd.f32 %v4933_v57, %v10665_v13  ;;  %v4935_v63 = vpop.f32.mrb[111].mxu1  ;;  %7292 = vmatprep.subr.bf16.mxu1 %v7291_v42 }
 0x3e9   :  { %v4983_v46 = vadd.f32 %v10686_v4, %v4960_v22 }
 0x3ea   :  { %v5014_v55 = vmax.f32 %v4990_v58, %v5006_v10  ;;  %v4999_v7 = vadd.f32 %v10686_v4, %v4968_v41  ;;  %v4811_v47 = vpop.f32.mrb[92].mxu0  ;;  %v5030_v34 = vsel %vm693_vm3, %v5028_v1, %v5029_v15  ;;  %v7195_v41 = vpack.c.bf16 %v5064_v38, %v5063_v14  ;;  %v6406_v14 = vld [vmem:[%s11008_s7 + $0xd0] sm:$0xff]  ;;  %v6407_v38 = vld [vmem:[%s11008_s7 + $0xd8] sm:$0xff] }
 0x3eb   :  { %v4991_v61 = vmax.f32 %v4983_v46, 0.0  ;;  %v4961_v5 = vadd.f32 %v4811_v47, %v10667_v12  ;;  %v4938_v20 = vpop.f32.mrb[112].mxu1  ;;  %v4813_v13 = vpop.f32.mrb[93].mxu0  ;;  %v10724_v60 = vmax.f32 %v10691_v11, %v5030_v34  ;;  %7294 = vmatpush3.bf16.msra.mxu1 %v7291_v42  ;;  %v5065_v34 = vld [vmem:[%s11008_s7 + $0x20] sm:$0xff] }
 0x3ec   :  { %v5031_v9 = vrot.slane %v5014_v55, 2  ;;  %v5007_v52 = vmax.f32 %v4999_v7, 0.0  ;;  %v4969_v36 = vadd.f32 %v4938_v20, %v10669_v25  ;;  %v4940_v0 = vpop.f32.mrb[113].mxu1  ;;  %7296 = vmatprep.subr.bf16.mxu1 %v7295_v28  ;;  %v5654_v25 = vld [vmem:[%s11010_s9 + $0x30] sm:$0x3] }
 0x3ed   :  { %v4984_v45 = vadd.f32 %v10686_v4, %v4961_v5  ;;  %v5080_v31 = vrot.slane %v10724_v60, 4 }
 0x3ee   :  { %v5032_v35 = vsel %vm693_vm3, %v5029_v15, %v5031_v9  ;;  %v5015_v29 = vmax.f32 %v4991_v61, %v5007_v52  ;;  %v5000_v16 = vadd.f32 %v10686_v4, %v4969_v36  ;;  %v4816_v54 = vpop.f32.mrb[94].mxu0 }
 0x3ef   :  { %v4992_v12 = vmax.f32 %v4984_v45, 0.0  ;;  %v4962_v37 = vadd.f32 %v4816_v54, %v10671_v51  ;;  %v4943_v43 = vpop.f32.mrb[114].mxu1  ;;  %v4818_v59 = vpop.f32.mrb[95].mxu0  ;;  %v10731_v62 = vmax.f32 %v5013_v18, %v5032_v35  ;;  %7298 = vmatpush3.bf16.msra.mxu1 %v7295_v28  ;;  %v5066_v28 = vld [vmem:[%s11008_s7 + $0x28] sm:$0xff] }
 0x3f0   :  { %v5033_v17 = vrot.slane %v5015_v29, 2  ;;  %v5008_v44 = vmax.f32 %v5000_v16, 0.0  ;;  %v4970_v27 = vadd.f32 %v4943_v43, %v10673_v49  ;;  %v4945_v56 = vpop.f32.mrb[115].mxu1  ;;  %6735 = vmatprep.subr.msk.mxu1 %vm2160_vm6, %v5654_v25  ;;  %v7199_v0 = vpack.c.bf16 %v5066_v28, %v5065_v34  ;;  %v6424_v34 = vld [vmem:[%s11008_s7 + $0x138] sm:$0xff]  ;;  %v6425_v28 = vld [vmem:[%s11008_s7 + $0x140] sm:$0xff] }
 0x3f1   :  { %v4985_v39 = vadd.f32 %v10686_v4, %v4962_v37  ;;  %v5081_v50 = vrot.slane %v10731_v62, 4 }
 0x3f2   :  { %v5034_v51 = vsel %vm693_vm3, %v5031_v9, %v5033_v17  ;;  %v5016_v2 = vmax.f32 %v4992_v12, %v5008_v44  ;;  %v5001_v32 = vadd.f32 %v10686_v4, %v4970_v27  ;;  %v4821_v3 = vpop.f32.mrb[96].mxu0 }
 0x3f3   :  { %v10743_v24 = vmax.f32 %v5014_v55, %v5034_v51  ;;  %v4993_v49 = vmax.f32 %v4985_v39, 0.0  ;;  %v4963_v53 = vadd.f32 %v4821_v3, %v10675_v8  ;;  %v4948_v18 = vpop.f32.mrb[116].mxu1  ;;  %v4823_v19 = vpop.f32.mrb[97].mxu0  ;;  %v5082_v33 = vsel %vm137_vm0, %v5080_v31, %v5081_v50  ;;  %6736 = vmatpush3.msk.msra.mxu1 %vm2160_vm6, %v5654_v25  ;;  %v5069_v25 = vld [vmem:[%s11008_s7 + $0x40] sm:$0xff]  ;;  %v5071_v3 = vld [vmem:[%s11008_s7 + $0x50] sm:$0xff] }
 0x3f4   :  { %v5035_v58 = vrot.slane %v5016_v2, 2  ;;  %v5009_v22 = vmax.f32 %v5001_v32, 0.0  ;;  %v4971_v57 = vadd.f32 %v4948_v18, %v10677_v48  ;;  %v4950_v21 = vpop.f32.mrb[117].mxu1  ;;  %6589 = vmatprep.mubr.msk.f32.mxu0 %vm5104_vm11, %v5082_v33  ;;  %v5073_v33 = vld [vmem:[%s11008_s7 + $0x60] sm:$0xf] }
 0x3f5   :  { %v4986_v8 = vadd.f32 %v10686_v4, %v4963_v53  ;;  %v5083_v42 = vrot.slane %v10743_v24, 4  ;;  %v6410_v21 = vld [vmem:[%s11008_s7 + $0xf0] sm:$0xff] }
 0x3f6   :  { %v5036_v30 = vsel %vm693_vm3, %v5033_v17, %v5035_v58  ;;  %v5017_v26 = vmax.f32 %v4993_v49, %v5009_v22  ;;  %v5002_v15 = vadd.f32 %v10686_v4, %v4971_v57  ;;  %v4826_v10 = vpop.f32.mrb[98].mxu0  ;;  %v5070_v17 = vld [vmem:[%s11008_s7 + $0x48] sm:$0xff]  ;;  %v5072_v49 = vld [vmem:[%s11008_s7 + $0x58] sm:$0xff]  ;;  %v7215_v22 = vpack.c.bf16 %v6407_v38, %v6406_v14 }
 0x3f7   :  { %v10760_v63 = vmax.f32 %v5015_v29, %v5036_v30  ;;  %v4994_v46 = vmax.f32 %v4986_v8, 0.0  ;;  %v4964_v48 = vadd.f32 %v4826_v10, %v10679_v40  ;;  %v4953_v55 = vpop.f32.mrb[118].mxu1  ;;  %v4828_v7 = vpop.f32.mrb[99].mxu0  ;;  %v10764_v47 = vsel %vm137_vm0, %v5081_v50, %v5083_v42  ;;  %v5068_v29 = vld [vmem:[%s11008_s7 + $0x38] sm:$0xff]  ;;  %v6412_v30 = vld [vmem:[%s11008_s7 + $0x100] sm:$0xff]  ;;  %v6414_v10 = vld [vmem:[%s11008_s7 + $0x110] sm:$0xff] }
 0x3f8   :  { %v5037_v61 = vrot.slane %v5017_v26, 2  ;;  %v5010_v5 = vmax.f32 %v5002_v15, 0.0  ;;  %v4972_v20 = vadd.f32 %v4953_v55, %v10681_v6  ;;  %v4955_v13 = vpop.f32.mrb[119].mxu1  ;;  %6590 = vmatmul.mubr.msk.f32.vlgmr.msra.gmra.mrb[100].mxu0 %vm5104_vm11, %v10764_v47  ;;  %v5067_v6 = vld [vmem:[%s11008_s7 + $0x30] sm:$0xff]  ;;  %v7207_v50 = vpack.c.bf16 %v5070_v17, %v5069_v25  ;;  %v6411_v8 = vld [vmem:[%s11008_s7 + $0xf8] sm:$0xff] }
 0x3f9   :  { %v4987_v40 = vadd.f32 %v10686_v4, %v4964_v48  ;;  %7194 = vmatpush3.bf16.msra.mxu0 %v10650_v23  ;;  %v5409_v9 = vrot.slane %v10760_v63, 4  ;;  %v7203_v43 = vpack.c.bf16 %v5068_v29, %v5067_v6  ;;  %v7211_v53 = vpack.c.bf16 %v5072_v49, %v5071_v3  ;;  %v6416_v48 = vld [vmem:[%s11008_s7 + $0x120] sm:$0xff]  ;;  %v6418_v7 = vld [vmem:[%s11008_s7 + $0x130] sm:$0xf] }
 0x3fa   :  { %v5018_v52 = vmax.f32 %v4994_v46, %v5010_v5  ;;  %v5003_v36 = vadd.f32 %v10686_v4, %v4972_v20  ;;  %7196 = vmatprep.subr.bf16.mxu0 %v7195_v41  ;;  %v5038_v45 = vsel %vm693_vm3, %v5035_v58, %v5037_v61  ;;  %v6408_v58 = vld [vmem:[%s11008_s7 + $0xe0] sm:$0xff]  ;;  %v6427_v5 = vld [vmem:[%s11008_s7 + $0x150] sm:$0xff]  ;;  %v7239_v20 = vpack.c.bf16 %v6425_v28, %v6424_v34 }
 0x3fb   :  { %v4995_v35 = vmax.f32 %v4987_v40, 0.0  ;;  %v5057_v16 = vmax.f32 %v5016_v2, %v5038_v45  ;;  %v10787_v23 = vsel %vm137_vm0, %v5083_v42, %v5409_v9  ;;  %v7223_v42 = vpack.c.bf16 %v6411_v8, %v6410_v21  ;;  %v6428_v40 = vld [vmem:[%s11008_s7 + $0x158] sm:$0xff]  ;;  %v6429_v9 = vld [vmem:[%s11008_s7 + $0x160] sm:$0xff]  ;;  %v6452_v49 = vld [vmem:[%s11008_s7 + $0x1f0] sm:$0xff] }
 0x3fc   :  { %v5039_v54 = vrot.slane %v5018_v52, 2  ;;  %v5011_v12 = vmax.f32 %v5003_v36, 0.0  ;;  %v6430_v36 = vld [vmem:[%s11008_s7 + $0x168] sm:$0xff]  ;;  %v6433_v6 = vld [vmem:[%s11008_s7 + $0x180] sm:$0xff] }
 0x3fd   :  { %7198 = vmatpush3.bf16.msra.mxu0 %v7195_v41  ;;  %v5085_v27 = vrot.slane %v5057_v16, 4  ;;  %v6415_v41 = vld [vmem:[%s11008_s7 + $0x118] sm:$0xff] }
 0x3fe   :  { %v5040_v4 = vsel %vm693_vm3, %v5037_v61, %v5039_v54  ;;  %v5019_v37 = vmax.f32 %v4995_v35, %v5011_v12  ;;  %7200 = vmatprep.subr.bf16.mxu0 %v7199_v0  ;;  %v7231_v46 = vpack.c.bf16 %v6415_v41, %v6414_v10  ;;  %v6426_v61 = vld [vmem:[%s11008_s7 + $0x148] sm:$0xff]  ;;  %v6432_v35 = vld [vmem:[%s11008_s7 + $0x178] sm:$0xff] }
 0x3ff   :  { %v10790_v59 = vmax.f32 %v5017_v26, %v5040_v4  ;;  %v6413_v26 = vld [vmem:[%s11008_s7 + $0x108] sm:$0xff]  ;;  %v7243_v13 = vpack.c.bf16 %v6427_v5, %v6426_v61  ;;  %v7255_v29 = vpack.c.bf16 %v6433_v6, %v6432_v35  ;;  %v6436_v12 = vld [vmem:[%s11008_s7 + $0x198] sm:$0xf]  ;;  %v6442_v4 = vld [vmem:[%s11008_s7 + $0x1a0] sm:$0xff] }
 0x400   :  { %v5041_v44 = vrot.slane %v5019_v37, 2  ;;  %v7227_v15 = vpack.c.bf16 %v6413_v26, %v6412_v30 }
 0x401   :  { %7202 = vmatpush3.bf16.msra.mxu0 %v7199_v0  ;;  %v5086_v56 = vrot.slane %v10790_v59, 4  ;;  %v6431_v0 = vld [vmem:[%s11008_s7 + $0x170] sm:$0xff] }
 0x402   :  { %v5042_v39 = vsel %vm693_vm3, %v5039_v54, %v5041_v44  ;;  %v5052_v31 = vsel %vm693_vm3, %v5041_v44, %v5028_v1  ;;  %7204 = vmatprep.subr.bf16.mxu0 %v7203_v43  ;;  %v7251_v45 = vpack.c.bf16 %v6431_v0, %v6430_v36  ;;  %v6446_v44 = vld [vmem:[%s11008_s7 + $0x1c0] sm:$0xff] }
 0x403   :  { %v10803_v51 = vmax.f32 %v5019_v37, %v5052_v31  ;;  %v5087_v2 = vsel %vm137_vm0, %v5085_v27, %v5086_v56  ;;  %v10806_v32 = vmax.f32 %v5018_v52, %v5042_v39  ;;  %v7247_v52 = vpack.c.bf16 %v6429_v9, %v6428_v40  ;;  %v6443_v37 = vld [vmem:[%s11008_s7 + $0x1a8] sm:$0xff]  ;;  %v6448_v39 = vld [vmem:[%s11008_s7 + $0x1d0] sm:$0xff]  ;;  %v6449_v31 = vld [vmem:[%s11008_s7 + $0x1d8] sm:$0xff] }
 0x404   :  { %6592 = vmatprep.mubr.msk.f32.mxu0 %vm5104_vm11, %v5087_v2  ;;  %v7263_v25 = vpack.c.bf16 %v6443_v37, %v6442_v4  ;;  %v6447_v27 = vld [vmem:[%s11008_s7 + $0x1c8] sm:$0xff] }
 0x405   :  { %7206 = vmatpush3.bf16.msra.mxu0 %v7203_v43  ;;  %v5088_v11 = vrot.slane %v10806_v32, 4  ;;  %v5411_v1 = vrot.slane %v10803_v51, 4  ;;  %v6444_v43 = vld [vmem:[%s11008_s7 + $0x1b0] sm:$0xff]  ;;  %v6451_v2 = vld [vmem:[%s11008_s7 + $0x1e8] sm:$0xff] }
 0x406   :  { %7208 = vmatprep.subr.bf16.mxu0 %v7207_v50 }
 0x407   :  { %v10818_v18 = vsel %vm137_vm0, %v5086_v56, %v5088_v11  ;;  %v10821_v19 = vsel %vm137_vm0, %v5088_v11, %v5411_v1  ;;  %v7271_v56 = vpack.c.bf16 %v6447_v27, %v6446_v44  ;;  %v6454_v1 = vld [vmem:[%s11008_s7 + $0x200] sm:$0xf] }
 0x408   :  { %6593 = vmatmul.mubr.msk.f32.gmra.mrb[102].mxu0 %vm5104_vm11, %v10818_v18 }
 0x409   :  { %7210 = vmatpush3.bf16.msra.mxu0 %v7207_v50  ;;  %6621 = vmatprep.mubr.msk.f32.mxu0 %vm5104_vm11, %v10724_v60  ;;  %v6409_v60 = vld [vmem:[%s11008_s7 + $0xe8] sm:$0xff]  ;;  %v6450_v50 = vld [vmem:[%s11008_s7 + $0x1e0] sm:$0xff] }
 0x40a   :  { %7212 = vmatprep.subr.bf16.mxu0 %v7211_v53  ;;  %v7219_v57 = vpack.c.bf16 %v6409_v60, %v6408_v58  ;;  %v7279_v3 = vpack.c.bf16 %v6451_v2, %v6450_v50 }
 0x40d   :  { %7214 = vmatpush3.bf16.msra.mxu0 %v7211_v53  ;;  %v6460_v53 = vld [vmem:[%s11011_s8] ss:$0 sm:$0xff] }
 0x40e   :  { %6619 = vmatprep.subr.msk.mxu0 %vm137_vm0, %v5073_v33 }
 0x411   :  { %6620 = vmatpush3.msk.msra.mxu0 %vm137_vm0, %v5073_v33 }
 0x412   :  { %6622 = vmatmul.mubr.msk.f32.vlgmr.msra.gmra.mrb[100].mxu0 %vm5104_vm11, %v10731_v62  ;;  %7216 = vmatprep.subr.bf16.mxu0 %v7215_v22 }
 0x413   :  { %6624 = vmatprep.mubr.msk.f32.mxu0 %vm5104_vm11, %v5057_v16  ;;  %7218 = vmatpush3.bf16.msra.mxu0 %v7215_v22  ;;  %v6434_v16 = vld [vmem:[%s11008_s7 + $0x188] sm:$0xff] }
 0x414   :  { %7220 = vmatprep.subr.bf16.mxu0 %v7219_v57 }
 0x416   :  { %6625 = vmatmul.mubr.msk.f32.gmra.mrb[102].mxu0 %vm5104_vm11, %v10790_v59 }
 0x417   :  { %7222 = vmatpush3.bf16.msra.mxu0 %v7219_v57  ;;  %6653 = vmatprep.mubr.msk.f32.mxu0 %vm5104_vm11, %v10731_v62  ;;  %v6417_v62 = vld [vmem:[%s11008_s7 + $0x128] sm:$0xff] }
 0x418   :  { %7224 = vmatprep.subr.bf16.mxu0 %v7223_v42  ;;  %v7235_v55 = vpack.c.bf16 %v6417_v62, %v6416_v48 }
 0x41b   :  { %7226 = vmatpush3.bf16.msra.mxu0 %v7223_v42 }
 0x41c   :  { %7228 = vmatprep.subr.bf16.mxu0 %v7227_v15 }
 0x41f   :  { %7230 = vmatpush3.bf16.msra.mxu0 %v7227_v15 }
 0x420   :  { %7232 = vmatprep.subr.bf16.mxu0 %v7231_v46 }
 0x423   :  { %7234 = vmatpush3.bf16.msra.mxu0 %v7231_v46 }
 0x424   :  { %7236 = vmatprep.subr.bf16.mxu0 %v7235_v55 }
 0x427   :  { %7238 = vmatpush3.bf16.msra.mxu0 %v7235_v55 }
 0x428   :  { %6651 = vmatprep.subr.msk.mxu0 %vm137_vm0, %v6418_v7 }
 0x42b   :  { %6652 = vmatpush3.msk.msra.mxu0 %vm137_vm0, %v6418_v7 }
 0x42c   :  { %6654 = vmatmul.mubr.msk.f32.vlgmr.msra.gmra.mrb[100].mxu0 %vm5104_vm11, %v10743_v24  ;;  %7240 = vmatprep.subr.bf16.mxu0 %v7239_v20 }
 0x42d   :  { %6656 = vmatprep.mubr.msk.f32.mxu0 %vm5104_vm11, %v10790_v59  ;;  %7242 = vmatpush3.bf16.msra.mxu0 %v7239_v20  ;;  %v6445_v59 = vld [vmem:[%s11008_s7 + $0x1b8] sm:$0xff] }
 0x42e   :  { %7244 = vmatprep.subr.bf16.mxu0 %v7243_v13  ;;  %v7267_v17 = vpack.c.bf16 %v6445_v59, %v6444_v43 }
 0x430   :  { %6657 = vmatmul.mubr.msk.f32.gmra.mrb[102].mxu0 %vm5104_vm11, %v10806_v32 }
 0x431   :  { %7246 = vmatpush3.bf16.msra.mxu0 %v7243_v13  ;;  %6685 = vmatprep.mubr.msk.f32.mxu0 %vm5104_vm11, %v10764_v47  ;;  %v6435_v47 = vld [vmem:[%s11008_s7 + $0x190] sm:$0xff] }
 0x432   :  { %7248 = vmatprep.subr.bf16.mxu0 %v7247_v52  ;;  %v7259_v54 = vpack.c.bf16 %v6435_v47, %v6434_v16 }
 0x435   :  { %7250 = vmatpush3.bf16.msra.mxu0 %v7247_v52 }
 0x436   :  { %7252 = vmatprep.subr.bf16.mxu0 %v7251_v45 }
 0x439   :  { %7254 = vmatpush3.bf16.msra.mxu0 %v7251_v45 }
 0x43a   :  { %7256 = vmatprep.subr.bf16.mxu0 %v7255_v29 }
 0x43d   :  { %7258 = vmatpush3.bf16.msra.mxu0 %v7255_v29 }
 0x43e   :  { %7260 = vmatprep.subr.bf16.mxu0 %v7259_v54 }
 0x441   :  { %7262 = vmatpush3.bf16.msra.mxu0 %v7259_v54 }
 0x442   :  { %6683 = vmatprep.subr.msk.mxu0 %vm137_vm0, %v6436_v12 }
 0x445   :  { %6684 = vmatpush3.msk.msra.mxu0 %vm137_vm0, %v6436_v12 }
 0x446   :  { %6686 = vmatmul.mubr.msk.f32.vlgmr.msra.gmra.mrb[100].mxu0 %vm5104_vm11, %v10787_v23  ;;  %7264 = vmatprep.subr.bf16.mxu0 %v7263_v25  ;;  %v7275_v23 = vpack.c.bf16 %v6449_v31, %v6448_v39 }
 0x447   :  { %6688 = vmatprep.mubr.msk.f32.mxu0 %vm5104_vm11, %v10818_v18  ;;  %7266 = vmatpush3.bf16.msra.mxu0 %v7263_v25 }
 0x448   :  { %7268 = vmatprep.subr.bf16.mxu0 %v7267_v17 }
 0x44a   :  { %6689 = vmatmul.mubr.msk.f32.gmra.mrb[102].mxu0 %vm5104_vm11, %v10821_v19 }
 0x44b   :  { %7270 = vmatpush3.bf16.msra.mxu0 %v7267_v17  ;;  %6717 = vmatprep.mubr.msk.f32.mxu0 %vm5104_vm11, %v10743_v24  ;;  %v6453_v24 = vld [vmem:[%s11008_s7 + $0x1f8] sm:$0xff] }
 0x44c   :  { %7272 = vmatprep.subr.bf16.mxu0 %v7271_v56  ;;  %v7283_v11 = vpack.c.bf16 %v6453_v24, %v6452_v49 }
 0x44f   :  { %7274 = vmatpush3.bf16.msra.mxu0 %v7271_v56 }
 0x450   :  { %7276 = vmatprep.subr.bf16.mxu0 %v7275_v23 }
 0x453   :  { %7278 = vmatpush3.bf16.msra.mxu0 %v7275_v23 }
 0x454   :  { %7280 = vmatprep.subr.bf16.mxu0 %v7279_v3 }
 0x457   :  { %7282 = vmatpush3.bf16.msra.mxu0 %v7279_v3 }
 0x458   :  { %7284 = vmatprep.subr.bf16.mxu0 %v7283_v11 }
 0x45b   :  { %7286 = vmatpush3.bf16.msra.mxu0 %v7283_v11 }
 0x45c   :  { %6715 = vmatprep.subr.msk.mxu0 %vm137_vm0, %v6454_v1 }
 0x45f   :  { %6716 = vmatpush3.msk.msra.mxu0 %vm137_vm0, %v6454_v1 }
 0x460   :  { %6718 = vmatmul.mubr.msk.f32.vlgmr.msra.gmra.mrb[100].mxu0 %vm5104_vm11, %v10760_v63 }
 0x461   :  { %6720 = vmatprep.mubr.msk.f32.mxu0 %vm5104_vm11, %v10806_v32 }
 0x464   :  { %6721 = vmatmul.mubr.msk.f32.gmra.mrb[102].mxu0 %vm5104_vm11, %v10803_v51  ;;  %v6461_v51 = vld [vmem:[%s11012_s10] ss:$0 sm:$0xff] }
 0x533   :  { %v6719_v18 = vpop.f32.mrb[100].mxu0 }
 0x534   :  { %v5641_v19 = vadd.f32 %v6719_v18, %v6460_v53  ;;  %v5610_v33 = vpop.f32.mrb[101].mxu0 }
 0x535   :  { %v5640_v14 = vadd.f32 %v6460_v53, %v5610_v33 }
 0x536   :  { %v5645_v60 = vmax.f32 %v5641_v19, 0.0 }
 0x537   :  { %v5644_v38 = vmax.f32 %v5640_v14, 0.0  ;;  %v6722_v58 = vpop.f32.mrb[102].mxu0 }
 0x538   :  { %v5643_v22 = vadd.f32 %v6722_v58, %v6460_v53  ;;  %v5620_v63 = vpop.f32.mrb[103].mxu0 }
 0x539   :  { %v5642_v57 = vadd.f32 %v6460_v53, %v5620_v63  ;;  %6737 = vmatprep.mubr.msk.f32.mxu1 %vm5662_vm12, %v5644_v38 }
 0x53a   :  { %6738 = vmatmul.mubr.msk.f32.vlgmr.msra.gmra.mrb[120].mxu1 %vm5662_vm12, %v5645_v60  ;;  %v5647_v21 = vmax.f32 %v5643_v22, 0.0 }
 0x53b   :  { %v5646_v32 = vmax.f32 %v5642_v57, 0.0 }
 0x53d   :  { %6740 = vmatprep.mubr.msk.f32.mxu1 %vm5662_vm12, %v5646_v32 }
 0x53e   :  { %6741 = vmatmul.mubr.msk.f32.gmra.mrb[122].mxu1 %vm5662_vm12, %v5647_v21 }
 0x60d   :  { %v6739_v8 = vpop.f32.mrb[120].mxu1 }
 0x60e   :  { %v5750_v42 = vadd.f32 %v6739_v8, %v6461_v51  ;;  %v5744_v30 = vpop.f32.mrb[121].mxu1 }
 0x60f   :  { %v5745_v26 = vadd.f32 %v6461_v51, %v5744_v30 }
 0x610   :  { %5765 = vst.msk [vmem:[%s11013_s11 + $0x8] sm:$0xff] %vm5763_vm13, %v5750_v42 }
 0x611   :  { %5764 = vst.msk [vmem:[%s11013_s11] sm:$0xff] %vm5763_vm13, %v5745_v26  ;;  %v6742_v15 = vpop.f32.mrb[122].mxu1 }
 0x612   :  { %v5760_v10 = vadd.f32 %v6742_v15, %v6461_v51  ;;  %v5754_v41 = vpop.f32.mrb[123].mxu1 }
 0x613   :  { %v5755_v46 = vadd.f32 %v6461_v51, %v5754_v41 }
 0x614   :  { %5767 = vst.msk [vmem:[%s11013_s11 + $0x18] sm:$0xff] %vm5763_vm13, %v5760_v10 }
 0x615   :  { %5766 = vst.msk [vmem:[%s11013_s11 + $0x10] sm:$0xff] %vm5763_vm13, %v5755_v46 }

</bundles_post_ra>
